<compile_context>
chip_gen: v6e
topology: v6e:2x2x1
jax: 0.10.0
libtpu: 0.0.40
codegen_flags: <defaults>
</compile_context>

<pallas_src>
import math

import jax
import jax.numpy as jnp
from jax.experimental import pallas as pl
from jax.experimental.pallas import tpu as pltpu


def _round_up(x, m):
    return ((x + m - 1) // m) * m


def _vn_matmul_kernel(x_ref, w_ref, o_ref):
    # X tile: (TM, in_lanes) @ W2T: (in_lanes, out_lanes) -> O tile, f32 accumulation.
    o_ref[...] = jnp.dot(
        x_ref[...], w_ref[...], preferred_element_type=jnp.float32
    ).astype(o_ref.dtype)


def _fold_factor(in_lanes, out_lanes, m_rows, itemsize,
                 max_fold=16, max_weight_bytes=4 << 20):
    """Fold f consecutive rows into lanes so f*in_lanes and f*out_lanes are
    multiples of 128 (lane-dense tiles, unmasked stores)."""
    def need(n):
        return 128 // math.gcd(n, 128)
    a, b = need(in_lanes), need(out_lanes)
    f = a * b // math.gcd(a, b)            # lcm; always a power of two
    if f == 1:
        return 1
    if f > max_fold or m_rows % f != 0:
        return 1
    if (f * in_lanes) * (f * out_lanes) * itemsize > max_weight_bytes:
        return 1
    return f


def _pick_tile_rows(m_folded, in_lanes, out_lanes, itemsize, *,
                    row_align, w_bytes, max_rows=4096,
                    tile_budget_bytes=16 << 20):
    """Largest power-of-two row tile whose double-buffered X+O tiles (plus the
    resident weight) stay inside a VMEM budget that is safe on v5e/v6e/v7x."""
    per_row = 2 * (in_lanes + out_lanes) * itemsize     # double-buffered X + O
    budget = max(tile_budget_bytes - 2 * w_bytes, 2 << 20)
    tm = max_rows
    while tm > row_align and tm * per_row > budget:
        tm //= 2
    # Don't make the tile larger than the (row-aligned) problem.
    full = _round_up(max(m_folded, 1), row_align)
    tm = min(tm, full)
    return max(tm, row_align)


def _dimension_semantics(grid_steps):
    """Row-axis semantics: CORE_PARALLEL on v7x (2 TensorCores/chip) so the grid
    is actually sharded across cores; plain "parallel" elsewhere."""
    try:
        kind = jax.devices()[0].device_kind.lower()
    except Exception:
        kind = ""
    if "v7" in kind and grid_steps >= 2:
        return (pltpu.CORE_PARALLEL,)
    return ("parallel",)


def vector_neuron_layer(weights, x, *, min_rows=256, min_bytes=1 << 20):
    """Pallas implementation of VectorNeuronLayer.forward.

    weights: (out_features, in_features)
    x:       (..., in_features, D)   (any leading batch dims)
    returns: (..., out_features, D)  == torch.matmul(weights, x)
    """
    out_features, in_features = weights.shape
    *batch_dims, in_f, d = x.shape
    assert in_f == in_features, (in_f, in_features)

    compute_dtype = jnp.promote_types(weights.dtype, x.dtype)
    itemsize = jnp.dtype(compute_dtype).itemsize

    m_rows = 1
    for b in batch_dims:
        m_rows *= b
    in_d = in_features * d
    out_d = out_features * d

    # Small problems: XLA's fused matmul beats kernel launch + per-step overhead.
    if m_rows < min_rows or m_rows * in_d * itemsize < min_bytes:
        return jnp.matmul(weights.astype(compute_dtype), x.astype(compute_dtype))

    # Block-diagonal weight: W2T[i*D + di, o*D + do] = W[o, i] * (di == do).
    w2t = jnp.kron(weights.T.astype(compute_dtype),
                   jnp.eye(d, dtype=compute_dtype))            # (in*D, out*D)

    # Lane folding for non-multiple-of-128 widths (demo: in*D = 64 -> f = 2).
    f = _fold_factor(in_d, out_d, m_rows, itemsize)
    if f > 1:
        w2t = jnp.kron(jnp.eye(f, dtype=compute_dtype), w2t)   # (f*in*D, f*out*D)
    in_lanes, out_lanes = f * in_d, f * out_d
    m_folded = m_rows // f

    w_bytes = in_lanes * out_lanes * itemsize
    if w_bytes > (12 << 20):
        # TODO(synk): tile the contraction / output-lane axes instead of falling back.
        return jnp.matmul(weights.astype(compute_dtype), x.astype(compute_dtype))

    # Free, contiguous reshape (no transpose): (..., in, D) -> (M/f, f*in*D).
    x2 = x.astype(compute_dtype).reshape(m_folded, in_lanes)

    row_align = 16 if itemsize < 4 else 8          # bf16 native tiling is (16, 128)
    tm = _pick_tile_rows(m_folded, in_lanes, out_lanes, itemsize,
                         row_align=row_align, w_bytes=w_bytes)
    grid_steps = pl.cdiv(m_folded, tm)             # ragged last block masked by Pallas

    footprint = 2 * tm * (in_lanes + out_lanes) * itemsize + 2 * w_bytes
    # Never lower the scoped limit below the 32 MiB default; cap at 48 MiB (v7x-safe).
    vmem_limit = int(min(max(footprint + (8 << 20), 32 << 20), 48 << 20))

    cost = pl.CostEstimate(
        flops=2 * m_rows * in_features * out_features * d,   # true FLOPs (no kron zeros)
        transcendentals=0,
        bytes_accessed=(m_rows * (in_d + out_d) + in_lanes * out_lanes) * itemsize,
    )

    out2 = pl.pallas_call(
        _vn_matmul_kernel,
        out_shape=jax.ShapeDtypeStruct((m_folded, out_lanes), compute_dtype),
        grid_spec=pl.GridSpec(
            grid=(grid_steps,),
            in_specs=[
                pl.BlockSpec((tm, in_lanes), lambda i: (i, 0)),       # X row-tile, pipelined
                pl.BlockSpec((in_lanes, out_lanes), lambda i: (0, 0)),  # weight VMEM-resident
            ],
            out_specs=pl.BlockSpec((tm, out_lanes), lambda i: (i, 0)),
        ),
        compiler_params=pltpu.CompilerParams(
            dimension_semantics=_dimension_semantics(grid_steps),
            vmem_limit_bytes=vmem_limit,
        ),
        cost_estimate=cost,
    )(x2, w2t)

    # Free, contiguous reshape back: (M/f, f*out*D) -> (..., out, D).
    return out2.reshape(tuple(batch_dims) + (out_features, d))


if __name__ == "__main__":
    key = jax.random.PRNGKey(0)
    k_w, k_x, k_w2, k_x2 = jax.random.split(key, 4)

    # Case 1: DGCNN-style 2-D vector neurons -- B point clouds of N points.
    # in*D = 64 -> lane-folding f = 2 gives 128-lane inputs / 256-lane outputs.
    B, N, in_features, out_features, D = 2, 4096, 32, 64, 2
    weights = jax.random.normal(k_w, (out_features, in_features), dtype=jnp.float32)
    x = jax.random.normal(k_x, (B, N, in_features, D), dtype=jnp.float32)

    out = jax.block_until_ready(vector_neuron_layer(weights, x))
    ref = jnp.matmul(weights, x)
    assert out.shape == ref.shape == (B, N, out_features, D)
    # Loose tolerance: XLA's default f32 matmul and the Pallas MXU path use slightly
    # different multi-pass precisions; real semantic bugs would be O(1) off.
    assert jnp.allclose(out, ref, atol=3e-2, rtol=3e-2), float(
        jnp.max(jnp.abs(out - ref)))

    # Case 2: 3-D vectors, non-multiple-of-128 lane widths, multi-step grid with a
    # ragged final row tile (no wrapper pad/slice -- Pallas masks the boundary block).
    B2, N2, in2, outf2, D2 = 1, 9000, 48, 96, 3
    w_b = jax.random.normal(k_w2, (outf2, in2), dtype=jnp.float32)
    x_b = jax.random.normal(k_x2, (B2, N2, in2, D2), dtype=jnp.float32)
    out_b = jax.block_until_ready(vector_neuron_layer(w_b, x_b))
    ref_b = jnp.matmul(w_b, x_b)
    assert out_b.shape == ref_b.shape == (B2, N2, outf2, D2)
    assert jnp.allclose(out_b, ref_b, atol=3e-2, rtol=3e-2), float(
        jnp.max(jnp.abs(out_b - ref_b)))

    # Tiny-shape dispatch falls back to plain jnp.matmul (same semantics).
    x_small = jax.random.normal(k_x, (2, 8, 4, 2), dtype=jnp.float32)
    w_small = jax.random.normal(k_w, (8, 4), dtype=jnp.float32)
    out_small = jax.block_until_ready(vector_neuron_layer(w_small, x_small))
    assert jnp.allclose(out_small, jnp.matmul(w_small, x_small), atol=1e-5, rtol=1e-5)

    print("KERNEL_OK")
</pallas_src>

<mosaic_0001>
module attributes {stable_mosaic.version = 11 : i64} {
  func.func @_vn_matmul_kernel(%arg0: i32, %arg1: memref<4096x128xf32, #tpu.memory_space<vmem>>, %arg2: memref<128x256xf32, #tpu.memory_space<vmem>>, %arg3: memref<4096x256xf32, #tpu.memory_space<vmem>>) attributes {dimension_semantics = [#tpu.dimension_semantics<parallel>], iteration_bounds = array<i64: 1>, scalar_prefetch = 0 : i64, scratch_operands = 0 : i64, tpu.core_type = #tpu.core_type<tc>, window_params = [{transform_indices = @transform_0, window_bounds = array<i64: 4096, 128>}, {pipeline_mode = #tpu.pipeline_mode<synchronous>, transform_indices = @transform_1, window_bounds = array<i64: 128, 256>}, {transform_indices = @transform_2, window_bounds = array<i64: 4096, 256>}]} {
    %c0 = arith.constant 0 : index
    %c0_0 = arith.constant 0 : index
    %0 = vector.load %arg1[%c0, %c0_0] : memref<4096x128xf32, #tpu.memory_space<vmem>>, vector<4096x128xf32>
    %c0_1 = arith.constant 0 : index
    %c0_2 = arith.constant 0 : index
    %1 = vector.load %arg2[%c0_1, %c0_2] : memref<128x256xf32, #tpu.memory_space<vmem>>, vector<128x256xf32>
    %cst = arith.constant dense<0.000000e+00> : vector<4096x256xf32>
    %2 = tpu.matmul %0, %1, %cst {dimension_numbers = #tpu.dot_dimension_numbers<[1], [0], [0], [1], [0, 0, 1, 1], [], []>} : vector<4096x128xf32>, vector<128x256xf32>, vector<4096x256xf32> -> vector<4096x256xf32>
    %c0_3 = arith.constant 0 : index
    %c0_4 = arith.constant 0 : index
    %3 = vector.load %arg3[%c0_3, %c0_4] : memref<4096x256xf32, #tpu.memory_space<vmem>>, vector<4096x256xf32>
    tpu.vector_store %arg3[%c0_3, %c0_4], %2 {strides = array<i32>} : memref<4096x256xf32, #tpu.memory_space<vmem>>, vector<4096x256xf32>,
    return
  }
  func.func @transform_0(%arg0: i32) -> (i32, i32) {
    %c0_i32 = arith.constant 0 : i32
    %c0_i32_0 = arith.constant 0 : i32
    return %arg0, %c0_i32 : i32, i32
  }
  func.func @transform_1(%arg0: i32) -> (i32, i32) {
    %c0_i32 = arith.constant 0 : i32
    %c0_i32_0 = arith.constant 0 : i32
    %c0_i32_1 = arith.constant 0 : i32
    return %c0_i32, %c0_i32_0 : i32, i32
  }
  func.func @transform_2(%arg0: i32) -> (i32, i32) {
    %c0_i32 = arith.constant 0 : i32
    %c0_i32_0 = arith.constant 0 : i32
    return %arg0, %c0_i32 : i32, i32
  }
}

</mosaic_0001>

<bundles_post_ra>
// kernel: tpu_custom_call.1
= control target key start
LH: loop header
LB: loop body
LE: loop exit
PB: predicated region body
PF: predicated region fallthrough
CT: control target
= control target key end

     0   :  { %7 = vsyncpa [#allocation3], 0  ;;  %s5419_s0 = inlined_call_operand.hbm [shape: f32[4096,128], index: 0, kind: input, shape index: {}]   ;;  %s5420_s1 = inlined_call_operand.hbm [shape: f32[128,256], index: 1, kind: input, shape index: {}]   ;;  %s5421_s2 = inlined_call_operand.hbm [shape: f32[4096,256], index: 2, kind: output, shape index: {}]  }
   0x1   :  { %8 = vsyncpa [#allocation6], 0 }
   0x2   :  { %9 = vsyncpa [#allocation4], 0  ;;  %s4869_s9 = smov [#allocation2]  }
   0x3   :  { %s15_s10 = sshll.u32 %s4869_s9, 4  ;;  %s16_s10 = int_to_ptr.vmem [resolvable:$true] %s15_s10 }
   0x4   :  { %s4811_s11 = scalar_lea.vmem %s16_s10, 65536  ;;  %p4816_p1 = scmp.lt.s32.totalorder %s16_s10, %s16_s10 }
   0x5   :  { %p4812_p0 = scmp.ne.s32.totalorder %s16_s10, %s4811_s11  ;;  %p4817_p2 = scmp.lt.s32.totalorder %s4811_s11, %s4811_s11 }
   0x7   :  { %p4818_p3 = por %p4817_p2, %p4816_p1 }
   0x9   :  { %p4819_p4 = pnand %p4818_p3, %p4812_p0 }
   0xb   :  { %4822 = shalt.err (!%p4819_p4)
}
   0xc   :  { %s4870_s12 = smov 128   ;;  %s4871_s13 = smov 8  }
   0xd   :  { %21 = dma.hbm_to_vmem [thread:$0]  %s5419_s0, 65536, %s16_s10, [#allocation3], %s4870_s12, %s4870_s12, %s4871_s13  }
   0xe   :  { %s4872_s16 = smov [#allocation5]  }
   0xf   :  { %s27_s17 = sshll.u32 %s4872_s16, 4  ;;  %s28_s17 = int_to_ptr.vmem [resolvable:$true] %s27_s17 }
  0x10   :  { %s4831_s18 = scalar_lea.vmem %s28_s17, 4096  ;;  %p4836_p6 = scmp.lt.s32.totalorder %s28_s17, %s28_s17 }
  0x11   :  { %p4832_p5 = scmp.ne.s32.totalorder %s28_s17, %s4831_s18  ;;  %p4837_p7 = scmp.lt.s32.totalorder %s4831_s18, %s4831_s18 }
  0x13   :  { %p4838_p8 = por %p4837_p7, %p4836_p6 }
  0x15   :  { %p4839_p9 = pnand %p4838_p8, %p4832_p5 }
  0x17   :  { %4842 = shalt.err (!%p4839_p9)
}
  0x18   :  { %s4873_s19 = smov 256   ;;  %s4874_s20 = smov 16  }
  0x19   :  { %33 = dma.hbm_to_vmem [thread:$0]  %s5420_s1, 4096, %s28_s17, [#allocation6], %s4873_s19, %s4873_s19, %s4874_s20  }
  0x1a   :  { %4863 = dma.done.wait [#allocation3], 65536  }
  0x1b   :  { %4864 = vsyncadd [#allocation3], 4294901760 }
  0x1c   :  { %4865 = dma.done.wait [#allocation6], 4096  }
  0x1d   :  { %4866 = vsyncadd [#allocation6], 4294963200  ;;  %v4875_v0 = vmov 0.0   ;;  %v583_v1 = vld [vmem:[#allocation5 + $0xf8] sm:$0xff]  ;;  %v582_v2 = vld [vmem:[#allocation5 + $0xf0] sm:$0xff]  ;;  %s4876_s0 = smov [#allocation7]  }
  0x1e   :  { %648 = vmatprep.mubr.f32.mxu0 %v4875_v0  ;;  %2184 = vmatprep.mubr.f32.mxu1 %v4875_v0  ;;  %v581_v3 = vld [vmem:[#allocation5 + $0xe8] sm:$0xff]  ;;  %v580_v4 = vld [vmem:[#allocation5 + $0xe0] sm:$0xff]  ;;  %v579_v5 = vld [vmem:[#allocation5 + $0xd8] sm:$0xff]  ;;  %s4750_s1 = sshll.u32 %s4876_s0, 4  ;;  %s4751_s1 = int_to_ptr.vmem [resolvable:$true] %s4750_s1 }
  0x1f   :  { %584 = vmatprep.subr.mxu0 %v583_v1  ;;  %4763 = vmatprep.subr.mxu1 %v583_v1  ;;  %v578_v6 = vld [vmem:[#allocation5 + $0xd0] sm:$0xff]  ;;  %v577_v7 = vld [vmem:[#allocation5 + $0xc8] sm:$0xff]  ;;  %v576_v8 = vld [vmem:[#allocation5 + $0xc0] sm:$0xff]  ;;  %s4843_s23 = scalar_lea.vmem %s4751_s1, 131072  ;;  %p4848_p11 = scmp.lt.s32.totalorder %s4751_s1, %s4751_s1 }
  0x20   :  { %585 = vmatpush1.msra.mxu0 %v582_v2  ;;  %4779 = vmatpush1.msra.mxu1 %v582_v2  ;;  %v575_v9 = vld [vmem:[#allocation5 + $0xb8] sm:$0xff]  ;;  %v574_v10 = vld [vmem:[#allocation5 + $0xb0] sm:$0xff]  ;;  %v573_v11 = vld [vmem:[#allocation5 + $0xa8] sm:$0xff]  ;;  %p4844_p10 = scmp.ne.s32.totalorder %s4751_s1, %s4843_s23  ;;  %p4849_p12 = scmp.lt.s32.totalorder %s4843_s23, %s4843_s23 }
  0x21   :  { %586 = vmatprep.subr.mxu0 %v581_v3  ;;  %4764 = vmatprep.subr.mxu1 %v581_v3  ;;  %v572_v12 = vld [vmem:[#allocation5 + $0xa0] sm:$0xff]  ;;  %v571_v13 = vld [vmem:[#allocation5 + $0x98] sm:$0xff]  ;;  %v570_v14 = vld [vmem:[#allocation5 + $0x90] sm:$0xff] }
  0x22   :  { %587 = vmatpush1.msra.mxu0 %v580_v4  ;;  %4780 = vmatpush1.msra.mxu1 %v580_v4  ;;  %v569_v15 = vld [vmem:[#allocation5 + $0x88] sm:$0xff]  ;;  %v568_v16 = vld [vmem:[#allocation5 + $0x80] sm:$0xff]  ;;  %v567_v17 = vld [vmem:[#allocation5 + $0x78] sm:$0xff]  ;;  %p4850_p13 = por %p4849_p12, %p4848_p11 }
  0x23   :  { %588 = vmatprep.subr.mxu0 %v579_v5  ;;  %4765 = vmatprep.subr.mxu1 %v579_v5  ;;  %v566_v18 = vld [vmem:[#allocation5 + $0x70] sm:$0xff]  ;;  %v565_v19 = vld [vmem:[#allocation5 + $0x68] sm:$0xff]  ;;  %v564_v20 = vld [vmem:[#allocation5 + $0x60] sm:$0xff] }
  0x24   :  { %589 = vmatpush1.msra.mxu0 %v578_v6  ;;  %4781 = vmatpush1.msra.mxu1 %v578_v6  ;;  %v563_v21 = vld [vmem:[#allocation5 + $0x58] sm:$0xff]  ;;  %v562_v22 = vld [vmem:[#allocation5 + $0x50] sm:$0xff]  ;;  %v561_v23 = vld [vmem:[#allocation5 + $0x48] sm:$0xff]  ;;  %p4851_p0 = pnand %p4850_p13, %p4844_p10 }
  0x25   :  { %590 = vmatprep.subr.mxu0 %v577_v7  ;;  %4766 = vmatprep.subr.mxu1 %v577_v7  ;;  %v560_v24 = vld [vmem:[#allocation5 + $0x40] sm:$0xff]  ;;  %v559_v25 = vld [vmem:[#allocation5 + $0x38] sm:$0xff]  ;;  %v558_v26 = vld [vmem:[#allocation5 + $0x30] sm:$0xff] }
  0x26   :  { %591 = vmatpush1.msra.mxu0 %v576_v8  ;;  %4782 = vmatpush1.msra.mxu1 %v576_v8  ;;  %v557_v27 = vld [vmem:[#allocation5 + $0x28] sm:$0xff]  ;;  %v556_v28 = vld [vmem:[#allocation5 + $0x20] sm:$0xff]  ;;  %v555_v29 = vld [vmem:[#allocation5 + $0x18] sm:$0xff] }
  0x27   :  { %592 = vmatprep.subr.mxu0 %v575_v9  ;;  %4767 = vmatprep.subr.mxu1 %v575_v9  ;;  %v554_v30 = vld [vmem:[#allocation5 + $0x10] sm:$0xff]  ;;  %v553_v31 = vld [vmem:[#allocation5 + $0x8] sm:$0xff]  ;;  %v552_v32 = vld [vmem:[#allocation5] sm:$0xff] }
  0x28   :  { %593 = vmatpush1.msra.mxu0 %v574_v10  ;;  %4783 = vmatpush1.msra.mxu1 %v574_v10  ;;  %v40_v33 = vld [vmem:[#allocation2] sm:$0xff]  ;;  %v41_v35 = vld [vmem:[#allocation2 + $0x8] sm:$0xff]  ;;  %v42_v37 = vld [vmem:[#allocation2 + $0x10] sm:$0xff] }
  0x29   :  { %594 = vmatprep.subr.mxu0 %v573_v11  ;;  %4768 = vmatprep.subr.mxu1 %v573_v11  ;;  %v296_v34 = vld [vmem:[#allocation2 + $0x800] sm:$0xff]  ;;  %v297_v36 = vld [vmem:[#allocation2 + $0x808] sm:$0xff]  ;;  %v298_v38 = vld [vmem:[#allocation2 + $0x810] sm:$0xff] }
  0x2a   :  { %595 = vmatpush1.msra.mxu0 %v572_v12  ;;  %4784 = vmatpush1.msra.mxu1 %v572_v12  ;;  %v43_v39 = vld [vmem:[#allocation2 + $0x18] sm:$0xff]  ;;  %v44_v41 = vld [vmem:[#allocation2 + $0x20] sm:$0xff]  ;;  %v45_v43 = vld [vmem:[#allocation2 + $0x28] sm:$0xff] }
  0x2b   :  { %596 = vmatprep.subr.mxu0 %v571_v13  ;;  %4769 = vmatprep.subr.mxu1 %v571_v13  ;;  %v299_v40 = vld [vmem:[#allocation2 + $0x818] sm:$0xff]  ;;  %v300_v42 = vld [vmem:[#allocation2 + $0x820] sm:$0xff]  ;;  %v301_v44 = vld [vmem:[#allocation2 + $0x828] sm:$0xff] }
  0x2c   :  { %597 = vmatpush1.msra.mxu0 %v570_v14  ;;  %4785 = vmatpush1.msra.mxu1 %v570_v14  ;;  %v46_v45 = vld [vmem:[#allocation2 + $0x30] sm:$0xff]  ;;  %v47_v47 = vld [vmem:[#allocation2 + $0x38] sm:$0xff]  ;;  %v48_v49 = vld [vmem:[#allocation2 + $0x40] sm:$0xff] }
  0x2d   :  { %598 = vmatprep.subr.mxu0 %v569_v15  ;;  %4770 = vmatprep.subr.mxu1 %v569_v15  ;;  %v302_v46 = vld [vmem:[#allocation2 + $0x830] sm:$0xff]  ;;  %v303_v48 = vld [vmem:[#allocation2 + $0x838] sm:$0xff]  ;;  %v304_v50 = vld [vmem:[#allocation2 + $0x840] sm:$0xff] }
  0x2e   :  { %599 = vmatpush1.msra.mxu0 %v568_v16  ;;  %4786 = vmatpush1.msra.mxu1 %v568_v16  ;;  %v49_v51 = vld [vmem:[#allocation2 + $0x48] sm:$0xff]  ;;  %v50_v53 = vld [vmem:[#allocation2 + $0x50] sm:$0xff]  ;;  %v51_v55 = vld [vmem:[#allocation2 + $0x58] sm:$0xff] }
  0x2f   :  { %600 = vmatprep.subr.mxu0 %v567_v17  ;;  %4771 = vmatprep.subr.mxu1 %v567_v17  ;;  %v305_v52 = vld [vmem:[#allocation2 + $0x848] sm:$0xff]  ;;  %v306_v54 = vld [vmem:[#allocation2 + $0x850] sm:$0xff]  ;;  %v307_v56 = vld [vmem:[#allocation2 + $0x858] sm:$0xff] }
  0x30   :  { %601 = vmatpush1.msra.mxu0 %v566_v18  ;;  %4787 = vmatpush1.msra.mxu1 %v566_v18  ;;  %v52_v57 = vld [vmem:[#allocation2 + $0x60] sm:$0xff]  ;;  %v53_v59 = vld [vmem:[#allocation2 + $0x68] sm:$0xff]  ;;  %v54_v61 = vld [vmem:[#allocation2 + $0x70] sm:$0xff] }
  0x31   :  { %602 = vmatprep.subr.mxu0 %v565_v19  ;;  %4772 = vmatprep.subr.mxu1 %v565_v19  ;;  %v308_v58 = vld [vmem:[#allocation2 + $0x860] sm:$0xff]  ;;  %v309_v60 = vld [vmem:[#allocation2 + $0x868] sm:$0xff]  ;;  %v310_v62 = vld [vmem:[#allocation2 + $0x870] sm:$0xff] }
  0x32   :  { %603 = vmatpush1.msra.mxu0 %v564_v20  ;;  %4788 = vmatpush1.msra.mxu1 %v564_v20  ;;  %v55_v63 = vld [vmem:[#allocation2 + $0x78] sm:$0xff]  ;;  %v56_v2 = vld [vmem:[#allocation2 + $0x80] sm:$0xff]  ;;  %v57_v4 = vld [vmem:[#allocation2 + $0x88] sm:$0xff] }
  0x33   :  { %604 = vmatprep.subr.mxu0 %v563_v21  ;;  %4773 = vmatprep.subr.mxu1 %v563_v21  ;;  %v311_v1 = vld [vmem:[#allocation2 + $0x878] sm:$0xff]  ;;  %v312_v3 = vld [vmem:[#allocation2 + $0x880] sm:$0xff]  ;;  %v313_v5 = vld [vmem:[#allocation2 + $0x888] sm:$0xff] }
  0x34   :  { %605 = vmatpush1.msra.mxu0 %v562_v22  ;;  %4789 = vmatpush1.msra.mxu1 %v562_v22  ;;  %v58_v6 = vld [vmem:[#allocation2 + $0x90] sm:$0xff]  ;;  %v59_v8 = vld [vmem:[#allocation2 + $0x98] sm:$0xff]  ;;  %v60_v10 = vld [vmem:[#allocation2 + $0xa0] sm:$0xff] }
  0x35   :  { %606 = vmatprep.subr.mxu0 %v561_v23  ;;  %4774 = vmatprep.subr.mxu1 %v561_v23  ;;  %v314_v7 = vld [vmem:[#allocation2 + $0x890] sm:$0xff]  ;;  %v315_v9 = vld [vmem:[#allocation2 + $0x898] sm:$0xff]  ;;  %v316_v11 = vld [vmem:[#allocation2 + $0x8a0] sm:$0xff] }
  0x36   :  { %607 = vmatpush1.msra.mxu0 %v560_v24  ;;  %4790 = vmatpush1.msra.mxu1 %v560_v24  ;;  %v61_v12 = vld [vmem:[#allocation2 + $0xa8] sm:$0xff]  ;;  %v62_v14 = vld [vmem:[#allocation2 + $0xb0] sm:$0xff]  ;;  %v63_v16 = vld [vmem:[#allocation2 + $0xb8] sm:$0xff] }
  0x37   :  { %608 = vmatprep.subr.mxu0 %v559_v25  ;;  %4775 = vmatprep.subr.mxu1 %v559_v25  ;;  %v317_v13 = vld [vmem:[#allocation2 + $0x8a8] sm:$0xff]  ;;  %v318_v15 = vld [vmem:[#allocation2 + $0x8b0] sm:$0xff]  ;;  %v319_v17 = vld [vmem:[#allocation2 + $0x8b8] sm:$0xff] }
  0x38   :  { %609 = vmatpush1.msra.mxu0 %v558_v26  ;;  %4791 = vmatpush1.msra.mxu1 %v558_v26  ;;  %v64_v18 = vld [vmem:[#allocation2 + $0xc0] sm:$0xff]  ;;  %v65_v20 = vld [vmem:[#allocation2 + $0xc8] sm:$0xff]  ;;  %v66_v22 = vld [vmem:[#allocation2 + $0xd0] sm:$0xff] }
  0x39   :  { %610 = vmatprep.subr.mxu0 %v557_v27  ;;  %4776 = vmatprep.subr.mxu1 %v557_v27  ;;  %v320_v19 = vld [vmem:[#allocation2 + $0x8c0] sm:$0xff]  ;;  %v321_v21 = vld [vmem:[#allocation2 + $0x8c8] sm:$0xff]  ;;  %v322_v23 = vld [vmem:[#allocation2 + $0x8d0] sm:$0xff] }
  0x3a   :  { %611 = vmatpush1.msra.mxu0 %v556_v28  ;;  %4792 = vmatpush1.msra.mxu1 %v556_v28  ;;  %v67_v24 = vld [vmem:[#allocation2 + $0xd8] sm:$0xff]  ;;  %v68_v26 = vld [vmem:[#allocation2 + $0xe0] sm:$0xff]  ;;  %v69_v28 = vld [vmem:[#allocation2 + $0xe8] sm:$0xff] }
  0x3b   :  { %612 = vmatprep.subr.mxu0 %v555_v29  ;;  %4777 = vmatprep.subr.mxu1 %v555_v29  ;;  %v323_v25 = vld [vmem:[#allocation2 + $0x8d8] sm:$0xff]  ;;  %v324_v27 = vld [vmem:[#allocation2 + $0x8e0] sm:$0xff]  ;;  %v325_v29 = vld [vmem:[#allocation2 + $0x8e8] sm:$0xff] }
  0x3c   :  { %613 = vmatpush1.msra.mxu0 %v554_v30  ;;  %4793 = vmatpush1.msra.mxu1 %v554_v30  ;;  %v70_v30 = vld [vmem:[#allocation2 + $0xf0] sm:$0xff] }
  0x3d   :  { %614 = vmatprep.subr.mxu0 %v553_v31  ;;  %4778 = vmatprep.subr.mxu1 %v553_v31  ;;  %v326_v31 = vld [vmem:[#allocation2 + $0x8f0] sm:$0xff] }
  0x3e   :  { %615 = vmatpush1.msra.mxu0 %v552_v32  ;;  %4794 = vmatpush1.msra.mxu1 %v552_v32  ;;  %v71_v32 = vld [vmem:[#allocation2 + $0xf8] sm:$0xff] }
  0x3f   :  { %649 = vmatmul.mubr.f32.vlgmr.msra.gmra.mxu0 %v40_v33  ;;  %2185 = vmatmul.mubr.f32.vlgmr.msra.gmra.mxu1 %v296_v34  ;;  %v327_v33 = vld [vmem:[#allocation2 + $0x8f8] sm:$0xff]  ;;  %v72_v34 = vld [vmem:[#allocation2 + $0x100] sm:$0xff] }
  0x40   :  { %654 = vmatprep.mubr.f32.mxu0 %v4875_v0  ;;  %2190 = vmatprep.mubr.f32.mxu1 %v4875_v0 }
  0x43   :  { %655 = vmatmul.mubr.f32.gmra.mxu0 %v41_v35  ;;  %2191 = vmatmul.mubr.f32.gmra.mxu1 %v297_v36  ;;  %v328_v35 = vld [vmem:[#allocation2 + $0x900] sm:$0xff]  ;;  %v73_v36 = vld [vmem:[#allocation2 + $0x108] sm:$0xff] }
  0x44   :  { %660 = vmatprep.mubr.f32.mxu0 %v4875_v0  ;;  %2196 = vmatprep.mubr.f32.mxu1 %v4875_v0 }
  0x47   :  { %661 = vmatmul.mubr.f32.gmra.mxu0 %v42_v37  ;;  %2197 = vmatmul.mubr.f32.gmra.mxu1 %v298_v38  ;;  %v329_v37 = vld [vmem:[#allocation2 + $0x908] sm:$0xff]  ;;  %v74_v38 = vld [vmem:[#allocation2 + $0x110] sm:$0xff] }
  0x48   :  { %666 = vmatprep.mubr.f32.mxu0 %v4875_v0  ;;  %2202 = vmatprep.mubr.f32.mxu1 %v4875_v0 }
  0x4b   :  { %667 = vmatmul.mubr.f32.gmra.mxu0 %v43_v39  ;;  %2203 = vmatmul.mubr.f32.gmra.mxu1 %v299_v40  ;;  %v330_v39 = vld [vmem:[#allocation2 + $0x910] sm:$0xff]  ;;  %v75_v40 = vld [vmem:[#allocation2 + $0x118] sm:$0xff] }
  0x4c   :  { %672 = vmatprep.mubr.f32.mxu0 %v4875_v0  ;;  %2208 = vmatprep.mubr.f32.mxu1 %v4875_v0 }
  0x4f   :  { %673 = vmatmul.mubr.f32.gmra.mxu0 %v44_v41  ;;  %2209 = vmatmul.mubr.f32.gmra.mxu1 %v300_v42  ;;  %v331_v41 = vld [vmem:[#allocation2 + $0x918] sm:$0xff]  ;;  %v76_v42 = vld [vmem:[#allocation2 + $0x120] sm:$0xff] }
  0x50   :  { %678 = vmatprep.mubr.f32.mxu0 %v4875_v0  ;;  %2214 = vmatprep.mubr.f32.mxu1 %v4875_v0 }
  0x53   :  { %679 = vmatmul.mubr.f32.gmra.mxu0 %v45_v43  ;;  %2215 = vmatmul.mubr.f32.gmra.mxu1 %v301_v44  ;;  %v332_v43 = vld [vmem:[#allocation2 + $0x920] sm:$0xff]  ;;  %v77_v44 = vld [vmem:[#allocation2 + $0x128] sm:$0xff] }
  0x54   :  { %684 = vmatprep.mubr.f32.mxu0 %v4875_v0  ;;  %2220 = vmatprep.mubr.f32.mxu1 %v4875_v0 }
  0x57   :  { %685 = vmatmul.mubr.f32.gmra.mxu0 %v46_v45  ;;  %2221 = vmatmul.mubr.f32.gmra.mxu1 %v302_v46  ;;  %v333_v45 = vld [vmem:[#allocation2 + $0x928] sm:$0xff]  ;;  %v78_v46 = vld [vmem:[#allocation2 + $0x130] sm:$0xff] }
  0x58   :  { %690 = vmatprep.mubr.f32.mxu0 %v4875_v0  ;;  %2226 = vmatprep.mubr.f32.mxu1 %v4875_v0 }
  0x5b   :  { %691 = vmatmul.mubr.f32.gmra.mxu0 %v47_v47  ;;  %2227 = vmatmul.mubr.f32.gmra.mxu1 %v303_v48  ;;  %v334_v47 = vld [vmem:[#allocation2 + $0x930] sm:$0xff]  ;;  %v79_v48 = vld [vmem:[#allocation2 + $0x138] sm:$0xff] }
  0x5c   :  { %696 = vmatprep.mubr.f32.mxu0 %v4875_v0  ;;  %2232 = vmatprep.mubr.f32.mxu1 %v4875_v0 }
  0x5f   :  { %697 = vmatmul.mubr.f32.gmra.mxu0 %v48_v49  ;;  %2233 = vmatmul.mubr.f32.gmra.mxu1 %v304_v50  ;;  %v335_v49 = vld [vmem:[#allocation2 + $0x938] sm:$0xff]  ;;  %v80_v50 = vld [vmem:[#allocation2 + $0x140] sm:$0xff] }
  0x60   :  { %702 = vmatprep.mubr.f32.mxu0 %v4875_v0  ;;  %2238 = vmatprep.mubr.f32.mxu1 %v4875_v0 }
  0x63   :  { %703 = vmatmul.mubr.f32.gmra.mxu0 %v49_v51  ;;  %2239 = vmatmul.mubr.f32.gmra.mxu1 %v305_v52  ;;  %v336_v51 = vld [vmem:[#allocation2 + $0x940] sm:$0xff]  ;;  %v81_v52 = vld [vmem:[#allocation2 + $0x148] sm:$0xff] }
  0x64   :  { %708 = vmatprep.mubr.f32.mxu0 %v4875_v0  ;;  %2244 = vmatprep.mubr.f32.mxu1 %v4875_v0 }
  0x67   :  { %709 = vmatmul.mubr.f32.gmra.mxu0 %v50_v53  ;;  %2245 = vmatmul.mubr.f32.gmra.mxu1 %v306_v54  ;;  %v337_v53 = vld [vmem:[#allocation2 + $0x948] sm:$0xff]  ;;  %v82_v54 = vld [vmem:[#allocation2 + $0x150] sm:$0xff] }
  0x68   :  { %714 = vmatprep.mubr.f32.mxu0 %v4875_v0  ;;  %2250 = vmatprep.mubr.f32.mxu1 %v4875_v0 }
  0x6b   :  { %715 = vmatmul.mubr.f32.gmra.mxu0 %v51_v55  ;;  %2251 = vmatmul.mubr.f32.gmra.mxu1 %v307_v56  ;;  %v338_v55 = vld [vmem:[#allocation2 + $0x950] sm:$0xff]  ;;  %v83_v56 = vld [vmem:[#allocation2 + $0x158] sm:$0xff] }
  0x6c   :  { %720 = vmatprep.mubr.f32.mxu0 %v4875_v0  ;;  %2256 = vmatprep.mubr.f32.mxu1 %v4875_v0 }
  0x6f   :  { %721 = vmatmul.mubr.f32.gmra.mxu0 %v52_v57  ;;  %2257 = vmatmul.mubr.f32.gmra.mxu1 %v308_v58  ;;  %v339_v57 = vld [vmem:[#allocation2 + $0x958] sm:$0xff]  ;;  %v84_v58 = vld [vmem:[#allocation2 + $0x160] sm:$0xff] }
  0x70   :  { %726 = vmatprep.mubr.f32.mxu0 %v4875_v0  ;;  %2262 = vmatprep.mubr.f32.mxu1 %v4875_v0 }
  0x73   :  { %727 = vmatmul.mubr.f32.gmra.mxu0 %v53_v59  ;;  %2263 = vmatmul.mubr.f32.gmra.mxu1 %v309_v60  ;;  %v340_v59 = vld [vmem:[#allocation2 + $0x960] sm:$0xff]  ;;  %v85_v60 = vld [vmem:[#allocation2 + $0x168] sm:$0xff] }
  0x74   :  { %732 = vmatprep.mubr.f32.mxu0 %v4875_v0  ;;  %2268 = vmatprep.mubr.f32.mxu1 %v4875_v0 }
  0x77   :  { %733 = vmatmul.mubr.f32.gmra.mxu0 %v54_v61  ;;  %2269 = vmatmul.mubr.f32.gmra.mxu1 %v310_v62  ;;  %v341_v61 = vld [vmem:[#allocation2 + $0x968] sm:$0xff]  ;;  %v86_v62 = vld [vmem:[#allocation2 + $0x170] sm:$0xff] }
  0x78   :  { %738 = vmatprep.mubr.f32.mxu0 %v4875_v0  ;;  %2274 = vmatprep.mubr.f32.mxu1 %v4875_v0 }
  0x7b   :  { %739 = vmatmul.mubr.f32.gmra.mxu0 %v55_v63  ;;  %2275 = vmatmul.mubr.f32.gmra.mxu1 %v311_v1  ;;  %v342_v63 = vld [vmem:[#allocation2 + $0x970] sm:$0xff]  ;;  %v87_v1 = vld [vmem:[#allocation2 + $0x178] sm:$0xff] }
  0x7c   :  { %744 = vmatprep.mubr.f32.mxu0 %v4875_v0  ;;  %2280 = vmatprep.mubr.f32.mxu1 %v4875_v0 }
  0x7f   :  { %745 = vmatmul.mubr.f32.gmra.mxu0 %v56_v2  ;;  %2281 = vmatmul.mubr.f32.gmra.mxu1 %v312_v3  ;;  %v343_v2 = vld [vmem:[#allocation2 + $0x978] sm:$0xff]  ;;  %v88_v3 = vld [vmem:[#allocation2 + $0x180] sm:$0xff] }
  0x80   :  { %750 = vmatprep.mubr.f32.mxu0 %v4875_v0  ;;  %2286 = vmatprep.mubr.f32.mxu1 %v4875_v0 }
  0x83   :  { %751 = vmatmul.mubr.f32.gmra.mxu0 %v57_v4  ;;  %2287 = vmatmul.mubr.f32.gmra.mxu1 %v313_v5  ;;  %v344_v4 = vld [vmem:[#allocation2 + $0x980] sm:$0xff] }
  0x84   :  { %756 = vmatprep.mubr.f32.mxu0 %v4875_v0  ;;  %2292 = vmatprep.mubr.f32.mxu1 %v4875_v0 }
  0x87   :  { %757 = vmatmul.mubr.f32.gmra.mxu0 %v58_v6  ;;  %2293 = vmatmul.mubr.f32.gmra.mxu1 %v314_v7  ;;  %v89_v7 = vld [vmem:[#allocation2 + $0x188] sm:$0xff] }
  0x88   :  { %762 = vmatprep.mubr.f32.mxu0 %v4875_v0  ;;  %2298 = vmatprep.mubr.f32.mxu1 %v4875_v0 }
  0x8b   :  { %763 = vmatmul.mubr.f32.gmra.mxu0 %v59_v8  ;;  %2299 = vmatmul.mubr.f32.gmra.mxu1 %v315_v9  ;;  %v345_v8 = vld [vmem:[#allocation2 + $0x988] sm:$0xff] }
  0x8c   :  { %768 = vmatprep.mubr.f32.mxu0 %v4875_v0  ;;  %2304 = vmatprep.mubr.f32.mxu1 %v4875_v0 }
  0x8f   :  { %769 = vmatmul.mubr.f32.gmra.mxu0 %v60_v10  ;;  %2305 = vmatmul.mubr.f32.gmra.mxu1 %v316_v11 }
  0x90   :  { %774 = vmatprep.mubr.f32.mxu0 %v4875_v0  ;;  %2310 = vmatprep.mubr.f32.mxu1 %v4875_v0 }
  0x93   :  { %775 = vmatmul.mubr.f32.gmra.mxu0 %v61_v12  ;;  %2311 = vmatmul.mubr.f32.gmra.mxu1 %v317_v13  ;;  %v90_v13 = vld [vmem:[#allocation2 + $0x190] sm:$0xff] }
  0x94   :  { %780 = vmatprep.mubr.f32.mxu0 %v4875_v0  ;;  %2316 = vmatprep.mubr.f32.mxu1 %v4875_v0 }
  0x97   :  { %781 = vmatmul.mubr.f32.gmra.mxu0 %v62_v14  ;;  %2317 = vmatmul.mubr.f32.gmra.mxu1 %v318_v15  ;;  %v346_v14 = vld [vmem:[#allocation2 + $0x990] sm:$0xff] }
  0x98   :  { %786 = vmatprep.mubr.f32.mxu0 %v4875_v0  ;;  %2322 = vmatprep.mubr.f32.mxu1 %v4875_v0 }
  0x9b   :  { %787 = vmatmul.mubr.f32.gmra.mxu0 %v63_v16  ;;  %2323 = vmatmul.mubr.f32.gmra.mxu1 %v319_v17 }
  0x9c   :  { %792 = vmatprep.mubr.f32.mxu0 %v4875_v0  ;;  %2328 = vmatprep.mubr.f32.mxu1 %v4875_v0 }
  0x9f   :  { %793 = vmatmul.mubr.f32.gmra.mxu0 %v64_v18  ;;  %2329 = vmatmul.mubr.f32.gmra.mxu1 %v320_v19  ;;  %v91_v19 = vld [vmem:[#allocation2 + $0x198] sm:$0xff] }
  0xa0   :  { %798 = vmatprep.mubr.f32.mxu0 %v4875_v0  ;;  %2334 = vmatprep.mubr.f32.mxu1 %v4875_v0 }
  0xa3   :  { %799 = vmatmul.mubr.f32.gmra.mxu0 %v65_v20  ;;  %2335 = vmatmul.mubr.f32.gmra.mxu1 %v321_v21  ;;  %v347_v20 = vld [vmem:[#allocation2 + $0x998] sm:$0xff] }
  0xa4   :  { %804 = vmatprep.mubr.f32.mxu0 %v4875_v0  ;;  %2340 = vmatprep.mubr.f32.mxu1 %v4875_v0 }
  0xa7   :  { %805 = vmatmul.mubr.f32.gmra.mxu0 %v66_v22  ;;  %2341 = vmatmul.mubr.f32.gmra.mxu1 %v322_v23 }
  0xa8   :  { %810 = vmatprep.mubr.f32.mxu0 %v4875_v0  ;;  %2346 = vmatprep.mubr.f32.mxu1 %v4875_v0 }
  0xab   :  { %811 = vmatmul.mubr.f32.gmra.mxu0 %v67_v24  ;;  %2347 = vmatmul.mubr.f32.gmra.mxu1 %v323_v25  ;;  %v92_v25 = vld [vmem:[#allocation2 + $0x1a0] sm:$0xff] }
  0xac   :  { %816 = vmatprep.mubr.f32.mxu0 %v4875_v0  ;;  %2352 = vmatprep.mubr.f32.mxu1 %v4875_v0 }
  0xaf   :  { %817 = vmatmul.mubr.f32.gmra.mxu0 %v68_v26  ;;  %2353 = vmatmul.mubr.f32.gmra.mxu1 %v324_v27  ;;  %v348_v26 = vld [vmem:[#allocation2 + $0x9a0] sm:$0xff] }
  0xb0   :  { %822 = vmatprep.mubr.f32.mxu0 %v4875_v0  ;;  %2358 = vmatprep.mubr.f32.mxu1 %v4875_v0 }
  0xb3   :  { %823 = vmatmul.mubr.f32.gmra.mxu0 %v69_v28  ;;  %2359 = vmatmul.mubr.f32.gmra.mxu1 %v325_v29 }
  0xb4   :  { %828 = vmatprep.mubr.f32.mxu0 %v4875_v0  ;;  %2364 = vmatprep.mubr.f32.mxu1 %v4875_v0 }
  0xb7   :  { %829 = vmatmul.mubr.f32.gmra.mxu0 %v70_v30  ;;  %2365 = vmatmul.mubr.f32.gmra.mxu1 %v326_v31  ;;  %v93_v31 = vld [vmem:[#allocation2 + $0x1a8] sm:$0xff] }
  0xb8   :  { %834 = vmatprep.mubr.f32.mxu0 %v4875_v0  ;;  %2370 = vmatprep.mubr.f32.mxu1 %v4875_v0 }
  0xbb   :  { %835 = vmatmul.mubr.f32.gmra.mxu0 %v71_v32  ;;  %2371 = vmatmul.mubr.f32.gmra.mxu1 %v327_v33  ;;  %v349_v32 = vld [vmem:[#allocation2 + $0x9a8] sm:$0xff] }
  0xbc   :  { %840 = vmatprep.mubr.f32.mxu0 %v4875_v0  ;;  %2376 = vmatprep.mubr.f32.mxu1 %v4875_v0 }
  0xbf   :  { %841 = vmatmul.mubr.f32.gmra.mxu0 %v72_v34  ;;  %2377 = vmatmul.mubr.f32.gmra.mxu1 %v328_v35 }
  0xc0   :  { %846 = vmatprep.mubr.f32.mxu0 %v4875_v0  ;;  %2382 = vmatprep.mubr.f32.mxu1 %v4875_v0 }
  0xc3   :  { %847 = vmatmul.mubr.f32.gmra.mxu0 %v73_v36  ;;  %2383 = vmatmul.mubr.f32.gmra.mxu1 %v329_v37  ;;  %v94_v37 = vld [vmem:[#allocation2 + $0x1b0] sm:$0xff] }
  0xc4   :  { %852 = vmatprep.mubr.f32.mxu0 %v4875_v0  ;;  %2388 = vmatprep.mubr.f32.mxu1 %v4875_v0 }
  0xc7   :  { %853 = vmatmul.mubr.f32.gmra.mxu0 %v74_v38  ;;  %2389 = vmatmul.mubr.f32.gmra.mxu1 %v330_v39  ;;  %v350_v38 = vld [vmem:[#allocation2 + $0x9b0] sm:$0xff] }
  0xc8   :  { %858 = vmatprep.mubr.f32.mxu0 %v4875_v0  ;;  %2394 = vmatprep.mubr.f32.mxu1 %v4875_v0 }
  0xcb   :  { %859 = vmatmul.mubr.f32.gmra.mxu0 %v75_v40  ;;  %2395 = vmatmul.mubr.f32.gmra.mxu1 %v331_v41 }
  0xcc   :  { %864 = vmatprep.mubr.f32.mxu0 %v4875_v0  ;;  %2400 = vmatprep.mubr.f32.mxu1 %v4875_v0 }
  0xcf   :  { %865 = vmatmul.mubr.f32.gmra.mxu0 %v76_v42  ;;  %2401 = vmatmul.mubr.f32.gmra.mxu1 %v332_v43  ;;  %v95_v43 = vld [vmem:[#allocation2 + $0x1b8] sm:$0xff] }
  0xd0   :  { %870 = vmatprep.mubr.f32.mxu0 %v4875_v0  ;;  %2406 = vmatprep.mubr.f32.mxu1 %v4875_v0 }
  0xd3   :  { %871 = vmatmul.mubr.f32.gmra.mxu0 %v77_v44  ;;  %2407 = vmatmul.mubr.f32.gmra.mxu1 %v333_v45  ;;  %v351_v44 = vld [vmem:[#allocation2 + $0x9b8] sm:$0xff] }
  0xd4   :  { %876 = vmatprep.mubr.f32.mxu0 %v4875_v0  ;;  %2412 = vmatprep.mubr.f32.mxu1 %v4875_v0 }
  0xd7   :  { %877 = vmatmul.mubr.f32.gmra.mxu0 %v78_v46  ;;  %2413 = vmatmul.mubr.f32.gmra.mxu1 %v334_v47 }
  0xd8   :  { %882 = vmatprep.mubr.f32.mxu0 %v4875_v0  ;;  %2418 = vmatprep.mubr.f32.mxu1 %v4875_v0 }
  0xdb   :  { %883 = vmatmul.mubr.f32.gmra.mxu0 %v79_v48  ;;  %2419 = vmatmul.mubr.f32.gmra.mxu1 %v335_v49  ;;  %v96_v49 = vld [vmem:[#allocation2 + $0x1c0] sm:$0xff] }
  0xdc   :  { %888 = vmatprep.mubr.f32.mxu0 %v4875_v0  ;;  %2424 = vmatprep.mubr.f32.mxu1 %v4875_v0 }
  0xdf   :  { %889 = vmatmul.mubr.f32.gmra.mxu0 %v80_v50  ;;  %2425 = vmatmul.mubr.f32.gmra.mxu1 %v336_v51  ;;  %v352_v50 = vld [vmem:[#allocation2 + $0x9c0] sm:$0xff] }
  0xe0   :  { %894 = vmatprep.mubr.f32.mxu0 %v4875_v0  ;;  %2430 = vmatprep.mubr.f32.mxu1 %v4875_v0 }
  0xe3   :  { %895 = vmatmul.mubr.f32.gmra.mxu0 %v81_v52  ;;  %2431 = vmatmul.mubr.f32.gmra.mxu1 %v337_v53 }
  0xe4   :  { %900 = vmatprep.mubr.f32.mxu0 %v4875_v0  ;;  %2436 = vmatprep.mubr.f32.mxu1 %v4875_v0 }
  0xe7   :  { %901 = vmatmul.mubr.f32.gmra.mxu0 %v82_v54  ;;  %2437 = vmatmul.mubr.f32.gmra.mxu1 %v338_v55  ;;  %v97_v55 = vld [vmem:[#allocation2 + $0x1c8] sm:$0xff] }
  0xe8   :  { %906 = vmatprep.mubr.f32.mxu0 %v4875_v0  ;;  %2442 = vmatprep.mubr.f32.mxu1 %v4875_v0 }
  0xeb   :  { %907 = vmatmul.mubr.f32.gmra.mxu0 %v83_v56  ;;  %2443 = vmatmul.mubr.f32.gmra.mxu1 %v339_v57  ;;  %v353_v56 = vld [vmem:[#allocation2 + $0x9c8] sm:$0xff] }
  0xec   :  { %912 = vmatprep.mubr.f32.mxu0 %v4875_v0  ;;  %2448 = vmatprep.mubr.f32.mxu1 %v4875_v0 }
  0xef   :  { %913 = vmatmul.mubr.f32.gmra.mxu0 %v84_v58  ;;  %2449 = vmatmul.mubr.f32.gmra.mxu1 %v340_v59 }
  0xf0   :  { %918 = vmatprep.mubr.f32.mxu0 %v4875_v0  ;;  %2454 = vmatprep.mubr.f32.mxu1 %v4875_v0 }
  0xf3   :  { %919 = vmatmul.mubr.f32.gmra.mxu0 %v85_v60  ;;  %2455 = vmatmul.mubr.f32.gmra.mxu1 %v341_v61  ;;  %v98_v61 = vld [vmem:[#allocation2 + $0x1d0] sm:$0xff] }
  0xf4   :  { %924 = vmatprep.mubr.f32.mxu0 %v4875_v0  ;;  %2460 = vmatprep.mubr.f32.mxu1 %v4875_v0 }
  0xf7   :  { %925 = vmatmul.mubr.f32.gmra.mxu0 %v86_v62  ;;  %2461 = vmatmul.mubr.f32.gmra.mxu1 %v342_v63  ;;  %v354_v62 = vld [vmem:[#allocation2 + $0x9d0] sm:$0xff] }
  0xf8   :  { %930 = vmatprep.mubr.f32.mxu0 %v4875_v0  ;;  %2466 = vmatprep.mubr.f32.mxu1 %v4875_v0 }
  0xfb   :  { %931 = vmatmul.mubr.f32.gmra.mxu0 %v87_v1  ;;  %2467 = vmatmul.mubr.f32.gmra.mxu1 %v343_v2 }
  0xfc   :  { %936 = vmatprep.mubr.f32.mxu0 %v4875_v0  ;;  %2472 = vmatprep.mubr.f32.mxu1 %v4875_v0 }
  0xff   :  { %v650_v5 = vpop.f32.mrf.mxu0  ;;  %937 = vmatmul.mubr.f32.gmra.mxu0 %v88_v3  ;;  %v2186_v6 = vpop.f32.mrf.mxu1  ;;  %2473 = vmatmul.mubr.f32.gmra.mxu1 %v344_v4  ;;  %v99_v4 = vld [vmem:[#allocation2 + $0x1d8] sm:$0xff] }
 0x100   :  { %3721 = vst [vmem:[#allocation7] sm:$0xff] %v650_v5  ;;  %4233 = vst [vmem:[#allocation7 + $0x1000] sm:$0xff] %v2186_v6  ;;  %942 = vmatprep.mubr.f32.mxu0 %v4875_v0  ;;  %2478 = vmatprep.mubr.f32.mxu1 %v4875_v0  ;;  %v355_v5 = vld [vmem:[#allocation2 + $0x9d8] sm:$0xff] }
 0x101   :  { %v652_v9 = vpop.f32.mrf.mxu0  ;;  %v2188_v10 = vpop.f32.mrf.mxu1 }
 0x102   :  { %3722 = vst [vmem:[#allocation7 + $0x8] sm:$0xff] %v652_v9  ;;  %4234 = vst [vmem:[#allocation7 + $0x1008] sm:$0xff] %v2188_v10  ;;  %v100_v10 = vld [vmem:[#allocation2 + $0x1e0] sm:$0xff] }
 0x103   :  { %v656_v11 = vpop.f32.mrf.mxu0  ;;  %943 = vmatmul.mubr.f32.gmra.mxu0 %v89_v7  ;;  %v2192_v12 = vpop.f32.mrf.mxu1  ;;  %2479 = vmatmul.mubr.f32.gmra.mxu1 %v345_v8 }
 0x104   :  { %3723 = vst [vmem:[#allocation7 + $0x10] sm:$0xff] %v656_v11  ;;  %4235 = vst [vmem:[#allocation7 + $0x1010] sm:$0xff] %v2192_v12  ;;  %948 = vmatprep.mubr.f32.mxu0 %v4875_v0  ;;  %2484 = vmatprep.mubr.f32.mxu1 %v4875_v0  ;;  %v356_v11 = vld [vmem:[#allocation2 + $0x9e0] sm:$0xff] }
 0x105   :  { %v658_v15 = vpop.f32.mrf.mxu0  ;;  %v2194_v16 = vpop.f32.mrf.mxu1 }
 0x106   :  { %3724 = vst [vmem:[#allocation7 + $0x18] sm:$0xff] %v658_v15  ;;  %4236 = vst [vmem:[#allocation7 + $0x1018] sm:$0xff] %v2194_v16  ;;  %v101_v16 = vld [vmem:[#allocation2 + $0x1e8] sm:$0xff] }
 0x107   :  { %v662_v17 = vpop.f32.mrf.mxu0  ;;  %949 = vmatmul.mubr.f32.gmra.mxu0 %v90_v13  ;;  %v2198_v18 = vpop.f32.mrf.mxu1  ;;  %2485 = vmatmul.mubr.f32.gmra.mxu1 %v346_v14 }
 0x108   :  { %3725 = vst [vmem:[#allocation7 + $0x20] sm:$0xff] %v662_v17  ;;  %4237 = vst [vmem:[#allocation7 + $0x1020] sm:$0xff] %v2198_v18  ;;  %954 = vmatprep.mubr.f32.mxu0 %v4875_v0  ;;  %2490 = vmatprep.mubr.f32.mxu1 %v4875_v0  ;;  %v357_v17 = vld [vmem:[#allocation2 + $0x9e8] sm:$0xff] }
 0x109   :  { %v664_v21 = vpop.f32.mrf.mxu0  ;;  %v2200_v22 = vpop.f32.mrf.mxu1 }
 0x10a   :  { %3726 = vst [vmem:[#allocation7 + $0x28] sm:$0xff] %v664_v21  ;;  %4238 = vst [vmem:[#allocation7 + $0x1028] sm:$0xff] %v2200_v22  ;;  %v102_v22 = vld [vmem:[#allocation2 + $0x1f0] sm:$0xff] }
 0x10b   :  { %v668_v23 = vpop.f32.mrf.mxu0  ;;  %955 = vmatmul.mubr.f32.gmra.mxu0 %v91_v19  ;;  %v2204_v24 = vpop.f32.mrf.mxu1  ;;  %2491 = vmatmul.mubr.f32.gmra.mxu1 %v347_v20 }
 0x10c   :  { %3727 = vst [vmem:[#allocation7 + $0x30] sm:$0xff] %v668_v23  ;;  %4239 = vst [vmem:[#allocation7 + $0x1030] sm:$0xff] %v2204_v24  ;;  %960 = vmatprep.mubr.f32.mxu0 %v4875_v0  ;;  %2496 = vmatprep.mubr.f32.mxu1 %v4875_v0  ;;  %v358_v23 = vld [vmem:[#allocation2 + $0x9f0] sm:$0xff] }
 0x10d   :  { %v670_v27 = vpop.f32.mrf.mxu0  ;;  %v2206_v28 = vpop.f32.mrf.mxu1 }
 0x10e   :  { %3728 = vst [vmem:[#allocation7 + $0x38] sm:$0xff] %v670_v27  ;;  %4240 = vst [vmem:[#allocation7 + $0x1038] sm:$0xff] %v2206_v28  ;;  %v103_v28 = vld [vmem:[#allocation2 + $0x1f8] sm:$0xff] }
 0x10f   :  { %v674_v29 = vpop.f32.mrf.mxu0  ;;  %961 = vmatmul.mubr.f32.gmra.mxu0 %v92_v25  ;;  %v2210_v30 = vpop.f32.mrf.mxu1  ;;  %2497 = vmatmul.mubr.f32.gmra.mxu1 %v348_v26 }
 0x110   :  { %3729 = vst [vmem:[#allocation7 + $0x40] sm:$0xff] %v674_v29  ;;  %4241 = vst [vmem:[#allocation7 + $0x1040] sm:$0xff] %v2210_v30  ;;  %966 = vmatprep.mubr.f32.mxu0 %v4875_v0  ;;  %2502 = vmatprep.mubr.f32.mxu1 %v4875_v0  ;;  %v359_v29 = vld [vmem:[#allocation2 + $0x9f8] sm:$0xff] }
 0x111   :  { %v676_v33 = vpop.f32.mrf.mxu0  ;;  %v2212_v34 = vpop.f32.mrf.mxu1 }
 0x112   :  { %3730 = vst [vmem:[#allocation7 + $0x48] sm:$0xff] %v676_v33  ;;  %4242 = vst [vmem:[#allocation7 + $0x1048] sm:$0xff] %v2212_v34  ;;  %v104_v34 = vld [vmem:[#allocation2 + $0x200] sm:$0xff] }
 0x113   :  { %v680_v35 = vpop.f32.mrf.mxu0  ;;  %967 = vmatmul.mubr.f32.gmra.mxu0 %v93_v31  ;;  %v2216_v36 = vpop.f32.mrf.mxu1  ;;  %2503 = vmatmul.mubr.f32.gmra.mxu1 %v349_v32 }
 0x114   :  { %3731 = vst [vmem:[#allocation7 + $0x50] sm:$0xff] %v680_v35  ;;  %4243 = vst [vmem:[#allocation7 + $0x1050] sm:$0xff] %v2216_v36  ;;  %972 = vmatprep.mubr.f32.mxu0 %v4875_v0  ;;  %2508 = vmatprep.mubr.f32.mxu1 %v4875_v0  ;;  %v360_v35 = vld [vmem:[#allocation2 + $0xa00] sm:$0xff] }
 0x115   :  { %v682_v39 = vpop.f32.mrf.mxu0  ;;  %v2218_v40 = vpop.f32.mrf.mxu1 }
 0x116   :  { %3732 = vst [vmem:[#allocation7 + $0x58] sm:$0xff] %v682_v39  ;;  %4244 = vst [vmem:[#allocation7 + $0x1058] sm:$0xff] %v2218_v40  ;;  %v105_v40 = vld [vmem:[#allocation2 + $0x208] sm:$0xff] }
 0x117   :  { %v686_v41 = vpop.f32.mrf.mxu0  ;;  %973 = vmatmul.mubr.f32.gmra.mxu0 %v94_v37  ;;  %v2222_v42 = vpop.f32.mrf.mxu1  ;;  %2509 = vmatmul.mubr.f32.gmra.mxu1 %v350_v38 }
 0x118   :  { %3733 = vst [vmem:[#allocation7 + $0x60] sm:$0xff] %v686_v41  ;;  %4245 = vst [vmem:[#allocation7 + $0x1060] sm:$0xff] %v2222_v42  ;;  %978 = vmatprep.mubr.f32.mxu0 %v4875_v0  ;;  %2514 = vmatprep.mubr.f32.mxu1 %v4875_v0  ;;  %v361_v41 = vld [vmem:[#allocation2 + $0xa08] sm:$0xff] }
 0x119   :  { %v688_v45 = vpop.f32.mrf.mxu0  ;;  %v2224_v46 = vpop.f32.mrf.mxu1 }
 0x11a   :  { %3734 = vst [vmem:[#allocation7 + $0x68] sm:$0xff] %v688_v45  ;;  %4246 = vst [vmem:[#allocation7 + $0x1068] sm:$0xff] %v2224_v46  ;;  %v106_v46 = vld [vmem:[#allocation2 + $0x210] sm:$0xff] }
 0x11b   :  { %v692_v47 = vpop.f32.mrf.mxu0  ;;  %979 = vmatmul.mubr.f32.gmra.mxu0 %v95_v43  ;;  %v2228_v48 = vpop.f32.mrf.mxu1  ;;  %2515 = vmatmul.mubr.f32.gmra.mxu1 %v351_v44 }
 0x11c   :  { %3735 = vst [vmem:[#allocation7 + $0x70] sm:$0xff] %v692_v47  ;;  %4247 = vst [vmem:[#allocation7 + $0x1070] sm:$0xff] %v2228_v48  ;;  %984 = vmatprep.mubr.f32.mxu0 %v4875_v0  ;;  %2520 = vmatprep.mubr.f32.mxu1 %v4875_v0  ;;  %v362_v47 = vld [vmem:[#allocation2 + $0xa10] sm:$0xff] }
 0x11d   :  { %v694_v51 = vpop.f32.mrf.mxu0  ;;  %v2230_v52 = vpop.f32.mrf.mxu1 }
 0x11e   :  { %3736 = vst [vmem:[#allocation7 + $0x78] sm:$0xff] %v694_v51  ;;  %4248 = vst [vmem:[#allocation7 + $0x1078] sm:$0xff] %v2230_v52  ;;  %v107_v52 = vld [vmem:[#allocation2 + $0x218] sm:$0xff] }
 0x11f   :  { %v698_v53 = vpop.f32.mrf.mxu0  ;;  %985 = vmatmul.mubr.f32.gmra.mxu0 %v96_v49  ;;  %v2234_v54 = vpop.f32.mrf.mxu1  ;;  %2521 = vmatmul.mubr.f32.gmra.mxu1 %v352_v50 }
 0x120   :  { %3737 = vst [vmem:[#allocation7 + $0x80] sm:$0xff] %v698_v53  ;;  %4249 = vst [vmem:[#allocation7 + $0x1080] sm:$0xff] %v2234_v54  ;;  %990 = vmatprep.mubr.f32.mxu0 %v4875_v0  ;;  %2526 = vmatprep.mubr.f32.mxu1 %v4875_v0  ;;  %v363_v53 = vld [vmem:[#allocation2 + $0xa18] sm:$0xff] }
 0x121   :  { %v700_v57 = vpop.f32.mrf.mxu0  ;;  %v2236_v58 = vpop.f32.mrf.mxu1 }
 0x122   :  { %3738 = vst [vmem:[#allocation7 + $0x88] sm:$0xff] %v700_v57  ;;  %4250 = vst [vmem:[#allocation7 + $0x1088] sm:$0xff] %v2236_v58  ;;  %v108_v58 = vld [vmem:[#allocation2 + $0x220] sm:$0xff] }
 0x123   :  { %v704_v59 = vpop.f32.mrf.mxu0  ;;  %991 = vmatmul.mubr.f32.gmra.mxu0 %v97_v55  ;;  %v2240_v60 = vpop.f32.mrf.mxu1  ;;  %2527 = vmatmul.mubr.f32.gmra.mxu1 %v353_v56 }
 0x124   :  { %3739 = vst [vmem:[#allocation7 + $0x90] sm:$0xff] %v704_v59  ;;  %4251 = vst [vmem:[#allocation7 + $0x1090] sm:$0xff] %v2240_v60  ;;  %996 = vmatprep.mubr.f32.mxu0 %v4875_v0  ;;  %2532 = vmatprep.mubr.f32.mxu1 %v4875_v0  ;;  %v364_v59 = vld [vmem:[#allocation2 + $0xa20] sm:$0xff] }
 0x125   :  { %v706_v63 = vpop.f32.mrf.mxu0  ;;  %v2242_v1 = vpop.f32.mrf.mxu1 }
 0x126   :  { %3740 = vst [vmem:[#allocation7 + $0x98] sm:$0xff] %v706_v63  ;;  %4252 = vst [vmem:[#allocation7 + $0x1098] sm:$0xff] %v2242_v1  ;;  %v109_v1 = vld [vmem:[#allocation2 + $0x228] sm:$0xff] }
 0x127   :  { %v710_v2 = vpop.f32.mrf.mxu0  ;;  %997 = vmatmul.mubr.f32.gmra.mxu0 %v98_v61  ;;  %v2246_v3 = vpop.f32.mrf.mxu1  ;;  %2533 = vmatmul.mubr.f32.gmra.mxu1 %v354_v62 }
 0x128   :  { %3741 = vst [vmem:[#allocation7 + $0xa0] sm:$0xff] %v710_v2  ;;  %4253 = vst [vmem:[#allocation7 + $0x10a0] sm:$0xff] %v2246_v3  ;;  %1002 = vmatprep.mubr.f32.mxu0 %v4875_v0  ;;  %2538 = vmatprep.mubr.f32.mxu1 %v4875_v0  ;;  %v365_v2 = vld [vmem:[#allocation2 + $0xa28] sm:$0xff] }
 0x129   :  { %v712_v6 = vpop.f32.mrf.mxu0  ;;  %v2248_v7 = vpop.f32.mrf.mxu1 }
 0x12a   :  { %3742 = vst [vmem:[#allocation7 + $0xa8] sm:$0xff] %v712_v6  ;;  %4254 = vst [vmem:[#allocation7 + $0x10a8] sm:$0xff] %v2248_v7  ;;  %v110_v7 = vld [vmem:[#allocation2 + $0x230] sm:$0xff] }
 0x12b   :  { %v716_v8 = vpop.f32.mrf.mxu0  ;;  %1003 = vmatmul.mubr.f32.gmra.mxu0 %v99_v4  ;;  %v2252_v9 = vpop.f32.mrf.mxu1  ;;  %2539 = vmatmul.mubr.f32.gmra.mxu1 %v355_v5 }
 0x12c   :  { %3743 = vst [vmem:[#allocation7 + $0xb0] sm:$0xff] %v716_v8  ;;  %4255 = vst [vmem:[#allocation7 + $0x10b0] sm:$0xff] %v2252_v9  ;;  %1008 = vmatprep.mubr.f32.mxu0 %v4875_v0  ;;  %2544 = vmatprep.mubr.f32.mxu1 %v4875_v0  ;;  %v366_v8 = vld [vmem:[#allocation2 + $0xa30] sm:$0xff] }
 0x12d   :  { %v718_v12 = vpop.f32.mrf.mxu0  ;;  %v2254_v13 = vpop.f32.mrf.mxu1 }
 0x12e   :  { %3744 = vst [vmem:[#allocation7 + $0xb8] sm:$0xff] %v718_v12  ;;  %4256 = vst [vmem:[#allocation7 + $0x10b8] sm:$0xff] %v2254_v13  ;;  %v111_v13 = vld [vmem:[#allocation2 + $0x238] sm:$0xff] }
 0x12f   :  { %v722_v14 = vpop.f32.mrf.mxu0  ;;  %1009 = vmatmul.mubr.f32.gmra.mxu0 %v100_v10  ;;  %v2258_v15 = vpop.f32.mrf.mxu1  ;;  %2545 = vmatmul.mubr.f32.gmra.mxu1 %v356_v11 }
 0x130   :  { %3745 = vst [vmem:[#allocation7 + $0xc0] sm:$0xff] %v722_v14  ;;  %4257 = vst [vmem:[#allocation7 + $0x10c0] sm:$0xff] %v2258_v15  ;;  %1014 = vmatprep.mubr.f32.mxu0 %v4875_v0  ;;  %2550 = vmatprep.mubr.f32.mxu1 %v4875_v0  ;;  %v367_v14 = vld [vmem:[#allocation2 + $0xa38] sm:$0xff] }
 0x131   :  { %v724_v18 = vpop.f32.mrf.mxu0  ;;  %v2260_v19 = vpop.f32.mrf.mxu1 }
 0x132   :  { %3746 = vst [vmem:[#allocation7 + $0xc8] sm:$0xff] %v724_v18  ;;  %4258 = vst [vmem:[#allocation7 + $0x10c8] sm:$0xff] %v2260_v19  ;;  %v112_v19 = vld [vmem:[#allocation2 + $0x240] sm:$0xff] }
 0x133   :  { %v728_v20 = vpop.f32.mrf.mxu0  ;;  %1015 = vmatmul.mubr.f32.gmra.mxu0 %v101_v16  ;;  %v2264_v21 = vpop.f32.mrf.mxu1  ;;  %2551 = vmatmul.mubr.f32.gmra.mxu1 %v357_v17 }
 0x134   :  { %3747 = vst [vmem:[#allocation7 + $0xd0] sm:$0xff] %v728_v20  ;;  %4259 = vst [vmem:[#allocation7 + $0x10d0] sm:$0xff] %v2264_v21  ;;  %1020 = vmatprep.mubr.f32.mxu0 %v4875_v0  ;;  %2556 = vmatprep.mubr.f32.mxu1 %v4875_v0  ;;  %v368_v20 = vld [vmem:[#allocation2 + $0xa40] sm:$0xff] }
 0x135   :  { %v730_v24 = vpop.f32.mrf.mxu0  ;;  %v2266_v25 = vpop.f32.mrf.mxu1 }
 0x136   :  { %3748 = vst [vmem:[#allocation7 + $0xd8] sm:$0xff] %v730_v24  ;;  %4260 = vst [vmem:[#allocation7 + $0x10d8] sm:$0xff] %v2266_v25  ;;  %v113_v25 = vld [vmem:[#allocation2 + $0x248] sm:$0xff] }
 0x137   :  { %v734_v26 = vpop.f32.mrf.mxu0  ;;  %1021 = vmatmul.mubr.f32.gmra.mxu0 %v102_v22  ;;  %v2270_v27 = vpop.f32.mrf.mxu1  ;;  %2557 = vmatmul.mubr.f32.gmra.mxu1 %v358_v23 }
 0x138   :  { %3749 = vst [vmem:[#allocation7 + $0xe0] sm:$0xff] %v734_v26  ;;  %4261 = vst [vmem:[#allocation7 + $0x10e0] sm:$0xff] %v2270_v27  ;;  %1026 = vmatprep.mubr.f32.mxu0 %v4875_v0  ;;  %2562 = vmatprep.mubr.f32.mxu1 %v4875_v0  ;;  %v369_v26 = vld [vmem:[#allocation2 + $0xa48] sm:$0xff] }
 0x139   :  { %v736_v30 = vpop.f32.mrf.mxu0  ;;  %v2272_v31 = vpop.f32.mrf.mxu1 }
 0x13a   :  { %3750 = vst [vmem:[#allocation7 + $0xe8] sm:$0xff] %v736_v30  ;;  %4262 = vst [vmem:[#allocation7 + $0x10e8] sm:$0xff] %v2272_v31  ;;  %v114_v31 = vld [vmem:[#allocation2 + $0x250] sm:$0xff] }
 0x13b   :  { %v740_v32 = vpop.f32.mrf.mxu0  ;;  %1027 = vmatmul.mubr.f32.gmra.mxu0 %v103_v28  ;;  %v2276_v33 = vpop.f32.mrf.mxu1  ;;  %2563 = vmatmul.mubr.f32.gmra.mxu1 %v359_v29 }
 0x13c   :  { %3751 = vst [vmem:[#allocation7 + $0xf0] sm:$0xff] %v740_v32  ;;  %4263 = vst [vmem:[#allocation7 + $0x10f0] sm:$0xff] %v2276_v33  ;;  %1032 = vmatprep.mubr.f32.mxu0 %v4875_v0  ;;  %2568 = vmatprep.mubr.f32.mxu1 %v4875_v0  ;;  %v370_v32 = vld [vmem:[#allocation2 + $0xa50] sm:$0xff] }
 0x13d   :  { %v742_v36 = vpop.f32.mrf.mxu0  ;;  %v2278_v37 = vpop.f32.mrf.mxu1 }
 0x13e   :  { %3752 = vst [vmem:[#allocation7 + $0xf8] sm:$0xff] %v742_v36  ;;  %4264 = vst [vmem:[#allocation7 + $0x10f8] sm:$0xff] %v2278_v37  ;;  %v115_v37 = vld [vmem:[#allocation2 + $0x258] sm:$0xff] }
 0x13f   :  { %v746_v38 = vpop.f32.mrf.mxu0  ;;  %1033 = vmatmul.mubr.f32.gmra.mxu0 %v104_v34  ;;  %v2282_v39 = vpop.f32.mrf.mxu1  ;;  %2569 = vmatmul.mubr.f32.gmra.mxu1 %v360_v35 }
 0x140   :  { %3753 = vst [vmem:[#allocation7 + $0x100] sm:$0xff] %v746_v38  ;;  %4265 = vst [vmem:[#allocation7 + $0x1100] sm:$0xff] %v2282_v39  ;;  %1038 = vmatprep.mubr.f32.mxu0 %v4875_v0  ;;  %2574 = vmatprep.mubr.f32.mxu1 %v4875_v0  ;;  %v371_v38 = vld [vmem:[#allocation2 + $0xa58] sm:$0xff] }
 0x141   :  { %v748_v42 = vpop.f32.mrf.mxu0  ;;  %v2284_v43 = vpop.f32.mrf.mxu1 }
 0x142   :  { %3754 = vst [vmem:[#allocation7 + $0x108] sm:$0xff] %v748_v42  ;;  %4266 = vst [vmem:[#allocation7 + $0x1108] sm:$0xff] %v2284_v43  ;;  %v116_v43 = vld [vmem:[#allocation2 + $0x260] sm:$0xff] }
 0x143   :  { %v752_v44 = vpop.f32.mrf.mxu0  ;;  %1039 = vmatmul.mubr.f32.gmra.mxu0 %v105_v40  ;;  %v2288_v45 = vpop.f32.mrf.mxu1  ;;  %2575 = vmatmul.mubr.f32.gmra.mxu1 %v361_v41 }
 0x144   :  { %3755 = vst [vmem:[#allocation7 + $0x110] sm:$0xff] %v752_v44  ;;  %4267 = vst [vmem:[#allocation7 + $0x1110] sm:$0xff] %v2288_v45  ;;  %1044 = vmatprep.mubr.f32.mxu0 %v4875_v0  ;;  %2580 = vmatprep.mubr.f32.mxu1 %v4875_v0  ;;  %v372_v44 = vld [vmem:[#allocation2 + $0xa60] sm:$0xff] }
 0x145   :  { %v754_v48 = vpop.f32.mrf.mxu0  ;;  %v2290_v49 = vpop.f32.mrf.mxu1 }
 0x146   :  { %3756 = vst [vmem:[#allocation7 + $0x118] sm:$0xff] %v754_v48  ;;  %4268 = vst [vmem:[#allocation7 + $0x1118] sm:$0xff] %v2290_v49  ;;  %v117_v49 = vld [vmem:[#allocation2 + $0x268] sm:$0xff] }
 0x147   :  { %v758_v50 = vpop.f32.mrf.mxu0  ;;  %1045 = vmatmul.mubr.f32.gmra.mxu0 %v106_v46  ;;  %v2294_v51 = vpop.f32.mrf.mxu1  ;;  %2581 = vmatmul.mubr.f32.gmra.mxu1 %v362_v47 }
 0x148   :  { %3757 = vst [vmem:[#allocation7 + $0x120] sm:$0xff] %v758_v50  ;;  %4269 = vst [vmem:[#allocation7 + $0x1120] sm:$0xff] %v2294_v51  ;;  %1050 = vmatprep.mubr.f32.mxu0 %v4875_v0  ;;  %2586 = vmatprep.mubr.f32.mxu1 %v4875_v0  ;;  %v373_v50 = vld [vmem:[#allocation2 + $0xa68] sm:$0xff] }
 0x149   :  { %v760_v54 = vpop.f32.mrf.mxu0  ;;  %v2296_v55 = vpop.f32.mrf.mxu1 }
 0x14a   :  { %3758 = vst [vmem:[#allocation7 + $0x128] sm:$0xff] %v760_v54  ;;  %4270 = vst [vmem:[#allocation7 + $0x1128] sm:$0xff] %v2296_v55  ;;  %v118_v55 = vld [vmem:[#allocation2 + $0x270] sm:$0xff] }
 0x14b   :  { %v764_v56 = vpop.f32.mrf.mxu0  ;;  %1051 = vmatmul.mubr.f32.gmra.mxu0 %v107_v52  ;;  %v2300_v57 = vpop.f32.mrf.mxu1  ;;  %2587 = vmatmul.mubr.f32.gmra.mxu1 %v363_v53 }
 0x14c   :  { %3759 = vst [vmem:[#allocation7 + $0x130] sm:$0xff] %v764_v56  ;;  %4271 = vst [vmem:[#allocation7 + $0x1130] sm:$0xff] %v2300_v57  ;;  %1056 = vmatprep.mubr.f32.mxu0 %v4875_v0  ;;  %2592 = vmatprep.mubr.f32.mxu1 %v4875_v0  ;;  %v374_v56 = vld [vmem:[#allocation2 + $0xa70] sm:$0xff] }
 0x14d   :  { %v766_v60 = vpop.f32.mrf.mxu0  ;;  %v2302_v61 = vpop.f32.mrf.mxu1 }
 0x14e   :  { %3760 = vst [vmem:[#allocation7 + $0x138] sm:$0xff] %v766_v60  ;;  %4272 = vst [vmem:[#allocation7 + $0x1138] sm:$0xff] %v2302_v61  ;;  %v119_v61 = vld [vmem:[#allocation2 + $0x278] sm:$0xff] }
 0x14f   :  { %v770_v62 = vpop.f32.mrf.mxu0  ;;  %1057 = vmatmul.mubr.f32.gmra.mxu0 %v108_v58  ;;  %v2306_v63 = vpop.f32.mrf.mxu1  ;;  %2593 = vmatmul.mubr.f32.gmra.mxu1 %v364_v59 }
 0x150   :  { %3761 = vst [vmem:[#allocation7 + $0x140] sm:$0xff] %v770_v62  ;;  %4273 = vst [vmem:[#allocation7 + $0x1140] sm:$0xff] %v2306_v63  ;;  %1062 = vmatprep.mubr.f32.mxu0 %v4875_v0  ;;  %2598 = vmatprep.mubr.f32.mxu1 %v4875_v0  ;;  %v375_v62 = vld [vmem:[#allocation2 + $0xa78] sm:$0xff] }
 0x151   :  { %v772_v3 = vpop.f32.mrf.mxu0  ;;  %v2308_v4 = vpop.f32.mrf.mxu1 }
 0x152   :  { %3762 = vst [vmem:[#allocation7 + $0x148] sm:$0xff] %v772_v3  ;;  %4274 = vst [vmem:[#allocation7 + $0x1148] sm:$0xff] %v2308_v4  ;;  %v120_v4 = vld [vmem:[#allocation2 + $0x280] sm:$0xff] }
 0x153   :  { %v776_v5 = vpop.f32.mrf.mxu0  ;;  %1063 = vmatmul.mubr.f32.gmra.mxu0 %v109_v1  ;;  %v2312_v6 = vpop.f32.mrf.mxu1  ;;  %2599 = vmatmul.mubr.f32.gmra.mxu1 %v365_v2 }
 0x154   :  { %3763 = vst [vmem:[#allocation7 + $0x150] sm:$0xff] %v776_v5  ;;  %4275 = vst [vmem:[#allocation7 + $0x1150] sm:$0xff] %v2312_v6  ;;  %1068 = vmatprep.mubr.f32.mxu0 %v4875_v0  ;;  %2604 = vmatprep.mubr.f32.mxu1 %v4875_v0  ;;  %v376_v5 = vld [vmem:[#allocation2 + $0xa80] sm:$0xff] }
 0x155   :  { %v778_v9 = vpop.f32.mrf.mxu0  ;;  %v2314_v10 = vpop.f32.mrf.mxu1 }
 0x156   :  { %3764 = vst [vmem:[#allocation7 + $0x158] sm:$0xff] %v778_v9  ;;  %4276 = vst [vmem:[#allocation7 + $0x1158] sm:$0xff] %v2314_v10  ;;  %v121_v10 = vld [vmem:[#allocation2 + $0x288] sm:$0xff] }
 0x157   :  { %v782_v11 = vpop.f32.mrf.mxu0  ;;  %1069 = vmatmul.mubr.f32.gmra.mxu0 %v110_v7  ;;  %v2318_v12 = vpop.f32.mrf.mxu1  ;;  %2605 = vmatmul.mubr.f32.gmra.mxu1 %v366_v8 }
 0x158   :  { %3765 = vst [vmem:[#allocation7 + $0x160] sm:$0xff] %v782_v11  ;;  %4277 = vst [vmem:[#allocation7 + $0x1160] sm:$0xff] %v2318_v12  ;;  %1074 = vmatprep.mubr.f32.mxu0 %v4875_v0  ;;  %2610 = vmatprep.mubr.f32.mxu1 %v4875_v0  ;;  %v377_v11 = vld [vmem:[#allocation2 + $0xa88] sm:$0xff] }
 0x159   :  { %v784_v15 = vpop.f32.mrf.mxu0  ;;  %v2320_v16 = vpop.f32.mrf.mxu1 }
 0x15a   :  { %3766 = vst [vmem:[#allocation7 + $0x168] sm:$0xff] %v784_v15  ;;  %4278 = vst [vmem:[#allocation7 + $0x1168] sm:$0xff] %v2320_v16  ;;  %v122_v16 = vld [vmem:[#allocation2 + $0x290] sm:$0xff] }
 0x15b   :  { %v788_v17 = vpop.f32.mrf.mxu0  ;;  %1075 = vmatmul.mubr.f32.gmra.mxu0 %v111_v13  ;;  %v2324_v18 = vpop.f32.mrf.mxu1  ;;  %2611 = vmatmul.mubr.f32.gmra.mxu1 %v367_v14 }
 0x15c   :  { %3767 = vst [vmem:[#allocation7 + $0x170] sm:$0xff] %v788_v17  ;;  %4279 = vst [vmem:[#allocation7 + $0x1170] sm:$0xff] %v2324_v18  ;;  %1080 = vmatprep.mubr.f32.mxu0 %v4875_v0  ;;  %2616 = vmatprep.mubr.f32.mxu1 %v4875_v0  ;;  %v378_v17 = vld [vmem:[#allocation2 + $0xa90] sm:$0xff] }
 0x15d   :  { %v790_v21 = vpop.f32.mrf.mxu0  ;;  %v2326_v22 = vpop.f32.mrf.mxu1 }
 0x15e   :  { %3768 = vst [vmem:[#allocation7 + $0x178] sm:$0xff] %v790_v21  ;;  %4280 = vst [vmem:[#allocation7 + $0x1178] sm:$0xff] %v2326_v22  ;;  %v123_v22 = vld [vmem:[#allocation2 + $0x298] sm:$0xff] }
 0x15f   :  { %v794_v23 = vpop.f32.mrf.mxu0  ;;  %1081 = vmatmul.mubr.f32.gmra.mxu0 %v112_v19  ;;  %v2330_v24 = vpop.f32.mrf.mxu1  ;;  %2617 = vmatmul.mubr.f32.gmra.mxu1 %v368_v20 }
 0x160   :  { %3769 = vst [vmem:[#allocation7 + $0x180] sm:$0xff] %v794_v23  ;;  %4281 = vst [vmem:[#allocation7 + $0x1180] sm:$0xff] %v2330_v24  ;;  %1086 = vmatprep.mubr.f32.mxu0 %v4875_v0  ;;  %2622 = vmatprep.mubr.f32.mxu1 %v4875_v0  ;;  %v379_v23 = vld [vmem:[#allocation2 + $0xa98] sm:$0xff] }
 0x161   :  { %v796_v27 = vpop.f32.mrf.mxu0  ;;  %v2332_v28 = vpop.f32.mrf.mxu1 }
 0x162   :  { %3770 = vst [vmem:[#allocation7 + $0x188] sm:$0xff] %v796_v27  ;;  %4282 = vst [vmem:[#allocation7 + $0x1188] sm:$0xff] %v2332_v28  ;;  %v124_v28 = vld [vmem:[#allocation2 + $0x2a0] sm:$0xff] }
 0x163   :  { %v800_v29 = vpop.f32.mrf.mxu0  ;;  %1087 = vmatmul.mubr.f32.gmra.mxu0 %v113_v25  ;;  %v2336_v30 = vpop.f32.mrf.mxu1  ;;  %2623 = vmatmul.mubr.f32.gmra.mxu1 %v369_v26 }
 0x164   :  { %3771 = vst [vmem:[#allocation7 + $0x190] sm:$0xff] %v800_v29  ;;  %4283 = vst [vmem:[#allocation7 + $0x1190] sm:$0xff] %v2336_v30  ;;  %1092 = vmatprep.mubr.f32.mxu0 %v4875_v0  ;;  %2628 = vmatprep.mubr.f32.mxu1 %v4875_v0  ;;  %v380_v29 = vld [vmem:[#allocation2 + $0xaa0] sm:$0xff] }
 0x165   :  { %v802_v33 = vpop.f32.mrf.mxu0  ;;  %v2338_v34 = vpop.f32.mrf.mxu1 }
 0x166   :  { %3772 = vst [vmem:[#allocation7 + $0x198] sm:$0xff] %v802_v33  ;;  %4284 = vst [vmem:[#allocation7 + $0x1198] sm:$0xff] %v2338_v34  ;;  %v125_v34 = vld [vmem:[#allocation2 + $0x2a8] sm:$0xff] }
 0x167   :  { %v806_v35 = vpop.f32.mrf.mxu0  ;;  %1093 = vmatmul.mubr.f32.gmra.mxu0 %v114_v31  ;;  %v2342_v36 = vpop.f32.mrf.mxu1  ;;  %2629 = vmatmul.mubr.f32.gmra.mxu1 %v370_v32 }
 0x168   :  { %3773 = vst [vmem:[#allocation7 + $0x1a0] sm:$0xff] %v806_v35  ;;  %4285 = vst [vmem:[#allocation7 + $0x11a0] sm:$0xff] %v2342_v36  ;;  %1098 = vmatprep.mubr.f32.mxu0 %v4875_v0  ;;  %2634 = vmatprep.mubr.f32.mxu1 %v4875_v0  ;;  %v381_v35 = vld [vmem:[#allocation2 + $0xaa8] sm:$0xff] }
 0x169   :  { %v808_v39 = vpop.f32.mrf.mxu0  ;;  %v2344_v40 = vpop.f32.mrf.mxu1 }
 0x16a   :  { %3774 = vst [vmem:[#allocation7 + $0x1a8] sm:$0xff] %v808_v39  ;;  %4286 = vst [vmem:[#allocation7 + $0x11a8] sm:$0xff] %v2344_v40  ;;  %v126_v40 = vld [vmem:[#allocation2 + $0x2b0] sm:$0xff] }
 0x16b   :  { %v812_v41 = vpop.f32.mrf.mxu0  ;;  %1099 = vmatmul.mubr.f32.gmra.mxu0 %v115_v37  ;;  %v2348_v42 = vpop.f32.mrf.mxu1  ;;  %2635 = vmatmul.mubr.f32.gmra.mxu1 %v371_v38 }
 0x16c   :  { %3775 = vst [vmem:[#allocation7 + $0x1b0] sm:$0xff] %v812_v41  ;;  %4287 = vst [vmem:[#allocation7 + $0x11b0] sm:$0xff] %v2348_v42  ;;  %1104 = vmatprep.mubr.f32.mxu0 %v4875_v0  ;;  %2640 = vmatprep.mubr.f32.mxu1 %v4875_v0  ;;  %v382_v41 = vld [vmem:[#allocation2 + $0xab0] sm:$0xff] }
 0x16d   :  { %v814_v45 = vpop.f32.mrf.mxu0  ;;  %v2350_v46 = vpop.f32.mrf.mxu1 }
 0x16e   :  { %3776 = vst [vmem:[#allocation7 + $0x1b8] sm:$0xff] %v814_v45  ;;  %4288 = vst [vmem:[#allocation7 + $0x11b8] sm:$0xff] %v2350_v46  ;;  %v127_v46 = vld [vmem:[#allocation2 + $0x2b8] sm:$0xff] }
 0x16f   :  { %v818_v47 = vpop.f32.mrf.mxu0  ;;  %1105 = vmatmul.mubr.f32.gmra.mxu0 %v116_v43  ;;  %v2354_v48 = vpop.f32.mrf.mxu1  ;;  %2641 = vmatmul.mubr.f32.gmra.mxu1 %v372_v44 }
 0x170   :  { %3777 = vst [vmem:[#allocation7 + $0x1c0] sm:$0xff] %v818_v47  ;;  %4289 = vst [vmem:[#allocation7 + $0x11c0] sm:$0xff] %v2354_v48  ;;  %1110 = vmatprep.mubr.f32.mxu0 %v4875_v0  ;;  %2646 = vmatprep.mubr.f32.mxu1 %v4875_v0  ;;  %v383_v47 = vld [vmem:[#allocation2 + $0xab8] sm:$0xff] }
 0x171   :  { %v820_v51 = vpop.f32.mrf.mxu0  ;;  %v2356_v52 = vpop.f32.mrf.mxu1 }
 0x172   :  { %3778 = vst [vmem:[#allocation7 + $0x1c8] sm:$0xff] %v820_v51  ;;  %4290 = vst [vmem:[#allocation7 + $0x11c8] sm:$0xff] %v2356_v52  ;;  %v128_v52 = vld [vmem:[#allocation2 + $0x2c0] sm:$0xff] }
 0x173   :  { %v824_v53 = vpop.f32.mrf.mxu0  ;;  %1111 = vmatmul.mubr.f32.gmra.mxu0 %v117_v49  ;;  %v2360_v54 = vpop.f32.mrf.mxu1  ;;  %2647 = vmatmul.mubr.f32.gmra.mxu1 %v373_v50 }
 0x174   :  { %3779 = vst [vmem:[#allocation7 + $0x1d0] sm:$0xff] %v824_v53  ;;  %4291 = vst [vmem:[#allocation7 + $0x11d0] sm:$0xff] %v2360_v54  ;;  %1116 = vmatprep.mubr.f32.mxu0 %v4875_v0  ;;  %2652 = vmatprep.mubr.f32.mxu1 %v4875_v0  ;;  %v384_v53 = vld [vmem:[#allocation2 + $0xac0] sm:$0xff] }
 0x175   :  { %v826_v57 = vpop.f32.mrf.mxu0  ;;  %v2362_v58 = vpop.f32.mrf.mxu1 }
 0x176   :  { %3780 = vst [vmem:[#allocation7 + $0x1d8] sm:$0xff] %v826_v57  ;;  %4292 = vst [vmem:[#allocation7 + $0x11d8] sm:$0xff] %v2362_v58  ;;  %v129_v58 = vld [vmem:[#allocation2 + $0x2c8] sm:$0xff] }
 0x177   :  { %v830_v59 = vpop.f32.mrf.mxu0  ;;  %1117 = vmatmul.mubr.f32.gmra.mxu0 %v118_v55  ;;  %v2366_v60 = vpop.f32.mrf.mxu1  ;;  %2653 = vmatmul.mubr.f32.gmra.mxu1 %v374_v56 }
 0x178   :  { %3781 = vst [vmem:[#allocation7 + $0x1e0] sm:$0xff] %v830_v59  ;;  %4293 = vst [vmem:[#allocation7 + $0x11e0] sm:$0xff] %v2366_v60  ;;  %1122 = vmatprep.mubr.f32.mxu0 %v4875_v0  ;;  %2658 = vmatprep.mubr.f32.mxu1 %v4875_v0  ;;  %v385_v59 = vld [vmem:[#allocation2 + $0xac8] sm:$0xff] }
 0x179   :  { %v832_v63 = vpop.f32.mrf.mxu0  ;;  %v2368_v1 = vpop.f32.mrf.mxu1 }
 0x17a   :  { %3782 = vst [vmem:[#allocation7 + $0x1e8] sm:$0xff] %v832_v63  ;;  %4294 = vst [vmem:[#allocation7 + $0x11e8] sm:$0xff] %v2368_v1  ;;  %v130_v1 = vld [vmem:[#allocation2 + $0x2d0] sm:$0xff] }
 0x17b   :  { %v836_v2 = vpop.f32.mrf.mxu0  ;;  %1123 = vmatmul.mubr.f32.gmra.mxu0 %v119_v61  ;;  %v2372_v3 = vpop.f32.mrf.mxu1  ;;  %2659 = vmatmul.mubr.f32.gmra.mxu1 %v375_v62 }
 0x17c   :  { %3783 = vst [vmem:[#allocation7 + $0x1f0] sm:$0xff] %v836_v2  ;;  %4295 = vst [vmem:[#allocation7 + $0x11f0] sm:$0xff] %v2372_v3  ;;  %1128 = vmatprep.mubr.f32.mxu0 %v4875_v0  ;;  %2664 = vmatprep.mubr.f32.mxu1 %v4875_v0  ;;  %v386_v2 = vld [vmem:[#allocation2 + $0xad0] sm:$0xff] }
 0x17d   :  { %v838_v6 = vpop.f32.mrf.mxu0  ;;  %v2374_v7 = vpop.f32.mrf.mxu1 }
 0x17e   :  { %3784 = vst [vmem:[#allocation7 + $0x1f8] sm:$0xff] %v838_v6  ;;  %4296 = vst [vmem:[#allocation7 + $0x11f8] sm:$0xff] %v2374_v7  ;;  %v131_v7 = vld [vmem:[#allocation2 + $0x2d8] sm:$0xff] }
 0x17f   :  { %v842_v8 = vpop.f32.mrf.mxu0  ;;  %1129 = vmatmul.mubr.f32.gmra.mxu0 %v120_v4  ;;  %v2378_v9 = vpop.f32.mrf.mxu1  ;;  %2665 = vmatmul.mubr.f32.gmra.mxu1 %v376_v5 }
 0x180   :  { %3785 = vst [vmem:[#allocation7 + $0x200] sm:$0xff] %v842_v8  ;;  %4297 = vst [vmem:[#allocation7 + $0x1200] sm:$0xff] %v2378_v9  ;;  %1134 = vmatprep.mubr.f32.mxu0 %v4875_v0  ;;  %2670 = vmatprep.mubr.f32.mxu1 %v4875_v0  ;;  %v387_v8 = vld [vmem:[#allocation2 + $0xad8] sm:$0xff] }
 0x181   :  { %v844_v12 = vpop.f32.mrf.mxu0  ;;  %v2380_v13 = vpop.f32.mrf.mxu1 }
 0x182   :  { %3786 = vst [vmem:[#allocation7 + $0x208] sm:$0xff] %v844_v12  ;;  %4298 = vst [vmem:[#allocation7 + $0x1208] sm:$0xff] %v2380_v13  ;;  %v132_v13 = vld [vmem:[#allocation2 + $0x2e0] sm:$0xff] }
 0x183   :  { %v848_v14 = vpop.f32.mrf.mxu0  ;;  %1135 = vmatmul.mubr.f32.gmra.mxu0 %v121_v10  ;;  %v2384_v15 = vpop.f32.mrf.mxu1  ;;  %2671 = vmatmul.mubr.f32.gmra.mxu1 %v377_v11 }
 0x184   :  { %3787 = vst [vmem:[#allocation7 + $0x210] sm:$0xff] %v848_v14  ;;  %4299 = vst [vmem:[#allocation7 + $0x1210] sm:$0xff] %v2384_v15  ;;  %1140 = vmatprep.mubr.f32.mxu0 %v4875_v0  ;;  %2676 = vmatprep.mubr.f32.mxu1 %v4875_v0  ;;  %v388_v14 = vld [vmem:[#allocation2 + $0xae0] sm:$0xff] }
 0x185   :  { %v850_v18 = vpop.f32.mrf.mxu0  ;;  %v2386_v19 = vpop.f32.mrf.mxu1 }
 0x186   :  { %3788 = vst [vmem:[#allocation7 + $0x218] sm:$0xff] %v850_v18  ;;  %4300 = vst [vmem:[#allocation7 + $0x1218] sm:$0xff] %v2386_v19  ;;  %v133_v19 = vld [vmem:[#allocation2 + $0x2e8] sm:$0xff] }
 0x187   :  { %v854_v20 = vpop.f32.mrf.mxu0  ;;  %1141 = vmatmul.mubr.f32.gmra.mxu0 %v122_v16  ;;  %v2390_v21 = vpop.f32.mrf.mxu1  ;;  %2677 = vmatmul.mubr.f32.gmra.mxu1 %v378_v17 }
 0x188   :  { %3789 = vst [vmem:[#allocation7 + $0x220] sm:$0xff] %v854_v20  ;;  %4301 = vst [vmem:[#allocation7 + $0x1220] sm:$0xff] %v2390_v21  ;;  %1146 = vmatprep.mubr.f32.mxu0 %v4875_v0  ;;  %2682 = vmatprep.mubr.f32.mxu1 %v4875_v0  ;;  %v389_v20 = vld [vmem:[#allocation2 + $0xae8] sm:$0xff] }
 0x189   :  { %v856_v24 = vpop.f32.mrf.mxu0  ;;  %v2392_v25 = vpop.f32.mrf.mxu1 }
 0x18a   :  { %3790 = vst [vmem:[#allocation7 + $0x228] sm:$0xff] %v856_v24  ;;  %4302 = vst [vmem:[#allocation7 + $0x1228] sm:$0xff] %v2392_v25  ;;  %v134_v25 = vld [vmem:[#allocation2 + $0x2f0] sm:$0xff] }
 0x18b   :  { %v860_v26 = vpop.f32.mrf.mxu0  ;;  %1147 = vmatmul.mubr.f32.gmra.mxu0 %v123_v22  ;;  %v2396_v27 = vpop.f32.mrf.mxu1  ;;  %2683 = vmatmul.mubr.f32.gmra.mxu1 %v379_v23 }
 0x18c   :  { %3791 = vst [vmem:[#allocation7 + $0x230] sm:$0xff] %v860_v26  ;;  %4303 = vst [vmem:[#allocation7 + $0x1230] sm:$0xff] %v2396_v27  ;;  %1152 = vmatprep.mubr.f32.mxu0 %v4875_v0  ;;  %2688 = vmatprep.mubr.f32.mxu1 %v4875_v0  ;;  %v390_v26 = vld [vmem:[#allocation2 + $0xaf0] sm:$0xff] }
 0x18d   :  { %v862_v30 = vpop.f32.mrf.mxu0  ;;  %v2398_v31 = vpop.f32.mrf.mxu1 }
 0x18e   :  { %3792 = vst [vmem:[#allocation7 + $0x238] sm:$0xff] %v862_v30  ;;  %4304 = vst [vmem:[#allocation7 + $0x1238] sm:$0xff] %v2398_v31  ;;  %v135_v31 = vld [vmem:[#allocation2 + $0x2f8] sm:$0xff] }
 0x18f   :  { %v866_v32 = vpop.f32.mrf.mxu0  ;;  %1153 = vmatmul.mubr.f32.gmra.mxu0 %v124_v28  ;;  %v2402_v33 = vpop.f32.mrf.mxu1  ;;  %2689 = vmatmul.mubr.f32.gmra.mxu1 %v380_v29 }
 0x190   :  { %3793 = vst [vmem:[#allocation7 + $0x240] sm:$0xff] %v866_v32  ;;  %4305 = vst [vmem:[#allocation7 + $0x1240] sm:$0xff] %v2402_v33  ;;  %1158 = vmatprep.mubr.f32.mxu0 %v4875_v0  ;;  %2694 = vmatprep.mubr.f32.mxu1 %v4875_v0  ;;  %v391_v32 = vld [vmem:[#allocation2 + $0xaf8] sm:$0xff] }
 0x191   :  { %v868_v36 = vpop.f32.mrf.mxu0  ;;  %v2404_v37 = vpop.f32.mrf.mxu1 }
 0x192   :  { %3794 = vst [vmem:[#allocation7 + $0x248] sm:$0xff] %v868_v36  ;;  %4306 = vst [vmem:[#allocation7 + $0x1248] sm:$0xff] %v2404_v37  ;;  %v136_v37 = vld [vmem:[#allocation2 + $0x300] sm:$0xff] }
 0x193   :  { %v872_v38 = vpop.f32.mrf.mxu0  ;;  %1159 = vmatmul.mubr.f32.gmra.mxu0 %v125_v34  ;;  %v2408_v39 = vpop.f32.mrf.mxu1  ;;  %2695 = vmatmul.mubr.f32.gmra.mxu1 %v381_v35 }
 0x194   :  { %3795 = vst [vmem:[#allocation7 + $0x250] sm:$0xff] %v872_v38  ;;  %4307 = vst [vmem:[#allocation7 + $0x1250] sm:$0xff] %v2408_v39  ;;  %1164 = vmatprep.mubr.f32.mxu0 %v4875_v0  ;;  %2700 = vmatprep.mubr.f32.mxu1 %v4875_v0  ;;  %v392_v38 = vld [vmem:[#allocation2 + $0xb00] sm:$0xff] }
 0x195   :  { %v874_v42 = vpop.f32.mrf.mxu0  ;;  %v2410_v43 = vpop.f32.mrf.mxu1 }
 0x196   :  { %3796 = vst [vmem:[#allocation7 + $0x258] sm:$0xff] %v874_v42  ;;  %4308 = vst [vmem:[#allocation7 + $0x1258] sm:$0xff] %v2410_v43  ;;  %v137_v43 = vld [vmem:[#allocation2 + $0x308] sm:$0xff] }
 0x197   :  { %v878_v44 = vpop.f32.mrf.mxu0  ;;  %1165 = vmatmul.mubr.f32.gmra.mxu0 %v126_v40  ;;  %v2414_v45 = vpop.f32.mrf.mxu1  ;;  %2701 = vmatmul.mubr.f32.gmra.mxu1 %v382_v41 }
 0x198   :  { %3797 = vst [vmem:[#allocation7 + $0x260] sm:$0xff] %v878_v44  ;;  %4309 = vst [vmem:[#allocation7 + $0x1260] sm:$0xff] %v2414_v45  ;;  %1170 = vmatprep.mubr.f32.mxu0 %v4875_v0  ;;  %2706 = vmatprep.mubr.f32.mxu1 %v4875_v0  ;;  %v393_v44 = vld [vmem:[#allocation2 + $0xb08] sm:$0xff] }
 0x199   :  { %v880_v48 = vpop.f32.mrf.mxu0  ;;  %v2416_v49 = vpop.f32.mrf.mxu1 }
 0x19a   :  { %3798 = vst [vmem:[#allocation7 + $0x268] sm:$0xff] %v880_v48  ;;  %4310 = vst [vmem:[#allocation7 + $0x1268] sm:$0xff] %v2416_v49  ;;  %v138_v49 = vld [vmem:[#allocation2 + $0x310] sm:$0xff] }
 0x19b   :  { %v884_v50 = vpop.f32.mrf.mxu0  ;;  %1171 = vmatmul.mubr.f32.gmra.mxu0 %v127_v46  ;;  %v2420_v51 = vpop.f32.mrf.mxu1  ;;  %2707 = vmatmul.mubr.f32.gmra.mxu1 %v383_v47 }
 0x19c   :  { %3799 = vst [vmem:[#allocation7 + $0x270] sm:$0xff] %v884_v50  ;;  %4311 = vst [vmem:[#allocation7 + $0x1270] sm:$0xff] %v2420_v51  ;;  %1176 = vmatprep.mubr.f32.mxu0 %v4875_v0  ;;  %2712 = vmatprep.mubr.f32.mxu1 %v4875_v0  ;;  %v394_v50 = vld [vmem:[#allocation2 + $0xb10] sm:$0xff] }
 0x19d   :  { %v886_v54 = vpop.f32.mrf.mxu0  ;;  %v2422_v55 = vpop.f32.mrf.mxu1 }
 0x19e   :  { %3800 = vst [vmem:[#allocation7 + $0x278] sm:$0xff] %v886_v54  ;;  %4312 = vst [vmem:[#allocation7 + $0x1278] sm:$0xff] %v2422_v55  ;;  %v139_v55 = vld [vmem:[#allocation2 + $0x318] sm:$0xff] }
 0x19f   :  { %v890_v56 = vpop.f32.mrf.mxu0  ;;  %1177 = vmatmul.mubr.f32.gmra.mxu0 %v128_v52  ;;  %v2426_v57 = vpop.f32.mrf.mxu1  ;;  %2713 = vmatmul.mubr.f32.gmra.mxu1 %v384_v53 }
 0x1a0   :  { %3801 = vst [vmem:[#allocation7 + $0x280] sm:$0xff] %v890_v56  ;;  %4313 = vst [vmem:[#allocation7 + $0x1280] sm:$0xff] %v2426_v57  ;;  %1182 = vmatprep.mubr.f32.mxu0 %v4875_v0  ;;  %2718 = vmatprep.mubr.f32.mxu1 %v4875_v0  ;;  %v395_v56 = vld [vmem:[#allocation2 + $0xb18] sm:$0xff] }
 0x1a1   :  { %v892_v60 = vpop.f32.mrf.mxu0  ;;  %v2428_v61 = vpop.f32.mrf.mxu1 }
 0x1a2   :  { %3802 = vst [vmem:[#allocation7 + $0x288] sm:$0xff] %v892_v60  ;;  %4314 = vst [vmem:[#allocation7 + $0x1288] sm:$0xff] %v2428_v61  ;;  %v140_v61 = vld [vmem:[#allocation2 + $0x320] sm:$0xff] }
 0x1a3   :  { %v896_v62 = vpop.f32.mrf.mxu0  ;;  %1183 = vmatmul.mubr.f32.gmra.mxu0 %v129_v58  ;;  %v2432_v63 = vpop.f32.mrf.mxu1  ;;  %2719 = vmatmul.mubr.f32.gmra.mxu1 %v385_v59 }
 0x1a4   :  { %3803 = vst [vmem:[#allocation7 + $0x290] sm:$0xff] %v896_v62  ;;  %4315 = vst [vmem:[#allocation7 + $0x1290] sm:$0xff] %v2432_v63  ;;  %1188 = vmatprep.mubr.f32.mxu0 %v4875_v0  ;;  %2724 = vmatprep.mubr.f32.mxu1 %v4875_v0  ;;  %v396_v62 = vld [vmem:[#allocation2 + $0xb20] sm:$0xff] }
 0x1a5   :  { %v898_v3 = vpop.f32.mrf.mxu0  ;;  %v2434_v4 = vpop.f32.mrf.mxu1 }
 0x1a6   :  { %3804 = vst [vmem:[#allocation7 + $0x298] sm:$0xff] %v898_v3  ;;  %4316 = vst [vmem:[#allocation7 + $0x1298] sm:$0xff] %v2434_v4  ;;  %v141_v4 = vld [vmem:[#allocation2 + $0x328] sm:$0xff] }
 0x1a7   :  { %v902_v5 = vpop.f32.mrf.mxu0  ;;  %1189 = vmatmul.mubr.f32.gmra.mxu0 %v130_v1  ;;  %v2438_v6 = vpop.f32.mrf.mxu1  ;;  %2725 = vmatmul.mubr.f32.gmra.mxu1 %v386_v2 }
 0x1a8   :  { %3805 = vst [vmem:[#allocation7 + $0x2a0] sm:$0xff] %v902_v5  ;;  %4317 = vst [vmem:[#allocation7 + $0x12a0] sm:$0xff] %v2438_v6  ;;  %1194 = vmatprep.mubr.f32.mxu0 %v4875_v0  ;;  %2730 = vmatprep.mubr.f32.mxu1 %v4875_v0  ;;  %v397_v5 = vld [vmem:[#allocation2 + $0xb28] sm:$0xff] }
 0x1a9   :  { %v904_v9 = vpop.f32.mrf.mxu0  ;;  %v2440_v10 = vpop.f32.mrf.mxu1 }
 0x1aa   :  { %3806 = vst [vmem:[#allocation7 + $0x2a8] sm:$0xff] %v904_v9  ;;  %4318 = vst [vmem:[#allocation7 + $0x12a8] sm:$0xff] %v2440_v10  ;;  %v142_v10 = vld [vmem:[#allocation2 + $0x330] sm:$0xff] }
 0x1ab   :  { %v908_v11 = vpop.f32.mrf.mxu0  ;;  %1195 = vmatmul.mubr.f32.gmra.mxu0 %v131_v7  ;;  %v2444_v12 = vpop.f32.mrf.mxu1  ;;  %2731 = vmatmul.mubr.f32.gmra.mxu1 %v387_v8 }
 0x1ac   :  { %3807 = vst [vmem:[#allocation7 + $0x2b0] sm:$0xff] %v908_v11  ;;  %4319 = vst [vmem:[#allocation7 + $0x12b0] sm:$0xff] %v2444_v12  ;;  %1200 = vmatprep.mubr.f32.mxu0 %v4875_v0  ;;  %2736 = vmatprep.mubr.f32.mxu1 %v4875_v0  ;;  %v398_v11 = vld [vmem:[#allocation2 + $0xb30] sm:$0xff] }
 0x1ad   :  { %v910_v15 = vpop.f32.mrf.mxu0  ;;  %v2446_v16 = vpop.f32.mrf.mxu1 }
 0x1ae   :  { %3808 = vst [vmem:[#allocation7 + $0x2b8] sm:$0xff] %v910_v15  ;;  %4320 = vst [vmem:[#allocation7 + $0x12b8] sm:$0xff] %v2446_v16  ;;  %v143_v16 = vld [vmem:[#allocation2 + $0x338] sm:$0xff] }
 0x1af   :  { %v914_v17 = vpop.f32.mrf.mxu0  ;;  %1201 = vmatmul.mubr.f32.gmra.mxu0 %v132_v13  ;;  %v2450_v18 = vpop.f32.mrf.mxu1  ;;  %2737 = vmatmul.mubr.f32.gmra.mxu1 %v388_v14 }
 0x1b0   :  { %3809 = vst [vmem:[#allocation7 + $0x2c0] sm:$0xff] %v914_v17  ;;  %4321 = vst [vmem:[#allocation7 + $0x12c0] sm:$0xff] %v2450_v18  ;;  %1206 = vmatprep.mubr.f32.mxu0 %v4875_v0  ;;  %2742 = vmatprep.mubr.f32.mxu1 %v4875_v0  ;;  %v399_v17 = vld [vmem:[#allocation2 + $0xb38] sm:$0xff] }
 0x1b1   :  { %v916_v21 = vpop.f32.mrf.mxu0  ;;  %v2452_v22 = vpop.f32.mrf.mxu1 }
 0x1b2   :  { %3810 = vst [vmem:[#allocation7 + $0x2c8] sm:$0xff] %v916_v21  ;;  %4322 = vst [vmem:[#allocation7 + $0x12c8] sm:$0xff] %v2452_v22  ;;  %v144_v22 = vld [vmem:[#allocation2 + $0x340] sm:$0xff] }
 0x1b3   :  { %v920_v23 = vpop.f32.mrf.mxu0  ;;  %1207 = vmatmul.mubr.f32.gmra.mxu0 %v133_v19  ;;  %v2456_v24 = vpop.f32.mrf.mxu1  ;;  %2743 = vmatmul.mubr.f32.gmra.mxu1 %v389_v20 }
 0x1b4   :  { %3811 = vst [vmem:[#allocation7 + $0x2d0] sm:$0xff] %v920_v23  ;;  %4323 = vst [vmem:[#allocation7 + $0x12d0] sm:$0xff] %v2456_v24  ;;  %1212 = vmatprep.mubr.f32.mxu0 %v4875_v0  ;;  %2748 = vmatprep.mubr.f32.mxu1 %v4875_v0  ;;  %v400_v23 = vld [vmem:[#allocation2 + $0xb40] sm:$0xff] }
 0x1b5   :  { %v922_v27 = vpop.f32.mrf.mxu0  ;;  %v2458_v28 = vpop.f32.mrf.mxu1 }
 0x1b6   :  { %3812 = vst [vmem:[#allocation7 + $0x2d8] sm:$0xff] %v922_v27  ;;  %4324 = vst [vmem:[#allocation7 + $0x12d8] sm:$0xff] %v2458_v28  ;;  %v145_v28 = vld [vmem:[#allocation2 + $0x348] sm:$0xff] }
 0x1b7   :  { %v926_v29 = vpop.f32.mrf.mxu0  ;;  %1213 = vmatmul.mubr.f32.gmra.mxu0 %v134_v25  ;;  %v2462_v30 = vpop.f32.mrf.mxu1  ;;  %2749 = vmatmul.mubr.f32.gmra.mxu1 %v390_v26 }
 0x1b8   :  { %3813 = vst [vmem:[#allocation7 + $0x2e0] sm:$0xff] %v926_v29  ;;  %4325 = vst [vmem:[#allocation7 + $0x12e0] sm:$0xff] %v2462_v30  ;;  %1218 = vmatprep.mubr.f32.mxu0 %v4875_v0  ;;  %2754 = vmatprep.mubr.f32.mxu1 %v4875_v0  ;;  %v401_v29 = vld [vmem:[#allocation2 + $0xb48] sm:$0xff] }
 0x1b9   :  { %v928_v33 = vpop.f32.mrf.mxu0  ;;  %v2464_v34 = vpop.f32.mrf.mxu1 }
 0x1ba   :  { %3814 = vst [vmem:[#allocation7 + $0x2e8] sm:$0xff] %v928_v33  ;;  %4326 = vst [vmem:[#allocation7 + $0x12e8] sm:$0xff] %v2464_v34  ;;  %v146_v34 = vld [vmem:[#allocation2 + $0x350] sm:$0xff] }
 0x1bb   :  { %v932_v35 = vpop.f32.mrf.mxu0  ;;  %1219 = vmatmul.mubr.f32.gmra.mxu0 %v135_v31  ;;  %v2468_v36 = vpop.f32.mrf.mxu1  ;;  %2755 = vmatmul.mubr.f32.gmra.mxu1 %v391_v32 }
 0x1bc   :  { %3815 = vst [vmem:[#allocation7 + $0x2f0] sm:$0xff] %v932_v35  ;;  %4327 = vst [vmem:[#allocation7 + $0x12f0] sm:$0xff] %v2468_v36  ;;  %1224 = vmatprep.mubr.f32.mxu0 %v4875_v0  ;;  %2760 = vmatprep.mubr.f32.mxu1 %v4875_v0  ;;  %v402_v35 = vld [vmem:[#allocation2 + $0xb50] sm:$0xff] }
 0x1bd   :  { %v934_v39 = vpop.f32.mrf.mxu0  ;;  %v2470_v40 = vpop.f32.mrf.mxu1 }
 0x1be   :  { %3816 = vst [vmem:[#allocation7 + $0x2f8] sm:$0xff] %v934_v39  ;;  %4328 = vst [vmem:[#allocation7 + $0x12f8] sm:$0xff] %v2470_v40  ;;  %v147_v40 = vld [vmem:[#allocation2 + $0x358] sm:$0xff] }
 0x1bf   :  { %v938_v41 = vpop.f32.mrf.mxu0  ;;  %1225 = vmatmul.mubr.f32.gmra.mxu0 %v136_v37  ;;  %v2474_v42 = vpop.f32.mrf.mxu1  ;;  %2761 = vmatmul.mubr.f32.gmra.mxu1 %v392_v38 }
 0x1c0   :  { %3817 = vst [vmem:[#allocation7 + $0x300] sm:$0xff] %v938_v41  ;;  %4329 = vst [vmem:[#allocation7 + $0x1300] sm:$0xff] %v2474_v42  ;;  %1230 = vmatprep.mubr.f32.mxu0 %v4875_v0  ;;  %2766 = vmatprep.mubr.f32.mxu1 %v4875_v0  ;;  %v403_v41 = vld [vmem:[#allocation2 + $0xb58] sm:$0xff] }
 0x1c1   :  { %v940_v45 = vpop.f32.mrf.mxu0  ;;  %v2476_v46 = vpop.f32.mrf.mxu1 }
 0x1c2   :  { %3818 = vst [vmem:[#allocation7 + $0x308] sm:$0xff] %v940_v45  ;;  %4330 = vst [vmem:[#allocation7 + $0x1308] sm:$0xff] %v2476_v46  ;;  %v148_v46 = vld [vmem:[#allocation2 + $0x360] sm:$0xff] }
 0x1c3   :  { %v944_v47 = vpop.f32.mrf.mxu0  ;;  %1231 = vmatmul.mubr.f32.gmra.mxu0 %v137_v43  ;;  %v2480_v48 = vpop.f32.mrf.mxu1  ;;  %2767 = vmatmul.mubr.f32.gmra.mxu1 %v393_v44 }
 0x1c4   :  { %3819 = vst [vmem:[#allocation7 + $0x310] sm:$0xff] %v944_v47  ;;  %4331 = vst [vmem:[#allocation7 + $0x1310] sm:$0xff] %v2480_v48  ;;  %1236 = vmatprep.mubr.f32.mxu0 %v4875_v0  ;;  %2772 = vmatprep.mubr.f32.mxu1 %v4875_v0  ;;  %v404_v47 = vld [vmem:[#allocation2 + $0xb60] sm:$0xff] }
 0x1c5   :  { %v946_v51 = vpop.f32.mrf.mxu0  ;;  %v2482_v52 = vpop.f32.mrf.mxu1 }
 0x1c6   :  { %3820 = vst [vmem:[#allocation7 + $0x318] sm:$0xff] %v946_v51  ;;  %4332 = vst [vmem:[#allocation7 + $0x1318] sm:$0xff] %v2482_v52  ;;  %v149_v52 = vld [vmem:[#allocation2 + $0x368] sm:$0xff] }
 0x1c7   :  { %v950_v53 = vpop.f32.mrf.mxu0  ;;  %1237 = vmatmul.mubr.f32.gmra.mxu0 %v138_v49  ;;  %v2486_v54 = vpop.f32.mrf.mxu1  ;;  %2773 = vmatmul.mubr.f32.gmra.mxu1 %v394_v50 }
 0x1c8   :  { %3821 = vst [vmem:[#allocation7 + $0x320] sm:$0xff] %v950_v53  ;;  %4333 = vst [vmem:[#allocation7 + $0x1320] sm:$0xff] %v2486_v54  ;;  %1242 = vmatprep.mubr.f32.mxu0 %v4875_v0  ;;  %2778 = vmatprep.mubr.f32.mxu1 %v4875_v0  ;;  %v405_v53 = vld [vmem:[#allocation2 + $0xb68] sm:$0xff] }
 0x1c9   :  { %v952_v57 = vpop.f32.mrf.mxu0  ;;  %v2488_v58 = vpop.f32.mrf.mxu1 }
 0x1ca   :  { %3822 = vst [vmem:[#allocation7 + $0x328] sm:$0xff] %v952_v57  ;;  %4334 = vst [vmem:[#allocation7 + $0x1328] sm:$0xff] %v2488_v58  ;;  %v150_v58 = vld [vmem:[#allocation2 + $0x370] sm:$0xff] }
 0x1cb   :  { %v956_v59 = vpop.f32.mrf.mxu0  ;;  %1243 = vmatmul.mubr.f32.gmra.mxu0 %v139_v55  ;;  %v2492_v60 = vpop.f32.mrf.mxu1  ;;  %2779 = vmatmul.mubr.f32.gmra.mxu1 %v395_v56 }
 0x1cc   :  { %3823 = vst [vmem:[#allocation7 + $0x330] sm:$0xff] %v956_v59  ;;  %4335 = vst [vmem:[#allocation7 + $0x1330] sm:$0xff] %v2492_v60  ;;  %1248 = vmatprep.mubr.f32.mxu0 %v4875_v0  ;;  %2784 = vmatprep.mubr.f32.mxu1 %v4875_v0  ;;  %v406_v59 = vld [vmem:[#allocation2 + $0xb70] sm:$0xff] }
 0x1cd   :  { %v958_v63 = vpop.f32.mrf.mxu0  ;;  %v2494_v1 = vpop.f32.mrf.mxu1 }
 0x1ce   :  { %3824 = vst [vmem:[#allocation7 + $0x338] sm:$0xff] %v958_v63  ;;  %4336 = vst [vmem:[#allocation7 + $0x1338] sm:$0xff] %v2494_v1  ;;  %v151_v1 = vld [vmem:[#allocation2 + $0x378] sm:$0xff] }
 0x1cf   :  { %v962_v2 = vpop.f32.mrf.mxu0  ;;  %1249 = vmatmul.mubr.f32.gmra.mxu0 %v140_v61  ;;  %v2498_v3 = vpop.f32.mrf.mxu1  ;;  %2785 = vmatmul.mubr.f32.gmra.mxu1 %v396_v62 }
 0x1d0   :  { %3825 = vst [vmem:[#allocation7 + $0x340] sm:$0xff] %v962_v2  ;;  %4337 = vst [vmem:[#allocation7 + $0x1340] sm:$0xff] %v2498_v3  ;;  %1254 = vmatprep.mubr.f32.mxu0 %v4875_v0  ;;  %2790 = vmatprep.mubr.f32.mxu1 %v4875_v0  ;;  %v407_v2 = vld [vmem:[#allocation2 + $0xb78] sm:$0xff] }
 0x1d1   :  { %v964_v6 = vpop.f32.mrf.mxu0  ;;  %v2500_v7 = vpop.f32.mrf.mxu1 }
 0x1d2   :  { %3826 = vst [vmem:[#allocation7 + $0x348] sm:$0xff] %v964_v6  ;;  %4338 = vst [vmem:[#allocation7 + $0x1348] sm:$0xff] %v2500_v7  ;;  %v152_v7 = vld [vmem:[#allocation2 + $0x380] sm:$0xff] }
 0x1d3   :  { %v968_v8 = vpop.f32.mrf.mxu0  ;;  %1255 = vmatmul.mubr.f32.gmra.mxu0 %v141_v4  ;;  %v2504_v9 = vpop.f32.mrf.mxu1  ;;  %2791 = vmatmul.mubr.f32.gmra.mxu1 %v397_v5 }
 0x1d4   :  { %3827 = vst [vmem:[#allocation7 + $0x350] sm:$0xff] %v968_v8  ;;  %4339 = vst [vmem:[#allocation7 + $0x1350] sm:$0xff] %v2504_v9  ;;  %1260 = vmatprep.mubr.f32.mxu0 %v4875_v0  ;;  %2796 = vmatprep.mubr.f32.mxu1 %v4875_v0  ;;  %v408_v8 = vld [vmem:[#allocation2 + $0xb80] sm:$0xff] }
 0x1d5   :  { %v970_v12 = vpop.f32.mrf.mxu0  ;;  %v2506_v13 = vpop.f32.mrf.mxu1 }
 0x1d6   :  { %3828 = vst [vmem:[#allocation7 + $0x358] sm:$0xff] %v970_v12  ;;  %4340 = vst [vmem:[#allocation7 + $0x1358] sm:$0xff] %v2506_v13  ;;  %v153_v13 = vld [vmem:[#allocation2 + $0x388] sm:$0xff] }
 0x1d7   :  { %v974_v14 = vpop.f32.mrf.mxu0  ;;  %1261 = vmatmul.mubr.f32.gmra.mxu0 %v142_v10  ;;  %v2510_v15 = vpop.f32.mrf.mxu1  ;;  %2797 = vmatmul.mubr.f32.gmra.mxu1 %v398_v11 }
 0x1d8   :  { %3829 = vst [vmem:[#allocation7 + $0x360] sm:$0xff] %v974_v14  ;;  %4341 = vst [vmem:[#allocation7 + $0x1360] sm:$0xff] %v2510_v15  ;;  %1266 = vmatprep.mubr.f32.mxu0 %v4875_v0  ;;  %2802 = vmatprep.mubr.f32.mxu1 %v4875_v0  ;;  %v409_v14 = vld [vmem:[#allocation2 + $0xb88] sm:$0xff] }
 0x1d9   :  { %v976_v18 = vpop.f32.mrf.mxu0  ;;  %v2512_v19 = vpop.f32.mrf.mxu1 }
 0x1da   :  { %3830 = vst [vmem:[#allocation7 + $0x368] sm:$0xff] %v976_v18  ;;  %4342 = vst [vmem:[#allocation7 + $0x1368] sm:$0xff] %v2512_v19  ;;  %v154_v19 = vld [vmem:[#allocation2 + $0x390] sm:$0xff] }
 0x1db   :  { %v980_v20 = vpop.f32.mrf.mxu0  ;;  %1267 = vmatmul.mubr.f32.gmra.mxu0 %v143_v16  ;;  %v2516_v21 = vpop.f32.mrf.mxu1  ;;  %2803 = vmatmul.mubr.f32.gmra.mxu1 %v399_v17 }
 0x1dc   :  { %3831 = vst [vmem:[#allocation7 + $0x370] sm:$0xff] %v980_v20  ;;  %4343 = vst [vmem:[#allocation7 + $0x1370] sm:$0xff] %v2516_v21  ;;  %1272 = vmatprep.mubr.f32.mxu0 %v4875_v0  ;;  %2808 = vmatprep.mubr.f32.mxu1 %v4875_v0  ;;  %v410_v20 = vld [vmem:[#allocation2 + $0xb90] sm:$0xff] }
 0x1dd   :  { %v982_v24 = vpop.f32.mrf.mxu0  ;;  %v2518_v25 = vpop.f32.mrf.mxu1 }
 0x1de   :  { %3832 = vst [vmem:[#allocation7 + $0x378] sm:$0xff] %v982_v24  ;;  %4344 = vst [vmem:[#allocation7 + $0x1378] sm:$0xff] %v2518_v25  ;;  %v155_v25 = vld [vmem:[#allocation2 + $0x398] sm:$0xff] }
 0x1df   :  { %v986_v26 = vpop.f32.mrf.mxu0  ;;  %1273 = vmatmul.mubr.f32.gmra.mxu0 %v144_v22  ;;  %v2522_v27 = vpop.f32.mrf.mxu1  ;;  %2809 = vmatmul.mubr.f32.gmra.mxu1 %v400_v23 }
 0x1e0   :  { %3833 = vst [vmem:[#allocation7 + $0x380] sm:$0xff] %v986_v26  ;;  %4345 = vst [vmem:[#allocation7 + $0x1380] sm:$0xff] %v2522_v27  ;;  %1278 = vmatprep.mubr.f32.mxu0 %v4875_v0  ;;  %2814 = vmatprep.mubr.f32.mxu1 %v4875_v0  ;;  %v411_v26 = vld [vmem:[#allocation2 + $0xb98] sm:$0xff] }
 0x1e1   :  { %v988_v30 = vpop.f32.mrf.mxu0  ;;  %v2524_v31 = vpop.f32.mrf.mxu1 }
 0x1e2   :  { %3834 = vst [vmem:[#allocation7 + $0x388] sm:$0xff] %v988_v30  ;;  %4346 = vst [vmem:[#allocation7 + $0x1388] sm:$0xff] %v2524_v31  ;;  %v156_v31 = vld [vmem:[#allocation2 + $0x3a0] sm:$0xff] }
 0x1e3   :  { %v992_v32 = vpop.f32.mrf.mxu0  ;;  %1279 = vmatmul.mubr.f32.gmra.mxu0 %v145_v28  ;;  %v2528_v33 = vpop.f32.mrf.mxu1  ;;  %2815 = vmatmul.mubr.f32.gmra.mxu1 %v401_v29 }
 0x1e4   :  { %3835 = vst [vmem:[#allocation7 + $0x390] sm:$0xff] %v992_v32  ;;  %4347 = vst [vmem:[#allocation7 + $0x1390] sm:$0xff] %v2528_v33  ;;  %1284 = vmatprep.mubr.f32.mxu0 %v4875_v0  ;;  %2820 = vmatprep.mubr.f32.mxu1 %v4875_v0  ;;  %v412_v32 = vld [vmem:[#allocation2 + $0xba0] sm:$0xff] }
 0x1e5   :  { %v994_v36 = vpop.f32.mrf.mxu0  ;;  %v2530_v37 = vpop.f32.mrf.mxu1 }
 0x1e6   :  { %3836 = vst [vmem:[#allocation7 + $0x398] sm:$0xff] %v994_v36  ;;  %4348 = vst [vmem:[#allocation7 + $0x1398] sm:$0xff] %v2530_v37  ;;  %v157_v37 = vld [vmem:[#allocation2 + $0x3a8] sm:$0xff] }
 0x1e7   :  { %v998_v38 = vpop.f32.mrf.mxu0  ;;  %1285 = vmatmul.mubr.f32.gmra.mxu0 %v146_v34  ;;  %v2534_v39 = vpop.f32.mrf.mxu1  ;;  %2821 = vmatmul.mubr.f32.gmra.mxu1 %v402_v35 }
 0x1e8   :  { %3837 = vst [vmem:[#allocation7 + $0x3a0] sm:$0xff] %v998_v38  ;;  %4349 = vst [vmem:[#allocation7 + $0x13a0] sm:$0xff] %v2534_v39  ;;  %1290 = vmatprep.mubr.f32.mxu0 %v4875_v0  ;;  %2826 = vmatprep.mubr.f32.mxu1 %v4875_v0  ;;  %v413_v38 = vld [vmem:[#allocation2 + $0xba8] sm:$0xff] }
 0x1e9   :  { %v1000_v42 = vpop.f32.mrf.mxu0  ;;  %v2536_v43 = vpop.f32.mrf.mxu1 }
 0x1ea   :  { %3838 = vst [vmem:[#allocation7 + $0x3a8] sm:$0xff] %v1000_v42  ;;  %4350 = vst [vmem:[#allocation7 + $0x13a8] sm:$0xff] %v2536_v43  ;;  %v158_v43 = vld [vmem:[#allocation2 + $0x3b0] sm:$0xff] }
 0x1eb   :  { %v1004_v44 = vpop.f32.mrf.mxu0  ;;  %1291 = vmatmul.mubr.f32.gmra.mxu0 %v147_v40  ;;  %v2540_v45 = vpop.f32.mrf.mxu1  ;;  %2827 = vmatmul.mubr.f32.gmra.mxu1 %v403_v41 }
 0x1ec   :  { %3839 = vst [vmem:[#allocation7 + $0x3b0] sm:$0xff] %v1004_v44  ;;  %4351 = vst [vmem:[#allocation7 + $0x13b0] sm:$0xff] %v2540_v45  ;;  %1296 = vmatprep.mubr.f32.mxu0 %v4875_v0  ;;  %2832 = vmatprep.mubr.f32.mxu1 %v4875_v0  ;;  %v414_v44 = vld [vmem:[#allocation2 + $0xbb0] sm:$0xff] }
 0x1ed   :  { %v1006_v48 = vpop.f32.mrf.mxu0  ;;  %v2542_v49 = vpop.f32.mrf.mxu1 }
 0x1ee   :  { %3840 = vst [vmem:[#allocation7 + $0x3b8] sm:$0xff] %v1006_v48  ;;  %4352 = vst [vmem:[#allocation7 + $0x13b8] sm:$0xff] %v2542_v49  ;;  %v159_v49 = vld [vmem:[#allocation2 + $0x3b8] sm:$0xff] }
 0x1ef   :  { %v1010_v50 = vpop.f32.mrf.mxu0  ;;  %1297 = vmatmul.mubr.f32.gmra.mxu0 %v148_v46  ;;  %v2546_v51 = vpop.f32.mrf.mxu1  ;;  %2833 = vmatmul.mubr.f32.gmra.mxu1 %v404_v47 }
 0x1f0   :  { %3841 = vst [vmem:[#allocation7 + $0x3c0] sm:$0xff] %v1010_v50  ;;  %4353 = vst [vmem:[#allocation7 + $0x13c0] sm:$0xff] %v2546_v51  ;;  %1302 = vmatprep.mubr.f32.mxu0 %v4875_v0  ;;  %2838 = vmatprep.mubr.f32.mxu1 %v4875_v0  ;;  %v415_v50 = vld [vmem:[#allocation2 + $0xbb8] sm:$0xff] }
 0x1f1   :  { %v1012_v54 = vpop.f32.mrf.mxu0  ;;  %v2548_v55 = vpop.f32.mrf.mxu1 }
 0x1f2   :  { %3842 = vst [vmem:[#allocation7 + $0x3c8] sm:$0xff] %v1012_v54  ;;  %4354 = vst [vmem:[#allocation7 + $0x13c8] sm:$0xff] %v2548_v55  ;;  %v160_v55 = vld [vmem:[#allocation2 + $0x3c0] sm:$0xff] }
 0x1f3   :  { %v1016_v56 = vpop.f32.mrf.mxu0  ;;  %1303 = vmatmul.mubr.f32.gmra.mxu0 %v149_v52  ;;  %v2552_v57 = vpop.f32.mrf.mxu1  ;;  %2839 = vmatmul.mubr.f32.gmra.mxu1 %v405_v53 }
 0x1f4   :  { %3843 = vst [vmem:[#allocation7 + $0x3d0] sm:$0xff] %v1016_v56  ;;  %4355 = vst [vmem:[#allocation7 + $0x13d0] sm:$0xff] %v2552_v57  ;;  %1308 = vmatprep.mubr.f32.mxu0 %v4875_v0  ;;  %2844 = vmatprep.mubr.f32.mxu1 %v4875_v0  ;;  %v416_v56 = vld [vmem:[#allocation2 + $0xbc0] sm:$0xff] }
 0x1f5   :  { %v1018_v60 = vpop.f32.mrf.mxu0  ;;  %v2554_v61 = vpop.f32.mrf.mxu1 }
 0x1f6   :  { %3844 = vst [vmem:[#allocation7 + $0x3d8] sm:$0xff] %v1018_v60  ;;  %4356 = vst [vmem:[#allocation7 + $0x13d8] sm:$0xff] %v2554_v61  ;;  %v161_v61 = vld [vmem:[#allocation2 + $0x3c8] sm:$0xff] }
 0x1f7   :  { %v1022_v62 = vpop.f32.mrf.mxu0  ;;  %1309 = vmatmul.mubr.f32.gmra.mxu0 %v150_v58  ;;  %v2558_v63 = vpop.f32.mrf.mxu1  ;;  %2845 = vmatmul.mubr.f32.gmra.mxu1 %v406_v59 }
 0x1f8   :  { %3845 = vst [vmem:[#allocation7 + $0x3e0] sm:$0xff] %v1022_v62  ;;  %4357 = vst [vmem:[#allocation7 + $0x13e0] sm:$0xff] %v2558_v63  ;;  %1314 = vmatprep.mubr.f32.mxu0 %v4875_v0  ;;  %2850 = vmatprep.mubr.f32.mxu1 %v4875_v0  ;;  %v417_v62 = vld [vmem:[#allocation2 + $0xbc8] sm:$0xff] }
 0x1f9   :  { %v1024_v3 = vpop.f32.mrf.mxu0  ;;  %v2560_v4 = vpop.f32.mrf.mxu1 }
 0x1fa   :  { %3846 = vst [vmem:[#allocation7 + $0x3e8] sm:$0xff] %v1024_v3  ;;  %4358 = vst [vmem:[#allocation7 + $0x13e8] sm:$0xff] %v2560_v4  ;;  %v162_v4 = vld [vmem:[#allocation2 + $0x3d0] sm:$0xff] }
 0x1fb   :  { %v1028_v5 = vpop.f32.mrf.mxu0  ;;  %1315 = vmatmul.mubr.f32.gmra.mxu0 %v151_v1  ;;  %v2564_v6 = vpop.f32.mrf.mxu1  ;;  %2851 = vmatmul.mubr.f32.gmra.mxu1 %v407_v2 }
 0x1fc   :  { %3847 = vst [vmem:[#allocation7 + $0x3f0] sm:$0xff] %v1028_v5  ;;  %4359 = vst [vmem:[#allocation7 + $0x13f0] sm:$0xff] %v2564_v6  ;;  %1320 = vmatprep.mubr.f32.mxu0 %v4875_v0  ;;  %2856 = vmatprep.mubr.f32.mxu1 %v4875_v0  ;;  %v418_v5 = vld [vmem:[#allocation2 + $0xbd0] sm:$0xff] }
 0x1fd   :  { %v1030_v9 = vpop.f32.mrf.mxu0  ;;  %v2566_v10 = vpop.f32.mrf.mxu1 }
 0x1fe   :  { %3848 = vst [vmem:[#allocation7 + $0x3f8] sm:$0xff] %v1030_v9  ;;  %4360 = vst [vmem:[#allocation7 + $0x13f8] sm:$0xff] %v2566_v10  ;;  %v163_v10 = vld [vmem:[#allocation2 + $0x3d8] sm:$0xff] }
 0x1ff   :  { %v1034_v11 = vpop.f32.mrf.mxu0  ;;  %1321 = vmatmul.mubr.f32.gmra.mxu0 %v152_v7  ;;  %v2570_v12 = vpop.f32.mrf.mxu1  ;;  %2857 = vmatmul.mubr.f32.gmra.mxu1 %v408_v8 }
 0x200   :  { %3849 = vst [vmem:[#allocation7 + $0x400] sm:$0xff] %v1034_v11  ;;  %4361 = vst [vmem:[#allocation7 + $0x1400] sm:$0xff] %v2570_v12  ;;  %1326 = vmatprep.mubr.f32.mxu0 %v4875_v0  ;;  %2862 = vmatprep.mubr.f32.mxu1 %v4875_v0  ;;  %v419_v11 = vld [vmem:[#allocation2 + $0xbd8] sm:$0xff] }
 0x201   :  { %v1036_v15 = vpop.f32.mrf.mxu0  ;;  %v2572_v16 = vpop.f32.mrf.mxu1 }
 0x202   :  { %3850 = vst [vmem:[#allocation7 + $0x408] sm:$0xff] %v1036_v15  ;;  %4362 = vst [vmem:[#allocation7 + $0x1408] sm:$0xff] %v2572_v16  ;;  %v164_v16 = vld [vmem:[#allocation2 + $0x3e0] sm:$0xff] }
 0x203   :  { %v1040_v17 = vpop.f32.mrf.mxu0  ;;  %1327 = vmatmul.mubr.f32.gmra.mxu0 %v153_v13  ;;  %v2576_v18 = vpop.f32.mrf.mxu1  ;;  %2863 = vmatmul.mubr.f32.gmra.mxu1 %v409_v14 }
 0x204   :  { %3851 = vst [vmem:[#allocation7 + $0x410] sm:$0xff] %v1040_v17  ;;  %4363 = vst [vmem:[#allocation7 + $0x1410] sm:$0xff] %v2576_v18  ;;  %1332 = vmatprep.mubr.f32.mxu0 %v4875_v0  ;;  %2868 = vmatprep.mubr.f32.mxu1 %v4875_v0  ;;  %v420_v17 = vld [vmem:[#allocation2 + $0xbe0] sm:$0xff] }
 0x205   :  { %v1042_v21 = vpop.f32.mrf.mxu0  ;;  %v2578_v22 = vpop.f32.mrf.mxu1 }
 0x206   :  { %3852 = vst [vmem:[#allocation7 + $0x418] sm:$0xff] %v1042_v21  ;;  %4364 = vst [vmem:[#allocation7 + $0x1418] sm:$0xff] %v2578_v22  ;;  %v165_v22 = vld [vmem:[#allocation2 + $0x3e8] sm:$0xff] }
 0x207   :  { %v1046_v23 = vpop.f32.mrf.mxu0  ;;  %1333 = vmatmul.mubr.f32.gmra.mxu0 %v154_v19  ;;  %v2582_v24 = vpop.f32.mrf.mxu1  ;;  %2869 = vmatmul.mubr.f32.gmra.mxu1 %v410_v20 }
 0x208   :  { %3853 = vst [vmem:[#allocation7 + $0x420] sm:$0xff] %v1046_v23  ;;  %4365 = vst [vmem:[#allocation7 + $0x1420] sm:$0xff] %v2582_v24  ;;  %1338 = vmatprep.mubr.f32.mxu0 %v4875_v0  ;;  %2874 = vmatprep.mubr.f32.mxu1 %v4875_v0  ;;  %v421_v23 = vld [vmem:[#allocation2 + $0xbe8] sm:$0xff] }
 0x209   :  { %v1048_v27 = vpop.f32.mrf.mxu0  ;;  %v2584_v28 = vpop.f32.mrf.mxu1 }
 0x20a   :  { %3854 = vst [vmem:[#allocation7 + $0x428] sm:$0xff] %v1048_v27  ;;  %4366 = vst [vmem:[#allocation7 + $0x1428] sm:$0xff] %v2584_v28  ;;  %v166_v28 = vld [vmem:[#allocation2 + $0x3f0] sm:$0xff] }
 0x20b   :  { %v1052_v29 = vpop.f32.mrf.mxu0  ;;  %1339 = vmatmul.mubr.f32.gmra.mxu0 %v155_v25  ;;  %v2588_v30 = vpop.f32.mrf.mxu1  ;;  %2875 = vmatmul.mubr.f32.gmra.mxu1 %v411_v26 }
 0x20c   :  { %3855 = vst [vmem:[#allocation7 + $0x430] sm:$0xff] %v1052_v29  ;;  %4367 = vst [vmem:[#allocation7 + $0x1430] sm:$0xff] %v2588_v30  ;;  %1344 = vmatprep.mubr.f32.mxu0 %v4875_v0  ;;  %2880 = vmatprep.mubr.f32.mxu1 %v4875_v0  ;;  %v422_v29 = vld [vmem:[#allocation2 + $0xbf0] sm:$0xff] }
 0x20d   :  { %v1054_v33 = vpop.f32.mrf.mxu0  ;;  %v2590_v34 = vpop.f32.mrf.mxu1 }
 0x20e   :  { %3856 = vst [vmem:[#allocation7 + $0x438] sm:$0xff] %v1054_v33  ;;  %4368 = vst [vmem:[#allocation7 + $0x1438] sm:$0xff] %v2590_v34  ;;  %v167_v34 = vld [vmem:[#allocation2 + $0x3f8] sm:$0xff] }
 0x20f   :  { %v1058_v35 = vpop.f32.mrf.mxu0  ;;  %1345 = vmatmul.mubr.f32.gmra.mxu0 %v156_v31  ;;  %v2594_v36 = vpop.f32.mrf.mxu1  ;;  %2881 = vmatmul.mubr.f32.gmra.mxu1 %v412_v32 }
 0x210   :  { %3857 = vst [vmem:[#allocation7 + $0x440] sm:$0xff] %v1058_v35  ;;  %4369 = vst [vmem:[#allocation7 + $0x1440] sm:$0xff] %v2594_v36  ;;  %1350 = vmatprep.mubr.f32.mxu0 %v4875_v0  ;;  %2886 = vmatprep.mubr.f32.mxu1 %v4875_v0  ;;  %v423_v35 = vld [vmem:[#allocation2 + $0xbf8] sm:$0xff] }
 0x211   :  { %v1060_v39 = vpop.f32.mrf.mxu0  ;;  %v2596_v40 = vpop.f32.mrf.mxu1 }
 0x212   :  { %3858 = vst [vmem:[#allocation7 + $0x448] sm:$0xff] %v1060_v39  ;;  %4370 = vst [vmem:[#allocation7 + $0x1448] sm:$0xff] %v2596_v40  ;;  %v168_v40 = vld [vmem:[#allocation2 + $0x400] sm:$0xff] }
 0x213   :  { %v1064_v41 = vpop.f32.mrf.mxu0  ;;  %1351 = vmatmul.mubr.f32.gmra.mxu0 %v157_v37  ;;  %v2600_v42 = vpop.f32.mrf.mxu1  ;;  %2887 = vmatmul.mubr.f32.gmra.mxu1 %v413_v38 }
 0x214   :  { %3859 = vst [vmem:[#allocation7 + $0x450] sm:$0xff] %v1064_v41  ;;  %4371 = vst [vmem:[#allocation7 + $0x1450] sm:$0xff] %v2600_v42  ;;  %1356 = vmatprep.mubr.f32.mxu0 %v4875_v0  ;;  %2892 = vmatprep.mubr.f32.mxu1 %v4875_v0  ;;  %v424_v41 = vld [vmem:[#allocation2 + $0xc00] sm:$0xff] }
 0x215   :  { %v1066_v45 = vpop.f32.mrf.mxu0  ;;  %v2602_v46 = vpop.f32.mrf.mxu1 }
 0x216   :  { %3860 = vst [vmem:[#allocation7 + $0x458] sm:$0xff] %v1066_v45  ;;  %4372 = vst [vmem:[#allocation7 + $0x1458] sm:$0xff] %v2602_v46  ;;  %v169_v46 = vld [vmem:[#allocation2 + $0x408] sm:$0xff] }
 0x217   :  { %v1070_v47 = vpop.f32.mrf.mxu0  ;;  %1357 = vmatmul.mubr.f32.gmra.mxu0 %v158_v43  ;;  %v2606_v48 = vpop.f32.mrf.mxu1  ;;  %2893 = vmatmul.mubr.f32.gmra.mxu1 %v414_v44 }
 0x218   :  { %3861 = vst [vmem:[#allocation7 + $0x460] sm:$0xff] %v1070_v47  ;;  %4373 = vst [vmem:[#allocation7 + $0x1460] sm:$0xff] %v2606_v48  ;;  %1362 = vmatprep.mubr.f32.mxu0 %v4875_v0  ;;  %2898 = vmatprep.mubr.f32.mxu1 %v4875_v0  ;;  %v425_v47 = vld [vmem:[#allocation2 + $0xc08] sm:$0xff] }
 0x219   :  { %v1072_v51 = vpop.f32.mrf.mxu0  ;;  %v2608_v52 = vpop.f32.mrf.mxu1 }
 0x21a   :  { %3862 = vst [vmem:[#allocation7 + $0x468] sm:$0xff] %v1072_v51  ;;  %4374 = vst [vmem:[#allocation7 + $0x1468] sm:$0xff] %v2608_v52  ;;  %v170_v52 = vld [vmem:[#allocation2 + $0x410] sm:$0xff] }
 0x21b   :  { %v1076_v53 = vpop.f32.mrf.mxu0  ;;  %1363 = vmatmul.mubr.f32.gmra.mxu0 %v159_v49  ;;  %v2612_v54 = vpop.f32.mrf.mxu1  ;;  %2899 = vmatmul.mubr.f32.gmra.mxu1 %v415_v50 }
 0x21c   :  { %3863 = vst [vmem:[#allocation7 + $0x470] sm:$0xff] %v1076_v53  ;;  %4375 = vst [vmem:[#allocation7 + $0x1470] sm:$0xff] %v2612_v54  ;;  %1368 = vmatprep.mubr.f32.mxu0 %v4875_v0  ;;  %2904 = vmatprep.mubr.f32.mxu1 %v4875_v0  ;;  %v426_v53 = vld [vmem:[#allocation2 + $0xc10] sm:$0xff] }
 0x21d   :  { %v1078_v57 = vpop.f32.mrf.mxu0  ;;  %v2614_v58 = vpop.f32.mrf.mxu1 }
 0x21e   :  { %3864 = vst [vmem:[#allocation7 + $0x478] sm:$0xff] %v1078_v57  ;;  %4376 = vst [vmem:[#allocation7 + $0x1478] sm:$0xff] %v2614_v58  ;;  %v171_v58 = vld [vmem:[#allocation2 + $0x418] sm:$0xff] }
 0x21f   :  { %v1082_v59 = vpop.f32.mrf.mxu0  ;;  %1369 = vmatmul.mubr.f32.gmra.mxu0 %v160_v55  ;;  %v2618_v60 = vpop.f32.mrf.mxu1  ;;  %2905 = vmatmul.mubr.f32.gmra.mxu1 %v416_v56 }
 0x220   :  { %3865 = vst [vmem:[#allocation7 + $0x480] sm:$0xff] %v1082_v59  ;;  %4377 = vst [vmem:[#allocation7 + $0x1480] sm:$0xff] %v2618_v60  ;;  %1374 = vmatprep.mubr.f32.mxu0 %v4875_v0  ;;  %2910 = vmatprep.mubr.f32.mxu1 %v4875_v0  ;;  %v427_v59 = vld [vmem:[#allocation2 + $0xc18] sm:$0xff] }
 0x221   :  { %v1084_v63 = vpop.f32.mrf.mxu0  ;;  %v2620_v1 = vpop.f32.mrf.mxu1 }
 0x222   :  { %3866 = vst [vmem:[#allocation7 + $0x488] sm:$0xff] %v1084_v63  ;;  %4378 = vst [vmem:[#allocation7 + $0x1488] sm:$0xff] %v2620_v1  ;;  %v172_v1 = vld [vmem:[#allocation2 + $0x420] sm:$0xff] }
 0x223   :  { %v1088_v2 = vpop.f32.mrf.mxu0  ;;  %1375 = vmatmul.mubr.f32.gmra.mxu0 %v161_v61  ;;  %v2624_v3 = vpop.f32.mrf.mxu1  ;;  %2911 = vmatmul.mubr.f32.gmra.mxu1 %v417_v62 }
 0x224   :  { %3867 = vst [vmem:[#allocation7 + $0x490] sm:$0xff] %v1088_v2  ;;  %4379 = vst [vmem:[#allocation7 + $0x1490] sm:$0xff] %v2624_v3  ;;  %1380 = vmatprep.mubr.f32.mxu0 %v4875_v0  ;;  %2916 = vmatprep.mubr.f32.mxu1 %v4875_v0  ;;  %v428_v2 = vld [vmem:[#allocation2 + $0xc20] sm:$0xff] }
 0x225   :  { %v1090_v6 = vpop.f32.mrf.mxu0  ;;  %v2626_v7 = vpop.f32.mrf.mxu1 }
 0x226   :  { %3868 = vst [vmem:[#allocation7 + $0x498] sm:$0xff] %v1090_v6  ;;  %4380 = vst [vmem:[#allocation7 + $0x1498] sm:$0xff] %v2626_v7  ;;  %v173_v7 = vld [vmem:[#allocation2 + $0x428] sm:$0xff] }
 0x227   :  { %v1094_v8 = vpop.f32.mrf.mxu0  ;;  %1381 = vmatmul.mubr.f32.gmra.mxu0 %v162_v4  ;;  %v2630_v9 = vpop.f32.mrf.mxu1  ;;  %2917 = vmatmul.mubr.f32.gmra.mxu1 %v418_v5 }
 0x228   :  { %3869 = vst [vmem:[#allocation7 + $0x4a0] sm:$0xff] %v1094_v8  ;;  %4381 = vst [vmem:[#allocation7 + $0x14a0] sm:$0xff] %v2630_v9  ;;  %1386 = vmatprep.mubr.f32.mxu0 %v4875_v0  ;;  %2922 = vmatprep.mubr.f32.mxu1 %v4875_v0  ;;  %v429_v8 = vld [vmem:[#allocation2 + $0xc28] sm:$0xff] }
 0x229   :  { %v1096_v12 = vpop.f32.mrf.mxu0  ;;  %v2632_v13 = vpop.f32.mrf.mxu1 }
 0x22a   :  { %3870 = vst [vmem:[#allocation7 + $0x4a8] sm:$0xff] %v1096_v12  ;;  %4382 = vst [vmem:[#allocation7 + $0x14a8] sm:$0xff] %v2632_v13  ;;  %v174_v13 = vld [vmem:[#allocation2 + $0x430] sm:$0xff] }
 0x22b   :  { %v1100_v14 = vpop.f32.mrf.mxu0  ;;  %1387 = vmatmul.mubr.f32.gmra.mxu0 %v163_v10  ;;  %v2636_v15 = vpop.f32.mrf.mxu1  ;;  %2923 = vmatmul.mubr.f32.gmra.mxu1 %v419_v11 }
 0x22c   :  { %3871 = vst [vmem:[#allocation7 + $0x4b0] sm:$0xff] %v1100_v14  ;;  %4383 = vst [vmem:[#allocation7 + $0x14b0] sm:$0xff] %v2636_v15  ;;  %1392 = vmatprep.mubr.f32.mxu0 %v4875_v0  ;;  %2928 = vmatprep.mubr.f32.mxu1 %v4875_v0  ;;  %v430_v14 = vld [vmem:[#allocation2 + $0xc30] sm:$0xff] }
 0x22d   :  { %v1102_v18 = vpop.f32.mrf.mxu0  ;;  %v2638_v19 = vpop.f32.mrf.mxu1 }
 0x22e   :  { %3872 = vst [vmem:[#allocation7 + $0x4b8] sm:$0xff] %v1102_v18  ;;  %4384 = vst [vmem:[#allocation7 + $0x14b8] sm:$0xff] %v2638_v19  ;;  %v175_v19 = vld [vmem:[#allocation2 + $0x438] sm:$0xff] }
 0x22f   :  { %v1106_v20 = vpop.f32.mrf.mxu0  ;;  %1393 = vmatmul.mubr.f32.gmra.mxu0 %v164_v16  ;;  %v2642_v21 = vpop.f32.mrf.mxu1  ;;  %2929 = vmatmul.mubr.f32.gmra.mxu1 %v420_v17 }
 0x230   :  { %3873 = vst [vmem:[#allocation7 + $0x4c0] sm:$0xff] %v1106_v20  ;;  %4385 = vst [vmem:[#allocation7 + $0x14c0] sm:$0xff] %v2642_v21  ;;  %1398 = vmatprep.mubr.f32.mxu0 %v4875_v0  ;;  %2934 = vmatprep.mubr.f32.mxu1 %v4875_v0  ;;  %v431_v20 = vld [vmem:[#allocation2 + $0xc38] sm:$0xff] }
 0x231   :  { %v1108_v24 = vpop.f32.mrf.mxu0  ;;  %v2644_v25 = vpop.f32.mrf.mxu1 }
 0x232   :  { %3874 = vst [vmem:[#allocation7 + $0x4c8] sm:$0xff] %v1108_v24  ;;  %4386 = vst [vmem:[#allocation7 + $0x14c8] sm:$0xff] %v2644_v25  ;;  %v176_v25 = vld [vmem:[#allocation2 + $0x440] sm:$0xff] }
 0x233   :  { %v1112_v26 = vpop.f32.mrf.mxu0  ;;  %1399 = vmatmul.mubr.f32.gmra.mxu0 %v165_v22  ;;  %v2648_v27 = vpop.f32.mrf.mxu1  ;;  %2935 = vmatmul.mubr.f32.gmra.mxu1 %v421_v23 }
 0x234   :  { %3875 = vst [vmem:[#allocation7 + $0x4d0] sm:$0xff] %v1112_v26  ;;  %4387 = vst [vmem:[#allocation7 + $0x14d0] sm:$0xff] %v2648_v27  ;;  %1404 = vmatprep.mubr.f32.mxu0 %v4875_v0  ;;  %2940 = vmatprep.mubr.f32.mxu1 %v4875_v0  ;;  %v432_v26 = vld [vmem:[#allocation2 + $0xc40] sm:$0xff] }
 0x235   :  { %v1114_v30 = vpop.f32.mrf.mxu0  ;;  %v2650_v31 = vpop.f32.mrf.mxu1 }
 0x236   :  { %3876 = vst [vmem:[#allocation7 + $0x4d8] sm:$0xff] %v1114_v30  ;;  %4388 = vst [vmem:[#allocation7 + $0x14d8] sm:$0xff] %v2650_v31  ;;  %v177_v31 = vld [vmem:[#allocation2 + $0x448] sm:$0xff] }
 0x237   :  { %v1118_v32 = vpop.f32.mrf.mxu0  ;;  %1405 = vmatmul.mubr.f32.gmra.mxu0 %v166_v28  ;;  %v2654_v33 = vpop.f32.mrf.mxu1  ;;  %2941 = vmatmul.mubr.f32.gmra.mxu1 %v422_v29 }
 0x238   :  { %3877 = vst [vmem:[#allocation7 + $0x4e0] sm:$0xff] %v1118_v32  ;;  %4389 = vst [vmem:[#allocation7 + $0x14e0] sm:$0xff] %v2654_v33  ;;  %1410 = vmatprep.mubr.f32.mxu0 %v4875_v0  ;;  %2946 = vmatprep.mubr.f32.mxu1 %v4875_v0  ;;  %v433_v32 = vld [vmem:[#allocation2 + $0xc48] sm:$0xff] }
 0x239   :  { %v1120_v36 = vpop.f32.mrf.mxu0  ;;  %v2656_v37 = vpop.f32.mrf.mxu1 }
 0x23a   :  { %3878 = vst [vmem:[#allocation7 + $0x4e8] sm:$0xff] %v1120_v36  ;;  %4390 = vst [vmem:[#allocation7 + $0x14e8] sm:$0xff] %v2656_v37  ;;  %v178_v37 = vld [vmem:[#allocation2 + $0x450] sm:$0xff] }
 0x23b   :  { %v1124_v38 = vpop.f32.mrf.mxu0  ;;  %1411 = vmatmul.mubr.f32.gmra.mxu0 %v167_v34  ;;  %v2660_v39 = vpop.f32.mrf.mxu1  ;;  %2947 = vmatmul.mubr.f32.gmra.mxu1 %v423_v35 }
 0x23c   :  { %3879 = vst [vmem:[#allocation7 + $0x4f0] sm:$0xff] %v1124_v38  ;;  %4391 = vst [vmem:[#allocation7 + $0x14f0] sm:$0xff] %v2660_v39  ;;  %1416 = vmatprep.mubr.f32.mxu0 %v4875_v0  ;;  %2952 = vmatprep.mubr.f32.mxu1 %v4875_v0  ;;  %v434_v38 = vld [vmem:[#allocation2 + $0xc50] sm:$0xff] }
 0x23d   :  { %v1126_v42 = vpop.f32.mrf.mxu0  ;;  %v2662_v43 = vpop.f32.mrf.mxu1 }
 0x23e   :  { %3880 = vst [vmem:[#allocation7 + $0x4f8] sm:$0xff] %v1126_v42  ;;  %4392 = vst [vmem:[#allocation7 + $0x14f8] sm:$0xff] %v2662_v43  ;;  %v179_v43 = vld [vmem:[#allocation2 + $0x458] sm:$0xff] }
 0x23f   :  { %v1130_v44 = vpop.f32.mrf.mxu0  ;;  %1417 = vmatmul.mubr.f32.gmra.mxu0 %v168_v40  ;;  %v2666_v45 = vpop.f32.mrf.mxu1  ;;  %2953 = vmatmul.mubr.f32.gmra.mxu1 %v424_v41 }
 0x240   :  { %3881 = vst [vmem:[#allocation7 + $0x500] sm:$0xff] %v1130_v44  ;;  %4393 = vst [vmem:[#allocation7 + $0x1500] sm:$0xff] %v2666_v45  ;;  %1422 = vmatprep.mubr.f32.mxu0 %v4875_v0  ;;  %2958 = vmatprep.mubr.f32.mxu1 %v4875_v0  ;;  %v435_v44 = vld [vmem:[#allocation2 + $0xc58] sm:$0xff] }
 0x241   :  { %v1132_v48 = vpop.f32.mrf.mxu0  ;;  %v2668_v49 = vpop.f32.mrf.mxu1 }
 0x242   :  { %3882 = vst [vmem:[#allocation7 + $0x508] sm:$0xff] %v1132_v48  ;;  %4394 = vst [vmem:[#allocation7 + $0x1508] sm:$0xff] %v2668_v49  ;;  %v180_v49 = vld [vmem:[#allocation2 + $0x460] sm:$0xff] }
 0x243   :  { %v1136_v50 = vpop.f32.mrf.mxu0  ;;  %1423 = vmatmul.mubr.f32.gmra.mxu0 %v169_v46  ;;  %v2672_v51 = vpop.f32.mrf.mxu1  ;;  %2959 = vmatmul.mubr.f32.gmra.mxu1 %v425_v47 }
 0x244   :  { %3883 = vst [vmem:[#allocation7 + $0x510] sm:$0xff] %v1136_v50  ;;  %4395 = vst [vmem:[#allocation7 + $0x1510] sm:$0xff] %v2672_v51  ;;  %1428 = vmatprep.mubr.f32.mxu0 %v4875_v0  ;;  %2964 = vmatprep.mubr.f32.mxu1 %v4875_v0  ;;  %v436_v50 = vld [vmem:[#allocation2 + $0xc60] sm:$0xff] }
 0x245   :  { %v1138_v54 = vpop.f32.mrf.mxu0  ;;  %v2674_v55 = vpop.f32.mrf.mxu1 }
 0x246   :  { %3884 = vst [vmem:[#allocation7 + $0x518] sm:$0xff] %v1138_v54  ;;  %4396 = vst [vmem:[#allocation7 + $0x1518] sm:$0xff] %v2674_v55  ;;  %v181_v55 = vld [vmem:[#allocation2 + $0x468] sm:$0xff] }
 0x247   :  { %v1142_v56 = vpop.f32.mrf.mxu0  ;;  %1429 = vmatmul.mubr.f32.gmra.mxu0 %v170_v52  ;;  %v2678_v57 = vpop.f32.mrf.mxu1  ;;  %2965 = vmatmul.mubr.f32.gmra.mxu1 %v426_v53 }
 0x248   :  { %3885 = vst [vmem:[#allocation7 + $0x520] sm:$0xff] %v1142_v56  ;;  %4397 = vst [vmem:[#allocation7 + $0x1520] sm:$0xff] %v2678_v57  ;;  %1434 = vmatprep.mubr.f32.mxu0 %v4875_v0  ;;  %2970 = vmatprep.mubr.f32.mxu1 %v4875_v0  ;;  %v437_v56 = vld [vmem:[#allocation2 + $0xc68] sm:$0xff] }
 0x249   :  { %v1144_v60 = vpop.f32.mrf.mxu0  ;;  %v2680_v61 = vpop.f32.mrf.mxu1 }
 0x24a   :  { %3886 = vst [vmem:[#allocation7 + $0x528] sm:$0xff] %v1144_v60  ;;  %4398 = vst [vmem:[#allocation7 + $0x1528] sm:$0xff] %v2680_v61  ;;  %v182_v61 = vld [vmem:[#allocation2 + $0x470] sm:$0xff] }
 0x24b   :  { %v1148_v62 = vpop.f32.mrf.mxu0  ;;  %1435 = vmatmul.mubr.f32.gmra.mxu0 %v171_v58  ;;  %v2684_v63 = vpop.f32.mrf.mxu1  ;;  %2971 = vmatmul.mubr.f32.gmra.mxu1 %v427_v59 }
 0x24c   :  { %3887 = vst [vmem:[#allocation7 + $0x530] sm:$0xff] %v1148_v62  ;;  %4399 = vst [vmem:[#allocation7 + $0x1530] sm:$0xff] %v2684_v63  ;;  %1440 = vmatprep.mubr.f32.mxu0 %v4875_v0  ;;  %2976 = vmatprep.mubr.f32.mxu1 %v4875_v0  ;;  %v438_v62 = vld [vmem:[#allocation2 + $0xc70] sm:$0xff] }
 0x24d   :  { %v1150_v3 = vpop.f32.mrf.mxu0  ;;  %v2686_v4 = vpop.f32.mrf.mxu1 }
 0x24e   :  { %3888 = vst [vmem:[#allocation7 + $0x538] sm:$0xff] %v1150_v3  ;;  %4400 = vst [vmem:[#allocation7 + $0x1538] sm:$0xff] %v2686_v4  ;;  %v183_v4 = vld [vmem:[#allocation2 + $0x478] sm:$0xff] }
 0x24f   :  { %v1154_v5 = vpop.f32.mrf.mxu0  ;;  %1441 = vmatmul.mubr.f32.gmra.mxu0 %v172_v1  ;;  %v2690_v6 = vpop.f32.mrf.mxu1  ;;  %2977 = vmatmul.mubr.f32.gmra.mxu1 %v428_v2 }
 0x250   :  { %3889 = vst [vmem:[#allocation7 + $0x540] sm:$0xff] %v1154_v5  ;;  %4401 = vst [vmem:[#allocation7 + $0x1540] sm:$0xff] %v2690_v6  ;;  %1446 = vmatprep.mubr.f32.mxu0 %v4875_v0  ;;  %2982 = vmatprep.mubr.f32.mxu1 %v4875_v0  ;;  %v439_v5 = vld [vmem:[#allocation2 + $0xc78] sm:$0xff] }
 0x251   :  { %v1156_v9 = vpop.f32.mrf.mxu0  ;;  %v2692_v10 = vpop.f32.mrf.mxu1 }
 0x252   :  { %3890 = vst [vmem:[#allocation7 + $0x548] sm:$0xff] %v1156_v9  ;;  %4402 = vst [vmem:[#allocation7 + $0x1548] sm:$0xff] %v2692_v10  ;;  %v184_v10 = vld [vmem:[#allocation2 + $0x480] sm:$0xff] }
 0x253   :  { %v1160_v11 = vpop.f32.mrf.mxu0  ;;  %1447 = vmatmul.mubr.f32.gmra.mxu0 %v173_v7  ;;  %v2696_v12 = vpop.f32.mrf.mxu1  ;;  %2983 = vmatmul.mubr.f32.gmra.mxu1 %v429_v8 }
 0x254   :  { %3891 = vst [vmem:[#allocation7 + $0x550] sm:$0xff] %v1160_v11  ;;  %4403 = vst [vmem:[#allocation7 + $0x1550] sm:$0xff] %v2696_v12  ;;  %1452 = vmatprep.mubr.f32.mxu0 %v4875_v0  ;;  %2988 = vmatprep.mubr.f32.mxu1 %v4875_v0  ;;  %v440_v11 = vld [vmem:[#allocation2 + $0xc80] sm:$0xff] }
 0x255   :  { %v1162_v15 = vpop.f32.mrf.mxu0  ;;  %v2698_v16 = vpop.f32.mrf.mxu1 }
 0x256   :  { %3892 = vst [vmem:[#allocation7 + $0x558] sm:$0xff] %v1162_v15  ;;  %4404 = vst [vmem:[#allocation7 + $0x1558] sm:$0xff] %v2698_v16  ;;  %v185_v16 = vld [vmem:[#allocation2 + $0x488] sm:$0xff] }
 0x257   :  { %v1166_v17 = vpop.f32.mrf.mxu0  ;;  %1453 = vmatmul.mubr.f32.gmra.mxu0 %v174_v13  ;;  %v2702_v18 = vpop.f32.mrf.mxu1  ;;  %2989 = vmatmul.mubr.f32.gmra.mxu1 %v430_v14 }
 0x258   :  { %3893 = vst [vmem:[#allocation7 + $0x560] sm:$0xff] %v1166_v17  ;;  %4405 = vst [vmem:[#allocation7 + $0x1560] sm:$0xff] %v2702_v18  ;;  %1458 = vmatprep.mubr.f32.mxu0 %v4875_v0  ;;  %2994 = vmatprep.mubr.f32.mxu1 %v4875_v0  ;;  %v441_v17 = vld [vmem:[#allocation2 + $0xc88] sm:$0xff] }
 0x259   :  { %v1168_v21 = vpop.f32.mrf.mxu0  ;;  %v2704_v22 = vpop.f32.mrf.mxu1 }
 0x25a   :  { %3894 = vst [vmem:[#allocation7 + $0x568] sm:$0xff] %v1168_v21  ;;  %4406 = vst [vmem:[#allocation7 + $0x1568] sm:$0xff] %v2704_v22  ;;  %v186_v22 = vld [vmem:[#allocation2 + $0x490] sm:$0xff] }
 0x25b   :  { %v1172_v23 = vpop.f32.mrf.mxu0  ;;  %1459 = vmatmul.mubr.f32.gmra.mxu0 %v175_v19  ;;  %v2708_v24 = vpop.f32.mrf.mxu1  ;;  %2995 = vmatmul.mubr.f32.gmra.mxu1 %v431_v20 }
 0x25c   :  { %3895 = vst [vmem:[#allocation7 + $0x570] sm:$0xff] %v1172_v23  ;;  %4407 = vst [vmem:[#allocation7 + $0x1570] sm:$0xff] %v2708_v24  ;;  %1464 = vmatprep.mubr.f32.mxu0 %v4875_v0  ;;  %3000 = vmatprep.mubr.f32.mxu1 %v4875_v0  ;;  %v442_v23 = vld [vmem:[#allocation2 + $0xc90] sm:$0xff] }
 0x25d   :  { %v1174_v27 = vpop.f32.mrf.mxu0  ;;  %v2710_v28 = vpop.f32.mrf.mxu1 }
 0x25e   :  { %3896 = vst [vmem:[#allocation7 + $0x578] sm:$0xff] %v1174_v27  ;;  %4408 = vst [vmem:[#allocation7 + $0x1578] sm:$0xff] %v2710_v28  ;;  %v187_v28 = vld [vmem:[#allocation2 + $0x498] sm:$0xff] }
 0x25f   :  { %v1178_v29 = vpop.f32.mrf.mxu0  ;;  %1465 = vmatmul.mubr.f32.gmra.mxu0 %v176_v25  ;;  %v2714_v30 = vpop.f32.mrf.mxu1  ;;  %3001 = vmatmul.mubr.f32.gmra.mxu1 %v432_v26 }
 0x260   :  { %3897 = vst [vmem:[#allocation7 + $0x580] sm:$0xff] %v1178_v29  ;;  %4409 = vst [vmem:[#allocation7 + $0x1580] sm:$0xff] %v2714_v30  ;;  %1470 = vmatprep.mubr.f32.mxu0 %v4875_v0  ;;  %3006 = vmatprep.mubr.f32.mxu1 %v4875_v0  ;;  %v443_v29 = vld [vmem:[#allocation2 + $0xc98] sm:$0xff] }
 0x261   :  { %v1180_v33 = vpop.f32.mrf.mxu0  ;;  %v2716_v34 = vpop.f32.mrf.mxu1 }
 0x262   :  { %3898 = vst [vmem:[#allocation7 + $0x588] sm:$0xff] %v1180_v33  ;;  %4410 = vst [vmem:[#allocation7 + $0x1588] sm:$0xff] %v2716_v34  ;;  %v188_v34 = vld [vmem:[#allocation2 + $0x4a0] sm:$0xff] }
 0x263   :  { %v1184_v35 = vpop.f32.mrf.mxu0  ;;  %1471 = vmatmul.mubr.f32.gmra.mxu0 %v177_v31  ;;  %v2720_v36 = vpop.f32.mrf.mxu1  ;;  %3007 = vmatmul.mubr.f32.gmra.mxu1 %v433_v32 }
 0x264   :  { %3899 = vst [vmem:[#allocation7 + $0x590] sm:$0xff] %v1184_v35  ;;  %4411 = vst [vmem:[#allocation7 + $0x1590] sm:$0xff] %v2720_v36  ;;  %1476 = vmatprep.mubr.f32.mxu0 %v4875_v0  ;;  %3012 = vmatprep.mubr.f32.mxu1 %v4875_v0  ;;  %v444_v35 = vld [vmem:[#allocation2 + $0xca0] sm:$0xff] }
 0x265   :  { %v1186_v39 = vpop.f32.mrf.mxu0  ;;  %v2722_v40 = vpop.f32.mrf.mxu1 }
 0x266   :  { %3900 = vst [vmem:[#allocation7 + $0x598] sm:$0xff] %v1186_v39  ;;  %4412 = vst [vmem:[#allocation7 + $0x1598] sm:$0xff] %v2722_v40  ;;  %v189_v40 = vld [vmem:[#allocation2 + $0x4a8] sm:$0xff] }
 0x267   :  { %v1190_v41 = vpop.f32.mrf.mxu0  ;;  %1477 = vmatmul.mubr.f32.gmra.mxu0 %v178_v37  ;;  %v2726_v42 = vpop.f32.mrf.mxu1  ;;  %3013 = vmatmul.mubr.f32.gmra.mxu1 %v434_v38 }
 0x268   :  { %3901 = vst [vmem:[#allocation7 + $0x5a0] sm:$0xff] %v1190_v41  ;;  %4413 = vst [vmem:[#allocation7 + $0x15a0] sm:$0xff] %v2726_v42  ;;  %1482 = vmatprep.mubr.f32.mxu0 %v4875_v0  ;;  %3018 = vmatprep.mubr.f32.mxu1 %v4875_v0  ;;  %v445_v41 = vld [vmem:[#allocation2 + $0xca8] sm:$0xff] }
 0x269   :  { %v1192_v45 = vpop.f32.mrf.mxu0  ;;  %v2728_v46 = vpop.f32.mrf.mxu1 }
 0x26a   :  { %3902 = vst [vmem:[#allocation7 + $0x5a8] sm:$0xff] %v1192_v45  ;;  %4414 = vst [vmem:[#allocation7 + $0x15a8] sm:$0xff] %v2728_v46  ;;  %v190_v46 = vld [vmem:[#allocation2 + $0x4b0] sm:$0xff] }
 0x26b   :  { %v1196_v47 = vpop.f32.mrf.mxu0  ;;  %1483 = vmatmul.mubr.f32.gmra.mxu0 %v179_v43  ;;  %v2732_v48 = vpop.f32.mrf.mxu1  ;;  %3019 = vmatmul.mubr.f32.gmra.mxu1 %v435_v44 }
 0x26c   :  { %3903 = vst [vmem:[#allocation7 + $0x5b0] sm:$0xff] %v1196_v47  ;;  %4415 = vst [vmem:[#allocation7 + $0x15b0] sm:$0xff] %v2732_v48  ;;  %1488 = vmatprep.mubr.f32.mxu0 %v4875_v0  ;;  %3024 = vmatprep.mubr.f32.mxu1 %v4875_v0  ;;  %v446_v47 = vld [vmem:[#allocation2 + $0xcb0] sm:$0xff] }
 0x26d   :  { %v1198_v51 = vpop.f32.mrf.mxu0  ;;  %v2734_v52 = vpop.f32.mrf.mxu1 }
 0x26e   :  { %3904 = vst [vmem:[#allocation7 + $0x5b8] sm:$0xff] %v1198_v51  ;;  %4416 = vst [vmem:[#allocation7 + $0x15b8] sm:$0xff] %v2734_v52  ;;  %v191_v52 = vld [vmem:[#allocation2 + $0x4b8] sm:$0xff] }
 0x26f   :  { %v1202_v53 = vpop.f32.mrf.mxu0  ;;  %1489 = vmatmul.mubr.f32.gmra.mxu0 %v180_v49  ;;  %v2738_v54 = vpop.f32.mrf.mxu1  ;;  %3025 = vmatmul.mubr.f32.gmra.mxu1 %v436_v50 }
 0x270   :  { %3905 = vst [vmem:[#allocation7 + $0x5c0] sm:$0xff] %v1202_v53  ;;  %4417 = vst [vmem:[#allocation7 + $0x15c0] sm:$0xff] %v2738_v54  ;;  %1494 = vmatprep.mubr.f32.mxu0 %v4875_v0  ;;  %3030 = vmatprep.mubr.f32.mxu1 %v4875_v0  ;;  %v447_v53 = vld [vmem:[#allocation2 + $0xcb8] sm:$0xff] }
 0x271   :  { %v1204_v57 = vpop.f32.mrf.mxu0  ;;  %v2740_v58 = vpop.f32.mrf.mxu1 }
 0x272   :  { %3906 = vst [vmem:[#allocation7 + $0x5c8] sm:$0xff] %v1204_v57  ;;  %4418 = vst [vmem:[#allocation7 + $0x15c8] sm:$0xff] %v2740_v58  ;;  %v192_v58 = vld [vmem:[#allocation2 + $0x4c0] sm:$0xff] }
 0x273   :  { %v1208_v59 = vpop.f32.mrf.mxu0  ;;  %1495 = vmatmul.mubr.f32.gmra.mxu0 %v181_v55  ;;  %v2744_v60 = vpop.f32.mrf.mxu1  ;;  %3031 = vmatmul.mubr.f32.gmra.mxu1 %v437_v56 }
 0x274   :  { %3907 = vst [vmem:[#allocation7 + $0x5d0] sm:$0xff] %v1208_v59  ;;  %4419 = vst [vmem:[#allocation7 + $0x15d0] sm:$0xff] %v2744_v60  ;;  %1500 = vmatprep.mubr.f32.mxu0 %v4875_v0  ;;  %3036 = vmatprep.mubr.f32.mxu1 %v4875_v0  ;;  %v448_v59 = vld [vmem:[#allocation2 + $0xcc0] sm:$0xff] }
 0x275   :  { %v1210_v63 = vpop.f32.mrf.mxu0  ;;  %v2746_v1 = vpop.f32.mrf.mxu1 }
 0x276   :  { %3908 = vst [vmem:[#allocation7 + $0x5d8] sm:$0xff] %v1210_v63  ;;  %4420 = vst [vmem:[#allocation7 + $0x15d8] sm:$0xff] %v2746_v1  ;;  %v193_v1 = vld [vmem:[#allocation2 + $0x4c8] sm:$0xff] }
 0x277   :  { %v1214_v2 = vpop.f32.mrf.mxu0  ;;  %1501 = vmatmul.mubr.f32.gmra.mxu0 %v182_v61  ;;  %v2750_v3 = vpop.f32.mrf.mxu1  ;;  %3037 = vmatmul.mubr.f32.gmra.mxu1 %v438_v62 }
 0x278   :  { %3909 = vst [vmem:[#allocation7 + $0x5e0] sm:$0xff] %v1214_v2  ;;  %4421 = vst [vmem:[#allocation7 + $0x15e0] sm:$0xff] %v2750_v3  ;;  %1506 = vmatprep.mubr.f32.mxu0 %v4875_v0  ;;  %3042 = vmatprep.mubr.f32.mxu1 %v4875_v0  ;;  %v449_v2 = vld [vmem:[#allocation2 + $0xcc8] sm:$0xff] }
 0x279   :  { %v1216_v6 = vpop.f32.mrf.mxu0  ;;  %v2752_v7 = vpop.f32.mrf.mxu1 }
 0x27a   :  { %3910 = vst [vmem:[#allocation7 + $0x5e8] sm:$0xff] %v1216_v6  ;;  %4422 = vst [vmem:[#allocation7 + $0x15e8] sm:$0xff] %v2752_v7  ;;  %v194_v7 = vld [vmem:[#allocation2 + $0x4d0] sm:$0xff] }
 0x27b   :  { %v1220_v8 = vpop.f32.mrf.mxu0  ;;  %1507 = vmatmul.mubr.f32.gmra.mxu0 %v183_v4  ;;  %v2756_v9 = vpop.f32.mrf.mxu1  ;;  %3043 = vmatmul.mubr.f32.gmra.mxu1 %v439_v5 }
 0x27c   :  { %3911 = vst [vmem:[#allocation7 + $0x5f0] sm:$0xff] %v1220_v8  ;;  %4423 = vst [vmem:[#allocation7 + $0x15f0] sm:$0xff] %v2756_v9  ;;  %1512 = vmatprep.mubr.f32.mxu0 %v4875_v0  ;;  %3048 = vmatprep.mubr.f32.mxu1 %v4875_v0  ;;  %v450_v8 = vld [vmem:[#allocation2 + $0xcd0] sm:$0xff] }
 0x27d   :  { %v1222_v12 = vpop.f32.mrf.mxu0  ;;  %v2758_v13 = vpop.f32.mrf.mxu1 }
 0x27e   :  { %3912 = vst [vmem:[#allocation7 + $0x5f8] sm:$0xff] %v1222_v12  ;;  %4424 = vst [vmem:[#allocation7 + $0x15f8] sm:$0xff] %v2758_v13  ;;  %v195_v13 = vld [vmem:[#allocation2 + $0x4d8] sm:$0xff] }
 0x27f   :  { %v1226_v14 = vpop.f32.mrf.mxu0  ;;  %1513 = vmatmul.mubr.f32.gmra.mxu0 %v184_v10  ;;  %v2762_v15 = vpop.f32.mrf.mxu1  ;;  %3049 = vmatmul.mubr.f32.gmra.mxu1 %v440_v11 }
 0x280   :  { %3913 = vst [vmem:[#allocation7 + $0x600] sm:$0xff] %v1226_v14  ;;  %4425 = vst [vmem:[#allocation7 + $0x1600] sm:$0xff] %v2762_v15  ;;  %1518 = vmatprep.mubr.f32.mxu0 %v4875_v0  ;;  %3054 = vmatprep.mubr.f32.mxu1 %v4875_v0  ;;  %v451_v14 = vld [vmem:[#allocation2 + $0xcd8] sm:$0xff] }
 0x281   :  { %v1228_v18 = vpop.f32.mrf.mxu0  ;;  %v2764_v19 = vpop.f32.mrf.mxu1 }
 0x282   :  { %3914 = vst [vmem:[#allocation7 + $0x608] sm:$0xff] %v1228_v18  ;;  %4426 = vst [vmem:[#allocation7 + $0x1608] sm:$0xff] %v2764_v19  ;;  %v196_v19 = vld [vmem:[#allocation2 + $0x4e0] sm:$0xff] }
 0x283   :  { %v1232_v20 = vpop.f32.mrf.mxu0  ;;  %1519 = vmatmul.mubr.f32.gmra.mxu0 %v185_v16  ;;  %v2768_v21 = vpop.f32.mrf.mxu1  ;;  %3055 = vmatmul.mubr.f32.gmra.mxu1 %v441_v17 }
 0x284   :  { %3915 = vst [vmem:[#allocation7 + $0x610] sm:$0xff] %v1232_v20  ;;  %4427 = vst [vmem:[#allocation7 + $0x1610] sm:$0xff] %v2768_v21  ;;  %1524 = vmatprep.mubr.f32.mxu0 %v4875_v0  ;;  %3060 = vmatprep.mubr.f32.mxu1 %v4875_v0  ;;  %v452_v20 = vld [vmem:[#allocation2 + $0xce0] sm:$0xff] }
 0x285   :  { %v1234_v24 = vpop.f32.mrf.mxu0  ;;  %v2770_v25 = vpop.f32.mrf.mxu1 }
 0x286   :  { %3916 = vst [vmem:[#allocation7 + $0x618] sm:$0xff] %v1234_v24  ;;  %4428 = vst [vmem:[#allocation7 + $0x1618] sm:$0xff] %v2770_v25  ;;  %v197_v25 = vld [vmem:[#allocation2 + $0x4e8] sm:$0xff] }
 0x287   :  { %v1238_v26 = vpop.f32.mrf.mxu0  ;;  %1525 = vmatmul.mubr.f32.gmra.mxu0 %v186_v22  ;;  %v2774_v27 = vpop.f32.mrf.mxu1  ;;  %3061 = vmatmul.mubr.f32.gmra.mxu1 %v442_v23 }
 0x288   :  { %3917 = vst [vmem:[#allocation7 + $0x620] sm:$0xff] %v1238_v26  ;;  %4429 = vst [vmem:[#allocation7 + $0x1620] sm:$0xff] %v2774_v27  ;;  %1530 = vmatprep.mubr.f32.mxu0 %v4875_v0  ;;  %3066 = vmatprep.mubr.f32.mxu1 %v4875_v0  ;;  %v453_v26 = vld [vmem:[#allocation2 + $0xce8] sm:$0xff] }
 0x289   :  { %v1240_v30 = vpop.f32.mrf.mxu0  ;;  %v2776_v31 = vpop.f32.mrf.mxu1 }
 0x28a   :  { %3918 = vst [vmem:[#allocation7 + $0x628] sm:$0xff] %v1240_v30  ;;  %4430 = vst [vmem:[#allocation7 + $0x1628] sm:$0xff] %v2776_v31  ;;  %v198_v31 = vld [vmem:[#allocation2 + $0x4f0] sm:$0xff] }
 0x28b   :  { %v1244_v32 = vpop.f32.mrf.mxu0  ;;  %1531 = vmatmul.mubr.f32.gmra.mxu0 %v187_v28  ;;  %v2780_v33 = vpop.f32.mrf.mxu1  ;;  %3067 = vmatmul.mubr.f32.gmra.mxu1 %v443_v29 }
 0x28c   :  { %3919 = vst [vmem:[#allocation7 + $0x630] sm:$0xff] %v1244_v32  ;;  %4431 = vst [vmem:[#allocation7 + $0x1630] sm:$0xff] %v2780_v33  ;;  %1536 = vmatprep.mubr.f32.mxu0 %v4875_v0  ;;  %3072 = vmatprep.mubr.f32.mxu1 %v4875_v0  ;;  %v454_v32 = vld [vmem:[#allocation2 + $0xcf0] sm:$0xff] }
 0x28d   :  { %v1246_v36 = vpop.f32.mrf.mxu0  ;;  %v2782_v37 = vpop.f32.mrf.mxu1 }
 0x28e   :  { %3920 = vst [vmem:[#allocation7 + $0x638] sm:$0xff] %v1246_v36  ;;  %4432 = vst [vmem:[#allocation7 + $0x1638] sm:$0xff] %v2782_v37  ;;  %v199_v37 = vld [vmem:[#allocation2 + $0x4f8] sm:$0xff] }
 0x28f   :  { %v1250_v38 = vpop.f32.mrf.mxu0  ;;  %1537 = vmatmul.mubr.f32.gmra.mxu0 %v188_v34  ;;  %v2786_v39 = vpop.f32.mrf.mxu1  ;;  %3073 = vmatmul.mubr.f32.gmra.mxu1 %v444_v35 }
 0x290   :  { %3921 = vst [vmem:[#allocation7 + $0x640] sm:$0xff] %v1250_v38  ;;  %4433 = vst [vmem:[#allocation7 + $0x1640] sm:$0xff] %v2786_v39  ;;  %1542 = vmatprep.mubr.f32.mxu0 %v4875_v0  ;;  %3078 = vmatprep.mubr.f32.mxu1 %v4875_v0  ;;  %v455_v38 = vld [vmem:[#allocation2 + $0xcf8] sm:$0xff] }
 0x291   :  { %v1252_v42 = vpop.f32.mrf.mxu0  ;;  %v2788_v43 = vpop.f32.mrf.mxu1 }
 0x292   :  { %3922 = vst [vmem:[#allocation7 + $0x648] sm:$0xff] %v1252_v42  ;;  %4434 = vst [vmem:[#allocation7 + $0x1648] sm:$0xff] %v2788_v43  ;;  %v200_v43 = vld [vmem:[#allocation2 + $0x500] sm:$0xff] }
 0x293   :  { %v1256_v44 = vpop.f32.mrf.mxu0  ;;  %1543 = vmatmul.mubr.f32.gmra.mxu0 %v189_v40  ;;  %v2792_v45 = vpop.f32.mrf.mxu1  ;;  %3079 = vmatmul.mubr.f32.gmra.mxu1 %v445_v41 }
 0x294   :  { %3923 = vst [vmem:[#allocation7 + $0x650] sm:$0xff] %v1256_v44  ;;  %4435 = vst [vmem:[#allocation7 + $0x1650] sm:$0xff] %v2792_v45  ;;  %1548 = vmatprep.mubr.f32.mxu0 %v4875_v0  ;;  %3084 = vmatprep.mubr.f32.mxu1 %v4875_v0  ;;  %v456_v44 = vld [vmem:[#allocation2 + $0xd00] sm:$0xff] }
 0x295   :  { %v1258_v48 = vpop.f32.mrf.mxu0  ;;  %v2794_v49 = vpop.f32.mrf.mxu1 }
 0x296   :  { %3924 = vst [vmem:[#allocation7 + $0x658] sm:$0xff] %v1258_v48  ;;  %4436 = vst [vmem:[#allocation7 + $0x1658] sm:$0xff] %v2794_v49  ;;  %v201_v49 = vld [vmem:[#allocation2 + $0x508] sm:$0xff] }
 0x297   :  { %v1262_v50 = vpop.f32.mrf.mxu0  ;;  %1549 = vmatmul.mubr.f32.gmra.mxu0 %v190_v46  ;;  %v2798_v51 = vpop.f32.mrf.mxu1  ;;  %3085 = vmatmul.mubr.f32.gmra.mxu1 %v446_v47 }
 0x298   :  { %3925 = vst [vmem:[#allocation7 + $0x660] sm:$0xff] %v1262_v50  ;;  %4437 = vst [vmem:[#allocation7 + $0x1660] sm:$0xff] %v2798_v51  ;;  %1554 = vmatprep.mubr.f32.mxu0 %v4875_v0  ;;  %3090 = vmatprep.mubr.f32.mxu1 %v4875_v0  ;;  %v457_v50 = vld [vmem:[#allocation2 + $0xd08] sm:$0xff] }
 0x299   :  { %v1264_v54 = vpop.f32.mrf.mxu0  ;;  %v2800_v55 = vpop.f32.mrf.mxu1 }
 0x29a   :  { %3926 = vst [vmem:[#allocation7 + $0x668] sm:$0xff] %v1264_v54  ;;  %4438 = vst [vmem:[#allocation7 + $0x1668] sm:$0xff] %v2800_v55  ;;  %v202_v55 = vld [vmem:[#allocation2 + $0x510] sm:$0xff] }
 0x29b   :  { %v1268_v56 = vpop.f32.mrf.mxu0  ;;  %1555 = vmatmul.mubr.f32.gmra.mxu0 %v191_v52  ;;  %v2804_v57 = vpop.f32.mrf.mxu1  ;;  %3091 = vmatmul.mubr.f32.gmra.mxu1 %v447_v53 }
 0x29c   :  { %3927 = vst [vmem:[#allocation7 + $0x670] sm:$0xff] %v1268_v56  ;;  %4439 = vst [vmem:[#allocation7 + $0x1670] sm:$0xff] %v2804_v57  ;;  %1560 = vmatprep.mubr.f32.mxu0 %v4875_v0  ;;  %3096 = vmatprep.mubr.f32.mxu1 %v4875_v0  ;;  %v458_v56 = vld [vmem:[#allocation2 + $0xd10] sm:$0xff] }
 0x29d   :  { %v1270_v60 = vpop.f32.mrf.mxu0  ;;  %v2806_v61 = vpop.f32.mrf.mxu1 }
 0x29e   :  { %3928 = vst [vmem:[#allocation7 + $0x678] sm:$0xff] %v1270_v60  ;;  %4440 = vst [vmem:[#allocation7 + $0x1678] sm:$0xff] %v2806_v61  ;;  %v203_v61 = vld [vmem:[#allocation2 + $0x518] sm:$0xff] }
 0x29f   :  { %v1274_v62 = vpop.f32.mrf.mxu0  ;;  %1561 = vmatmul.mubr.f32.gmra.mxu0 %v192_v58  ;;  %v2810_v63 = vpop.f32.mrf.mxu1  ;;  %3097 = vmatmul.mubr.f32.gmra.mxu1 %v448_v59 }
 0x2a0   :  { %3929 = vst [vmem:[#allocation7 + $0x680] sm:$0xff] %v1274_v62  ;;  %4441 = vst [vmem:[#allocation7 + $0x1680] sm:$0xff] %v2810_v63  ;;  %1566 = vmatprep.mubr.f32.mxu0 %v4875_v0  ;;  %3102 = vmatprep.mubr.f32.mxu1 %v4875_v0  ;;  %v459_v62 = vld [vmem:[#allocation2 + $0xd18] sm:$0xff] }
 0x2a1   :  { %v1276_v3 = vpop.f32.mrf.mxu0  ;;  %v2812_v4 = vpop.f32.mrf.mxu1 }
 0x2a2   :  { %3930 = vst [vmem:[#allocation7 + $0x688] sm:$0xff] %v1276_v3  ;;  %4442 = vst [vmem:[#allocation7 + $0x1688] sm:$0xff] %v2812_v4  ;;  %v204_v4 = vld [vmem:[#allocation2 + $0x520] sm:$0xff] }
 0x2a3   :  { %v1280_v5 = vpop.f32.mrf.mxu0  ;;  %1567 = vmatmul.mubr.f32.gmra.mxu0 %v193_v1  ;;  %v2816_v6 = vpop.f32.mrf.mxu1  ;;  %3103 = vmatmul.mubr.f32.gmra.mxu1 %v449_v2 }
 0x2a4   :  { %3931 = vst [vmem:[#allocation7 + $0x690] sm:$0xff] %v1280_v5  ;;  %4443 = vst [vmem:[#allocation7 + $0x1690] sm:$0xff] %v2816_v6  ;;  %1572 = vmatprep.mubr.f32.mxu0 %v4875_v0  ;;  %3108 = vmatprep.mubr.f32.mxu1 %v4875_v0  ;;  %v460_v5 = vld [vmem:[#allocation2 + $0xd20] sm:$0xff] }
 0x2a5   :  { %v1282_v9 = vpop.f32.mrf.mxu0  ;;  %v2818_v10 = vpop.f32.mrf.mxu1 }
 0x2a6   :  { %3932 = vst [vmem:[#allocation7 + $0x698] sm:$0xff] %v1282_v9  ;;  %4444 = vst [vmem:[#allocation7 + $0x1698] sm:$0xff] %v2818_v10  ;;  %v205_v10 = vld [vmem:[#allocation2 + $0x528] sm:$0xff] }
 0x2a7   :  { %v1286_v11 = vpop.f32.mrf.mxu0  ;;  %1573 = vmatmul.mubr.f32.gmra.mxu0 %v194_v7  ;;  %v2822_v12 = vpop.f32.mrf.mxu1  ;;  %3109 = vmatmul.mubr.f32.gmra.mxu1 %v450_v8 }
 0x2a8   :  { %3933 = vst [vmem:[#allocation7 + $0x6a0] sm:$0xff] %v1286_v11  ;;  %4445 = vst [vmem:[#allocation7 + $0x16a0] sm:$0xff] %v2822_v12  ;;  %1578 = vmatprep.mubr.f32.mxu0 %v4875_v0  ;;  %3114 = vmatprep.mubr.f32.mxu1 %v4875_v0  ;;  %v461_v11 = vld [vmem:[#allocation2 + $0xd28] sm:$0xff] }
 0x2a9   :  { %v1288_v15 = vpop.f32.mrf.mxu0  ;;  %v2824_v16 = vpop.f32.mrf.mxu1 }
 0x2aa   :  { %3934 = vst [vmem:[#allocation7 + $0x6a8] sm:$0xff] %v1288_v15  ;;  %4446 = vst [vmem:[#allocation7 + $0x16a8] sm:$0xff] %v2824_v16  ;;  %v206_v16 = vld [vmem:[#allocation2 + $0x530] sm:$0xff] }
 0x2ab   :  { %v1292_v17 = vpop.f32.mrf.mxu0  ;;  %1579 = vmatmul.mubr.f32.gmra.mxu0 %v195_v13  ;;  %v2828_v18 = vpop.f32.mrf.mxu1  ;;  %3115 = vmatmul.mubr.f32.gmra.mxu1 %v451_v14 }
 0x2ac   :  { %3935 = vst [vmem:[#allocation7 + $0x6b0] sm:$0xff] %v1292_v17  ;;  %4447 = vst [vmem:[#allocation7 + $0x16b0] sm:$0xff] %v2828_v18  ;;  %1584 = vmatprep.mubr.f32.mxu0 %v4875_v0  ;;  %3120 = vmatprep.mubr.f32.mxu1 %v4875_v0  ;;  %v462_v17 = vld [vmem:[#allocation2 + $0xd30] sm:$0xff] }
 0x2ad   :  { %v1294_v21 = vpop.f32.mrf.mxu0  ;;  %v2830_v22 = vpop.f32.mrf.mxu1 }
 0x2ae   :  { %3936 = vst [vmem:[#allocation7 + $0x6b8] sm:$0xff] %v1294_v21  ;;  %4448 = vst [vmem:[#allocation7 + $0x16b8] sm:$0xff] %v2830_v22  ;;  %v207_v22 = vld [vmem:[#allocation2 + $0x538] sm:$0xff] }
 0x2af   :  { %v1298_v23 = vpop.f32.mrf.mxu0  ;;  %1585 = vmatmul.mubr.f32.gmra.mxu0 %v196_v19  ;;  %v2834_v24 = vpop.f32.mrf.mxu1  ;;  %3121 = vmatmul.mubr.f32.gmra.mxu1 %v452_v20 }
 0x2b0   :  { %3937 = vst [vmem:[#allocation7 + $0x6c0] sm:$0xff] %v1298_v23  ;;  %4449 = vst [vmem:[#allocation7 + $0x16c0] sm:$0xff] %v2834_v24  ;;  %1590 = vmatprep.mubr.f32.mxu0 %v4875_v0  ;;  %3126 = vmatprep.mubr.f32.mxu1 %v4875_v0  ;;  %v463_v23 = vld [vmem:[#allocation2 + $0xd38] sm:$0xff] }
 0x2b1   :  { %v1300_v27 = vpop.f32.mrf.mxu0  ;;  %v2836_v28 = vpop.f32.mrf.mxu1 }
 0x2b2   :  { %3938 = vst [vmem:[#allocation7 + $0x6c8] sm:$0xff] %v1300_v27  ;;  %4450 = vst [vmem:[#allocation7 + $0x16c8] sm:$0xff] %v2836_v28  ;;  %v208_v28 = vld [vmem:[#allocation2 + $0x540] sm:$0xff] }
 0x2b3   :  { %v1304_v29 = vpop.f32.mrf.mxu0  ;;  %1591 = vmatmul.mubr.f32.gmra.mxu0 %v197_v25  ;;  %v2840_v30 = vpop.f32.mrf.mxu1  ;;  %3127 = vmatmul.mubr.f32.gmra.mxu1 %v453_v26 }
 0x2b4   :  { %3939 = vst [vmem:[#allocation7 + $0x6d0] sm:$0xff] %v1304_v29  ;;  %4451 = vst [vmem:[#allocation7 + $0x16d0] sm:$0xff] %v2840_v30  ;;  %1596 = vmatprep.mubr.f32.mxu0 %v4875_v0  ;;  %3132 = vmatprep.mubr.f32.mxu1 %v4875_v0  ;;  %v464_v29 = vld [vmem:[#allocation2 + $0xd40] sm:$0xff] }
 0x2b5   :  { %v1306_v33 = vpop.f32.mrf.mxu0  ;;  %v2842_v34 = vpop.f32.mrf.mxu1 }
 0x2b6   :  { %3940 = vst [vmem:[#allocation7 + $0x6d8] sm:$0xff] %v1306_v33  ;;  %4452 = vst [vmem:[#allocation7 + $0x16d8] sm:$0xff] %v2842_v34  ;;  %v209_v34 = vld [vmem:[#allocation2 + $0x548] sm:$0xff] }
 0x2b7   :  { %v1310_v35 = vpop.f32.mrf.mxu0  ;;  %1597 = vmatmul.mubr.f32.gmra.mxu0 %v198_v31  ;;  %v2846_v36 = vpop.f32.mrf.mxu1  ;;  %3133 = vmatmul.mubr.f32.gmra.mxu1 %v454_v32 }
 0x2b8   :  { %3941 = vst [vmem:[#allocation7 + $0x6e0] sm:$0xff] %v1310_v35  ;;  %4453 = vst [vmem:[#allocation7 + $0x16e0] sm:$0xff] %v2846_v36  ;;  %1602 = vmatprep.mubr.f32.mxu0 %v4875_v0  ;;  %3138 = vmatprep.mubr.f32.mxu1 %v4875_v0  ;;  %v465_v35 = vld [vmem:[#allocation2 + $0xd48] sm:$0xff] }
 0x2b9   :  { %v1312_v39 = vpop.f32.mrf.mxu0  ;;  %v2848_v40 = vpop.f32.mrf.mxu1 }
 0x2ba   :  { %3942 = vst [vmem:[#allocation7 + $0x6e8] sm:$0xff] %v1312_v39  ;;  %4454 = vst [vmem:[#allocation7 + $0x16e8] sm:$0xff] %v2848_v40  ;;  %v210_v40 = vld [vmem:[#allocation2 + $0x550] sm:$0xff] }
 0x2bb   :  { %v1316_v41 = vpop.f32.mrf.mxu0  ;;  %1603 = vmatmul.mubr.f32.gmra.mxu0 %v199_v37  ;;  %v2852_v42 = vpop.f32.mrf.mxu1  ;;  %3139 = vmatmul.mubr.f32.gmra.mxu1 %v455_v38 }
 0x2bc   :  { %3943 = vst [vmem:[#allocation7 + $0x6f0] sm:$0xff] %v1316_v41  ;;  %4455 = vst [vmem:[#allocation7 + $0x16f0] sm:$0xff] %v2852_v42  ;;  %1608 = vmatprep.mubr.f32.mxu0 %v4875_v0  ;;  %3144 = vmatprep.mubr.f32.mxu1 %v4875_v0  ;;  %v466_v41 = vld [vmem:[#allocation2 + $0xd50] sm:$0xff] }
 0x2bd   :  { %v1318_v45 = vpop.f32.mrf.mxu0  ;;  %v2854_v46 = vpop.f32.mrf.mxu1 }
 0x2be   :  { %3944 = vst [vmem:[#allocation7 + $0x6f8] sm:$0xff] %v1318_v45  ;;  %4456 = vst [vmem:[#allocation7 + $0x16f8] sm:$0xff] %v2854_v46  ;;  %v211_v46 = vld [vmem:[#allocation2 + $0x558] sm:$0xff] }
 0x2bf   :  { %v1322_v47 = vpop.f32.mrf.mxu0  ;;  %1609 = vmatmul.mubr.f32.gmra.mxu0 %v200_v43  ;;  %v2858_v48 = vpop.f32.mrf.mxu1  ;;  %3145 = vmatmul.mubr.f32.gmra.mxu1 %v456_v44 }
 0x2c0   :  { %3945 = vst [vmem:[#allocation7 + $0x700] sm:$0xff] %v1322_v47  ;;  %4457 = vst [vmem:[#allocation7 + $0x1700] sm:$0xff] %v2858_v48  ;;  %1614 = vmatprep.mubr.f32.mxu0 %v4875_v0  ;;  %3150 = vmatprep.mubr.f32.mxu1 %v4875_v0  ;;  %v467_v47 = vld [vmem:[#allocation2 + $0xd58] sm:$0xff] }
 0x2c1   :  { %v1324_v51 = vpop.f32.mrf.mxu0  ;;  %v2860_v52 = vpop.f32.mrf.mxu1 }
 0x2c2   :  { %3946 = vst [vmem:[#allocation7 + $0x708] sm:$0xff] %v1324_v51  ;;  %4458 = vst [vmem:[#allocation7 + $0x1708] sm:$0xff] %v2860_v52  ;;  %v212_v52 = vld [vmem:[#allocation2 + $0x560] sm:$0xff] }
 0x2c3   :  { %v1328_v53 = vpop.f32.mrf.mxu0  ;;  %1615 = vmatmul.mubr.f32.gmra.mxu0 %v201_v49  ;;  %v2864_v54 = vpop.f32.mrf.mxu1  ;;  %3151 = vmatmul.mubr.f32.gmra.mxu1 %v457_v50 }
 0x2c4   :  { %3947 = vst [vmem:[#allocation7 + $0x710] sm:$0xff] %v1328_v53  ;;  %4459 = vst [vmem:[#allocation7 + $0x1710] sm:$0xff] %v2864_v54  ;;  %1620 = vmatprep.mubr.f32.mxu0 %v4875_v0  ;;  %3156 = vmatprep.mubr.f32.mxu1 %v4875_v0  ;;  %v468_v53 = vld [vmem:[#allocation2 + $0xd60] sm:$0xff] }
 0x2c5   :  { %v1330_v57 = vpop.f32.mrf.mxu0  ;;  %v2866_v58 = vpop.f32.mrf.mxu1 }
 0x2c6   :  { %3948 = vst [vmem:[#allocation7 + $0x718] sm:$0xff] %v1330_v57  ;;  %4460 = vst [vmem:[#allocation7 + $0x1718] sm:$0xff] %v2866_v58  ;;  %v213_v58 = vld [vmem:[#allocation2 + $0x568] sm:$0xff] }
 0x2c7   :  { %v1334_v59 = vpop.f32.mrf.mxu0  ;;  %1621 = vmatmul.mubr.f32.gmra.mxu0 %v202_v55  ;;  %v2870_v60 = vpop.f32.mrf.mxu1  ;;  %3157 = vmatmul.mubr.f32.gmra.mxu1 %v458_v56 }
 0x2c8   :  { %3949 = vst [vmem:[#allocation7 + $0x720] sm:$0xff] %v1334_v59  ;;  %4461 = vst [vmem:[#allocation7 + $0x1720] sm:$0xff] %v2870_v60  ;;  %1626 = vmatprep.mubr.f32.mxu0 %v4875_v0  ;;  %3162 = vmatprep.mubr.f32.mxu1 %v4875_v0  ;;  %v469_v59 = vld [vmem:[#allocation2 + $0xd68] sm:$0xff] }
 0x2c9   :  { %v1336_v63 = vpop.f32.mrf.mxu0  ;;  %v2872_v1 = vpop.f32.mrf.mxu1 }
 0x2ca   :  { %3950 = vst [vmem:[#allocation7 + $0x728] sm:$0xff] %v1336_v63  ;;  %4462 = vst [vmem:[#allocation7 + $0x1728] sm:$0xff] %v2872_v1  ;;  %v214_v1 = vld [vmem:[#allocation2 + $0x570] sm:$0xff] }
 0x2cb   :  { %v1340_v2 = vpop.f32.mrf.mxu0  ;;  %1627 = vmatmul.mubr.f32.gmra.mxu0 %v203_v61  ;;  %v2876_v3 = vpop.f32.mrf.mxu1  ;;  %3163 = vmatmul.mubr.f32.gmra.mxu1 %v459_v62 }
 0x2cc   :  { %3951 = vst [vmem:[#allocation7 + $0x730] sm:$0xff] %v1340_v2  ;;  %4463 = vst [vmem:[#allocation7 + $0x1730] sm:$0xff] %v2876_v3  ;;  %1632 = vmatprep.mubr.f32.mxu0 %v4875_v0  ;;  %3168 = vmatprep.mubr.f32.mxu1 %v4875_v0  ;;  %v470_v2 = vld [vmem:[#allocation2 + $0xd70] sm:$0xff] }
 0x2cd   :  { %v1342_v6 = vpop.f32.mrf.mxu0  ;;  %v2878_v7 = vpop.f32.mrf.mxu1 }
 0x2ce   :  { %3952 = vst [vmem:[#allocation7 + $0x738] sm:$0xff] %v1342_v6  ;;  %4464 = vst [vmem:[#allocation7 + $0x1738] sm:$0xff] %v2878_v7  ;;  %v215_v7 = vld [vmem:[#allocation2 + $0x578] sm:$0xff] }
 0x2cf   :  { %v1346_v8 = vpop.f32.mrf.mxu0  ;;  %1633 = vmatmul.mubr.f32.gmra.mxu0 %v204_v4  ;;  %v2882_v9 = vpop.f32.mrf.mxu1  ;;  %3169 = vmatmul.mubr.f32.gmra.mxu1 %v460_v5 }
 0x2d0   :  { %3953 = vst [vmem:[#allocation7 + $0x740] sm:$0xff] %v1346_v8  ;;  %4465 = vst [vmem:[#allocation7 + $0x1740] sm:$0xff] %v2882_v9  ;;  %1638 = vmatprep.mubr.f32.mxu0 %v4875_v0  ;;  %3174 = vmatprep.mubr.f32.mxu1 %v4875_v0  ;;  %v471_v8 = vld [vmem:[#allocation2 + $0xd78] sm:$0xff] }
 0x2d1   :  { %v1348_v12 = vpop.f32.mrf.mxu0  ;;  %v2884_v13 = vpop.f32.mrf.mxu1 }
 0x2d2   :  { %3954 = vst [vmem:[#allocation7 + $0x748] sm:$0xff] %v1348_v12  ;;  %4466 = vst [vmem:[#allocation7 + $0x1748] sm:$0xff] %v2884_v13  ;;  %v216_v13 = vld [vmem:[#allocation2 + $0x580] sm:$0xff] }
 0x2d3   :  { %v1352_v14 = vpop.f32.mrf.mxu0  ;;  %1639 = vmatmul.mubr.f32.gmra.mxu0 %v205_v10  ;;  %v2888_v15 = vpop.f32.mrf.mxu1  ;;  %3175 = vmatmul.mubr.f32.gmra.mxu1 %v461_v11 }
 0x2d4   :  { %3955 = vst [vmem:[#allocation7 + $0x750] sm:$0xff] %v1352_v14  ;;  %4467 = vst [vmem:[#allocation7 + $0x1750] sm:$0xff] %v2888_v15  ;;  %1644 = vmatprep.mubr.f32.mxu0 %v4875_v0  ;;  %3180 = vmatprep.mubr.f32.mxu1 %v4875_v0  ;;  %v472_v14 = vld [vmem:[#allocation2 + $0xd80] sm:$0xff] }
 0x2d5   :  { %v1354_v18 = vpop.f32.mrf.mxu0  ;;  %v2890_v19 = vpop.f32.mrf.mxu1 }
 0x2d6   :  { %3956 = vst [vmem:[#allocation7 + $0x758] sm:$0xff] %v1354_v18  ;;  %4468 = vst [vmem:[#allocation7 + $0x1758] sm:$0xff] %v2890_v19  ;;  %v217_v19 = vld [vmem:[#allocation2 + $0x588] sm:$0xff] }
 0x2d7   :  { %v1358_v20 = vpop.f32.mrf.mxu0  ;;  %1645 = vmatmul.mubr.f32.gmra.mxu0 %v206_v16  ;;  %v2894_v21 = vpop.f32.mrf.mxu1  ;;  %3181 = vmatmul.mubr.f32.gmra.mxu1 %v462_v17 }
 0x2d8   :  { %3957 = vst [vmem:[#allocation7 + $0x760] sm:$0xff] %v1358_v20  ;;  %4469 = vst [vmem:[#allocation7 + $0x1760] sm:$0xff] %v2894_v21  ;;  %1650 = vmatprep.mubr.f32.mxu0 %v4875_v0  ;;  %3186 = vmatprep.mubr.f32.mxu1 %v4875_v0  ;;  %v473_v20 = vld [vmem:[#allocation2 + $0xd88] sm:$0xff] }
 0x2d9   :  { %v1360_v24 = vpop.f32.mrf.mxu0  ;;  %v2896_v25 = vpop.f32.mrf.mxu1 }
 0x2da   :  { %3958 = vst [vmem:[#allocation7 + $0x768] sm:$0xff] %v1360_v24  ;;  %4470 = vst [vmem:[#allocation7 + $0x1768] sm:$0xff] %v2896_v25  ;;  %v218_v25 = vld [vmem:[#allocation2 + $0x590] sm:$0xff] }
 0x2db   :  { %v1364_v26 = vpop.f32.mrf.mxu0  ;;  %1651 = vmatmul.mubr.f32.gmra.mxu0 %v207_v22  ;;  %v2900_v27 = vpop.f32.mrf.mxu1  ;;  %3187 = vmatmul.mubr.f32.gmra.mxu1 %v463_v23 }
 0x2dc   :  { %3959 = vst [vmem:[#allocation7 + $0x770] sm:$0xff] %v1364_v26  ;;  %4471 = vst [vmem:[#allocation7 + $0x1770] sm:$0xff] %v2900_v27  ;;  %1656 = vmatprep.mubr.f32.mxu0 %v4875_v0  ;;  %3192 = vmatprep.mubr.f32.mxu1 %v4875_v0  ;;  %v474_v26 = vld [vmem:[#allocation2 + $0xd90] sm:$0xff] }
 0x2dd   :  { %v1366_v30 = vpop.f32.mrf.mxu0  ;;  %v2902_v31 = vpop.f32.mrf.mxu1 }
 0x2de   :  { %3960 = vst [vmem:[#allocation7 + $0x778] sm:$0xff] %v1366_v30  ;;  %4472 = vst [vmem:[#allocation7 + $0x1778] sm:$0xff] %v2902_v31  ;;  %v219_v31 = vld [vmem:[#allocation2 + $0x598] sm:$0xff] }
 0x2df   :  { %v1370_v32 = vpop.f32.mrf.mxu0  ;;  %1657 = vmatmul.mubr.f32.gmra.mxu0 %v208_v28  ;;  %v2906_v33 = vpop.f32.mrf.mxu1  ;;  %3193 = vmatmul.mubr.f32.gmra.mxu1 %v464_v29 }
 0x2e0   :  { %3961 = vst [vmem:[#allocation7 + $0x780] sm:$0xff] %v1370_v32  ;;  %4473 = vst [vmem:[#allocation7 + $0x1780] sm:$0xff] %v2906_v33  ;;  %1662 = vmatprep.mubr.f32.mxu0 %v4875_v0  ;;  %3198 = vmatprep.mubr.f32.mxu1 %v4875_v0  ;;  %v475_v32 = vld [vmem:[#allocation2 + $0xd98] sm:$0xff] }
 0x2e1   :  { %v1372_v36 = vpop.f32.mrf.mxu0  ;;  %v2908_v37 = vpop.f32.mrf.mxu1 }
 0x2e2   :  { %3962 = vst [vmem:[#allocation7 + $0x788] sm:$0xff] %v1372_v36  ;;  %4474 = vst [vmem:[#allocation7 + $0x1788] sm:$0xff] %v2908_v37  ;;  %v220_v37 = vld [vmem:[#allocation2 + $0x5a0] sm:$0xff] }
 0x2e3   :  { %v1376_v38 = vpop.f32.mrf.mxu0  ;;  %1663 = vmatmul.mubr.f32.gmra.mxu0 %v209_v34  ;;  %v2912_v39 = vpop.f32.mrf.mxu1  ;;  %3199 = vmatmul.mubr.f32.gmra.mxu1 %v465_v35 }
 0x2e4   :  { %3963 = vst [vmem:[#allocation7 + $0x790] sm:$0xff] %v1376_v38  ;;  %4475 = vst [vmem:[#allocation7 + $0x1790] sm:$0xff] %v2912_v39  ;;  %1668 = vmatprep.mubr.f32.mxu0 %v4875_v0  ;;  %3204 = vmatprep.mubr.f32.mxu1 %v4875_v0  ;;  %v476_v38 = vld [vmem:[#allocation2 + $0xda0] sm:$0xff] }
 0x2e5   :  { %v1378_v42 = vpop.f32.mrf.mxu0  ;;  %v2914_v43 = vpop.f32.mrf.mxu1 }
 0x2e6   :  { %3964 = vst [vmem:[#allocation7 + $0x798] sm:$0xff] %v1378_v42  ;;  %4476 = vst [vmem:[#allocation7 + $0x1798] sm:$0xff] %v2914_v43  ;;  %v221_v43 = vld [vmem:[#allocation2 + $0x5a8] sm:$0xff] }
 0x2e7   :  { %v1382_v44 = vpop.f32.mrf.mxu0  ;;  %1669 = vmatmul.mubr.f32.gmra.mxu0 %v210_v40  ;;  %v2918_v45 = vpop.f32.mrf.mxu1  ;;  %3205 = vmatmul.mubr.f32.gmra.mxu1 %v466_v41 }
 0x2e8   :  { %3965 = vst [vmem:[#allocation7 + $0x7a0] sm:$0xff] %v1382_v44  ;;  %4477 = vst [vmem:[#allocation7 + $0x17a0] sm:$0xff] %v2918_v45  ;;  %1674 = vmatprep.mubr.f32.mxu0 %v4875_v0  ;;  %3210 = vmatprep.mubr.f32.mxu1 %v4875_v0  ;;  %v477_v44 = vld [vmem:[#allocation2 + $0xda8] sm:$0xff] }
 0x2e9   :  { %v1384_v48 = vpop.f32.mrf.mxu0  ;;  %v2920_v49 = vpop.f32.mrf.mxu1 }
 0x2ea   :  { %3966 = vst [vmem:[#allocation7 + $0x7a8] sm:$0xff] %v1384_v48  ;;  %4478 = vst [vmem:[#allocation7 + $0x17a8] sm:$0xff] %v2920_v49  ;;  %v222_v49 = vld [vmem:[#allocation2 + $0x5b0] sm:$0xff] }
 0x2eb   :  { %v1388_v50 = vpop.f32.mrf.mxu0  ;;  %1675 = vmatmul.mubr.f32.gmra.mxu0 %v211_v46  ;;  %v2924_v51 = vpop.f32.mrf.mxu1  ;;  %3211 = vmatmul.mubr.f32.gmra.mxu1 %v467_v47 }
 0x2ec   :  { %3967 = vst [vmem:[#allocation7 + $0x7b0] sm:$0xff] %v1388_v50  ;;  %4479 = vst [vmem:[#allocation7 + $0x17b0] sm:$0xff] %v2924_v51  ;;  %1680 = vmatprep.mubr.f32.mxu0 %v4875_v0  ;;  %3216 = vmatprep.mubr.f32.mxu1 %v4875_v0  ;;  %v478_v50 = vld [vmem:[#allocation2 + $0xdb0] sm:$0xff] }
 0x2ed   :  { %v1390_v54 = vpop.f32.mrf.mxu0  ;;  %v2926_v55 = vpop.f32.mrf.mxu1 }
 0x2ee   :  { %3968 = vst [vmem:[#allocation7 + $0x7b8] sm:$0xff] %v1390_v54  ;;  %4480 = vst [vmem:[#allocation7 + $0x17b8] sm:$0xff] %v2926_v55  ;;  %v223_v55 = vld [vmem:[#allocation2 + $0x5b8] sm:$0xff] }
 0x2ef   :  { %v1394_v56 = vpop.f32.mrf.mxu0  ;;  %1681 = vmatmul.mubr.f32.gmra.mxu0 %v212_v52  ;;  %v2930_v57 = vpop.f32.mrf.mxu1  ;;  %3217 = vmatmul.mubr.f32.gmra.mxu1 %v468_v53 }
 0x2f0   :  { %3969 = vst [vmem:[#allocation7 + $0x7c0] sm:$0xff] %v1394_v56  ;;  %4481 = vst [vmem:[#allocation7 + $0x17c0] sm:$0xff] %v2930_v57  ;;  %1686 = vmatprep.mubr.f32.mxu0 %v4875_v0  ;;  %3222 = vmatprep.mubr.f32.mxu1 %v4875_v0  ;;  %v479_v56 = vld [vmem:[#allocation2 + $0xdb8] sm:$0xff] }
 0x2f1   :  { %v1396_v60 = vpop.f32.mrf.mxu0  ;;  %v2932_v61 = vpop.f32.mrf.mxu1 }
 0x2f2   :  { %3970 = vst [vmem:[#allocation7 + $0x7c8] sm:$0xff] %v1396_v60  ;;  %4482 = vst [vmem:[#allocation7 + $0x17c8] sm:$0xff] %v2932_v61  ;;  %v224_v61 = vld [vmem:[#allocation2 + $0x5c0] sm:$0xff] }
 0x2f3   :  { %v1400_v62 = vpop.f32.mrf.mxu0  ;;  %1687 = vmatmul.mubr.f32.gmra.mxu0 %v213_v58  ;;  %v2936_v63 = vpop.f32.mrf.mxu1  ;;  %3223 = vmatmul.mubr.f32.gmra.mxu1 %v469_v59 }
 0x2f4   :  { %3971 = vst [vmem:[#allocation7 + $0x7d0] sm:$0xff] %v1400_v62  ;;  %4483 = vst [vmem:[#allocation7 + $0x17d0] sm:$0xff] %v2936_v63  ;;  %1692 = vmatprep.mubr.f32.mxu0 %v4875_v0  ;;  %3228 = vmatprep.mubr.f32.mxu1 %v4875_v0  ;;  %v480_v62 = vld [vmem:[#allocation2 + $0xdc0] sm:$0xff] }
 0x2f5   :  { %v1402_v3 = vpop.f32.mrf.mxu0  ;;  %v2938_v4 = vpop.f32.mrf.mxu1 }
 0x2f6   :  { %3972 = vst [vmem:[#allocation7 + $0x7d8] sm:$0xff] %v1402_v3  ;;  %4484 = vst [vmem:[#allocation7 + $0x17d8] sm:$0xff] %v2938_v4  ;;  %v225_v4 = vld [vmem:[#allocation2 + $0x5c8] sm:$0xff] }
 0x2f7   :  { %v1406_v5 = vpop.f32.mrf.mxu0  ;;  %1693 = vmatmul.mubr.f32.gmra.mxu0 %v214_v1  ;;  %v2942_v6 = vpop.f32.mrf.mxu1  ;;  %3229 = vmatmul.mubr.f32.gmra.mxu1 %v470_v2 }
 0x2f8   :  { %3973 = vst [vmem:[#allocation7 + $0x7e0] sm:$0xff] %v1406_v5  ;;  %4485 = vst [vmem:[#allocation7 + $0x17e0] sm:$0xff] %v2942_v6  ;;  %1698 = vmatprep.mubr.f32.mxu0 %v4875_v0  ;;  %3234 = vmatprep.mubr.f32.mxu1 %v4875_v0  ;;  %v481_v5 = vld [vmem:[#allocation2 + $0xdc8] sm:$0xff] }
 0x2f9   :  { %v1408_v9 = vpop.f32.mrf.mxu0  ;;  %v2944_v10 = vpop.f32.mrf.mxu1 }
 0x2fa   :  { %3974 = vst [vmem:[#allocation7 + $0x7e8] sm:$0xff] %v1408_v9  ;;  %4486 = vst [vmem:[#allocation7 + $0x17e8] sm:$0xff] %v2944_v10  ;;  %v226_v10 = vld [vmem:[#allocation2 + $0x5d0] sm:$0xff] }
 0x2fb   :  { %v1412_v11 = vpop.f32.mrf.mxu0  ;;  %1699 = vmatmul.mubr.f32.gmra.mxu0 %v215_v7  ;;  %v2948_v12 = vpop.f32.mrf.mxu1  ;;  %3235 = vmatmul.mubr.f32.gmra.mxu1 %v471_v8 }
 0x2fc   :  { %3975 = vst [vmem:[#allocation7 + $0x7f0] sm:$0xff] %v1412_v11  ;;  %4487 = vst [vmem:[#allocation7 + $0x17f0] sm:$0xff] %v2948_v12  ;;  %1704 = vmatprep.mubr.f32.mxu0 %v4875_v0  ;;  %3240 = vmatprep.mubr.f32.mxu1 %v4875_v0  ;;  %v482_v11 = vld [vmem:[#allocation2 + $0xdd0] sm:$0xff] }
 0x2fd   :  { %v1414_v15 = vpop.f32.mrf.mxu0  ;;  %v2950_v16 = vpop.f32.mrf.mxu1 }
 0x2fe   :  { %3976 = vst [vmem:[#allocation7 + $0x7f8] sm:$0xff] %v1414_v15  ;;  %4488 = vst [vmem:[#allocation7 + $0x17f8] sm:$0xff] %v2950_v16  ;;  %v227_v16 = vld [vmem:[#allocation2 + $0x5d8] sm:$0xff] }
 0x2ff   :  { %v1418_v17 = vpop.f32.mrf.mxu0  ;;  %1705 = vmatmul.mubr.f32.gmra.mxu0 %v216_v13  ;;  %v2954_v18 = vpop.f32.mrf.mxu1  ;;  %3241 = vmatmul.mubr.f32.gmra.mxu1 %v472_v14 }
 0x300   :  { %3977 = vst [vmem:[#allocation7 + $0x800] sm:$0xff] %v1418_v17  ;;  %4489 = vst [vmem:[#allocation7 + $0x1800] sm:$0xff] %v2954_v18  ;;  %1710 = vmatprep.mubr.f32.mxu0 %v4875_v0  ;;  %3246 = vmatprep.mubr.f32.mxu1 %v4875_v0  ;;  %v483_v17 = vld [vmem:[#allocation2 + $0xdd8] sm:$0xff] }
 0x301   :  { %v1420_v21 = vpop.f32.mrf.mxu0  ;;  %v2956_v22 = vpop.f32.mrf.mxu1 }
 0x302   :  { %3978 = vst [vmem:[#allocation7 + $0x808] sm:$0xff] %v1420_v21  ;;  %4490 = vst [vmem:[#allocation7 + $0x1808] sm:$0xff] %v2956_v22  ;;  %v228_v22 = vld [vmem:[#allocation2 + $0x5e0] sm:$0xff] }
 0x303   :  { %v1424_v23 = vpop.f32.mrf.mxu0  ;;  %1711 = vmatmul.mubr.f32.gmra.mxu0 %v217_v19  ;;  %v2960_v24 = vpop.f32.mrf.mxu1  ;;  %3247 = vmatmul.mubr.f32.gmra.mxu1 %v473_v20 }
 0x304   :  { %3979 = vst [vmem:[#allocation7 + $0x810] sm:$0xff] %v1424_v23  ;;  %4491 = vst [vmem:[#allocation7 + $0x1810] sm:$0xff] %v2960_v24  ;;  %1716 = vmatprep.mubr.f32.mxu0 %v4875_v0  ;;  %3252 = vmatprep.mubr.f32.mxu1 %v4875_v0  ;;  %v484_v23 = vld [vmem:[#allocation2 + $0xde0] sm:$0xff] }
 0x305   :  { %v1426_v27 = vpop.f32.mrf.mxu0  ;;  %v2962_v28 = vpop.f32.mrf.mxu1 }
 0x306   :  { %3980 = vst [vmem:[#allocation7 + $0x818] sm:$0xff] %v1426_v27  ;;  %4492 = vst [vmem:[#allocation7 + $0x1818] sm:$0xff] %v2962_v28  ;;  %v229_v28 = vld [vmem:[#allocation2 + $0x5e8] sm:$0xff] }
 0x307   :  { %v1430_v29 = vpop.f32.mrf.mxu0  ;;  %1717 = vmatmul.mubr.f32.gmra.mxu0 %v218_v25  ;;  %v2966_v30 = vpop.f32.mrf.mxu1  ;;  %3253 = vmatmul.mubr.f32.gmra.mxu1 %v474_v26 }
 0x308   :  { %3981 = vst [vmem:[#allocation7 + $0x820] sm:$0xff] %v1430_v29  ;;  %4493 = vst [vmem:[#allocation7 + $0x1820] sm:$0xff] %v2966_v30  ;;  %1722 = vmatprep.mubr.f32.mxu0 %v4875_v0  ;;  %3258 = vmatprep.mubr.f32.mxu1 %v4875_v0  ;;  %v485_v29 = vld [vmem:[#allocation2 + $0xde8] sm:$0xff] }
 0x309   :  { %v1432_v33 = vpop.f32.mrf.mxu0  ;;  %v2968_v34 = vpop.f32.mrf.mxu1 }
 0x30a   :  { %3982 = vst [vmem:[#allocation7 + $0x828] sm:$0xff] %v1432_v33  ;;  %4494 = vst [vmem:[#allocation7 + $0x1828] sm:$0xff] %v2968_v34  ;;  %v230_v34 = vld [vmem:[#allocation2 + $0x5f0] sm:$0xff] }
 0x30b   :  { %v1436_v35 = vpop.f32.mrf.mxu0  ;;  %1723 = vmatmul.mubr.f32.gmra.mxu0 %v219_v31  ;;  %v2972_v36 = vpop.f32.mrf.mxu1  ;;  %3259 = vmatmul.mubr.f32.gmra.mxu1 %v475_v32 }
 0x30c   :  { %3983 = vst [vmem:[#allocation7 + $0x830] sm:$0xff] %v1436_v35  ;;  %4495 = vst [vmem:[#allocation7 + $0x1830] sm:$0xff] %v2972_v36  ;;  %1728 = vmatprep.mubr.f32.mxu0 %v4875_v0  ;;  %3264 = vmatprep.mubr.f32.mxu1 %v4875_v0  ;;  %v486_v35 = vld [vmem:[#allocation2 + $0xdf0] sm:$0xff] }
 0x30d   :  { %v1438_v39 = vpop.f32.mrf.mxu0  ;;  %v2974_v40 = vpop.f32.mrf.mxu1 }
 0x30e   :  { %3984 = vst [vmem:[#allocation7 + $0x838] sm:$0xff] %v1438_v39  ;;  %4496 = vst [vmem:[#allocation7 + $0x1838] sm:$0xff] %v2974_v40  ;;  %v231_v40 = vld [vmem:[#allocation2 + $0x5f8] sm:$0xff] }
 0x30f   :  { %v1442_v41 = vpop.f32.mrf.mxu0  ;;  %1729 = vmatmul.mubr.f32.gmra.mxu0 %v220_v37  ;;  %v2978_v42 = vpop.f32.mrf.mxu1  ;;  %3265 = vmatmul.mubr.f32.gmra.mxu1 %v476_v38 }
 0x310   :  { %3985 = vst [vmem:[#allocation7 + $0x840] sm:$0xff] %v1442_v41  ;;  %4497 = vst [vmem:[#allocation7 + $0x1840] sm:$0xff] %v2978_v42  ;;  %1734 = vmatprep.mubr.f32.mxu0 %v4875_v0  ;;  %3270 = vmatprep.mubr.f32.mxu1 %v4875_v0  ;;  %v487_v41 = vld [vmem:[#allocation2 + $0xdf8] sm:$0xff] }
 0x311   :  { %v1444_v45 = vpop.f32.mrf.mxu0  ;;  %v2980_v46 = vpop.f32.mrf.mxu1 }
 0x312   :  { %3986 = vst [vmem:[#allocation7 + $0x848] sm:$0xff] %v1444_v45  ;;  %4498 = vst [vmem:[#allocation7 + $0x1848] sm:$0xff] %v2980_v46  ;;  %v232_v46 = vld [vmem:[#allocation2 + $0x600] sm:$0xff] }
 0x313   :  { %v1448_v47 = vpop.f32.mrf.mxu0  ;;  %1735 = vmatmul.mubr.f32.gmra.mxu0 %v221_v43  ;;  %v2984_v48 = vpop.f32.mrf.mxu1  ;;  %3271 = vmatmul.mubr.f32.gmra.mxu1 %v477_v44 }
 0x314   :  { %3987 = vst [vmem:[#allocation7 + $0x850] sm:$0xff] %v1448_v47  ;;  %4499 = vst [vmem:[#allocation7 + $0x1850] sm:$0xff] %v2984_v48  ;;  %1740 = vmatprep.mubr.f32.mxu0 %v4875_v0  ;;  %3276 = vmatprep.mubr.f32.mxu1 %v4875_v0  ;;  %v488_v47 = vld [vmem:[#allocation2 + $0xe00] sm:$0xff] }
 0x315   :  { %v1450_v51 = vpop.f32.mrf.mxu0  ;;  %v2986_v52 = vpop.f32.mrf.mxu1 }
 0x316   :  { %3988 = vst [vmem:[#allocation7 + $0x858] sm:$0xff] %v1450_v51  ;;  %4500 = vst [vmem:[#allocation7 + $0x1858] sm:$0xff] %v2986_v52  ;;  %v233_v52 = vld [vmem:[#allocation2 + $0x608] sm:$0xff] }
 0x317   :  { %v1454_v53 = vpop.f32.mrf.mxu0  ;;  %1741 = vmatmul.mubr.f32.gmra.mxu0 %v222_v49  ;;  %v2990_v54 = vpop.f32.mrf.mxu1  ;;  %3277 = vmatmul.mubr.f32.gmra.mxu1 %v478_v50 }
 0x318   :  { %3989 = vst [vmem:[#allocation7 + $0x860] sm:$0xff] %v1454_v53  ;;  %4501 = vst [vmem:[#allocation7 + $0x1860] sm:$0xff] %v2990_v54  ;;  %1746 = vmatprep.mubr.f32.mxu0 %v4875_v0  ;;  %3282 = vmatprep.mubr.f32.mxu1 %v4875_v0  ;;  %v489_v53 = vld [vmem:[#allocation2 + $0xe08] sm:$0xff] }
 0x319   :  { %v1456_v57 = vpop.f32.mrf.mxu0  ;;  %v2992_v58 = vpop.f32.mrf.mxu1 }
 0x31a   :  { %3990 = vst [vmem:[#allocation7 + $0x868] sm:$0xff] %v1456_v57  ;;  %4502 = vst [vmem:[#allocation7 + $0x1868] sm:$0xff] %v2992_v58  ;;  %v234_v58 = vld [vmem:[#allocation2 + $0x610] sm:$0xff] }
 0x31b   :  { %v1460_v59 = vpop.f32.mrf.mxu0  ;;  %1747 = vmatmul.mubr.f32.gmra.mxu0 %v223_v55  ;;  %v2996_v60 = vpop.f32.mrf.mxu1  ;;  %3283 = vmatmul.mubr.f32.gmra.mxu1 %v479_v56 }
 0x31c   :  { %3991 = vst [vmem:[#allocation7 + $0x870] sm:$0xff] %v1460_v59  ;;  %4503 = vst [vmem:[#allocation7 + $0x1870] sm:$0xff] %v2996_v60  ;;  %1752 = vmatprep.mubr.f32.mxu0 %v4875_v0  ;;  %3288 = vmatprep.mubr.f32.mxu1 %v4875_v0  ;;  %v490_v59 = vld [vmem:[#allocation2 + $0xe10] sm:$0xff] }
 0x31d   :  { %v1462_v63 = vpop.f32.mrf.mxu0  ;;  %v2998_v1 = vpop.f32.mrf.mxu1 }
 0x31e   :  { %3992 = vst [vmem:[#allocation7 + $0x878] sm:$0xff] %v1462_v63  ;;  %4504 = vst [vmem:[#allocation7 + $0x1878] sm:$0xff] %v2998_v1  ;;  %v235_v1 = vld [vmem:[#allocation2 + $0x618] sm:$0xff] }
 0x31f   :  { %v1466_v2 = vpop.f32.mrf.mxu0  ;;  %1753 = vmatmul.mubr.f32.gmra.mxu0 %v224_v61  ;;  %v3002_v3 = vpop.f32.mrf.mxu1  ;;  %3289 = vmatmul.mubr.f32.gmra.mxu1 %v480_v62 }
 0x320   :  { %3993 = vst [vmem:[#allocation7 + $0x880] sm:$0xff] %v1466_v2  ;;  %4505 = vst [vmem:[#allocation7 + $0x1880] sm:$0xff] %v3002_v3  ;;  %1758 = vmatprep.mubr.f32.mxu0 %v4875_v0  ;;  %3294 = vmatprep.mubr.f32.mxu1 %v4875_v0  ;;  %v491_v2 = vld [vmem:[#allocation2 + $0xe18] sm:$0xff] }
 0x321   :  { %v1468_v6 = vpop.f32.mrf.mxu0  ;;  %v3004_v7 = vpop.f32.mrf.mxu1 }
 0x322   :  { %3994 = vst [vmem:[#allocation7 + $0x888] sm:$0xff] %v1468_v6  ;;  %4506 = vst [vmem:[#allocation7 + $0x1888] sm:$0xff] %v3004_v7  ;;  %v236_v7 = vld [vmem:[#allocation2 + $0x620] sm:$0xff] }
 0x323   :  { %v1472_v8 = vpop.f32.mrf.mxu0  ;;  %1759 = vmatmul.mubr.f32.gmra.mxu0 %v225_v4  ;;  %v3008_v9 = vpop.f32.mrf.mxu1  ;;  %3295 = vmatmul.mubr.f32.gmra.mxu1 %v481_v5 }
 0x324   :  { %3995 = vst [vmem:[#allocation7 + $0x890] sm:$0xff] %v1472_v8  ;;  %4507 = vst [vmem:[#allocation7 + $0x1890] sm:$0xff] %v3008_v9  ;;  %1764 = vmatprep.mubr.f32.mxu0 %v4875_v0  ;;  %3300 = vmatprep.mubr.f32.mxu1 %v4875_v0  ;;  %v492_v8 = vld [vmem:[#allocation2 + $0xe20] sm:$0xff] }
 0x325   :  { %v1474_v12 = vpop.f32.mrf.mxu0  ;;  %v3010_v13 = vpop.f32.mrf.mxu1 }
 0x326   :  { %3996 = vst [vmem:[#allocation7 + $0x898] sm:$0xff] %v1474_v12  ;;  %4508 = vst [vmem:[#allocation7 + $0x1898] sm:$0xff] %v3010_v13  ;;  %v237_v13 = vld [vmem:[#allocation2 + $0x628] sm:$0xff] }
 0x327   :  { %v1478_v14 = vpop.f32.mrf.mxu0  ;;  %1765 = vmatmul.mubr.f32.gmra.mxu0 %v226_v10  ;;  %v3014_v15 = vpop.f32.mrf.mxu1  ;;  %3301 = vmatmul.mubr.f32.gmra.mxu1 %v482_v11 }
 0x328   :  { %3997 = vst [vmem:[#allocation7 + $0x8a0] sm:$0xff] %v1478_v14  ;;  %4509 = vst [vmem:[#allocation7 + $0x18a0] sm:$0xff] %v3014_v15  ;;  %1770 = vmatprep.mubr.f32.mxu0 %v4875_v0  ;;  %3306 = vmatprep.mubr.f32.mxu1 %v4875_v0  ;;  %v493_v14 = vld [vmem:[#allocation2 + $0xe28] sm:$0xff] }
 0x329   :  { %v1480_v18 = vpop.f32.mrf.mxu0  ;;  %v3016_v19 = vpop.f32.mrf.mxu1 }
 0x32a   :  { %3998 = vst [vmem:[#allocation7 + $0x8a8] sm:$0xff] %v1480_v18  ;;  %4510 = vst [vmem:[#allocation7 + $0x18a8] sm:$0xff] %v3016_v19  ;;  %v238_v19 = vld [vmem:[#allocation2 + $0x630] sm:$0xff] }
 0x32b   :  { %v1484_v20 = vpop.f32.mrf.mxu0  ;;  %1771 = vmatmul.mubr.f32.gmra.mxu0 %v227_v16  ;;  %v3020_v21 = vpop.f32.mrf.mxu1  ;;  %3307 = vmatmul.mubr.f32.gmra.mxu1 %v483_v17 }
 0x32c   :  { %3999 = vst [vmem:[#allocation7 + $0x8b0] sm:$0xff] %v1484_v20  ;;  %4511 = vst [vmem:[#allocation7 + $0x18b0] sm:$0xff] %v3020_v21  ;;  %1776 = vmatprep.mubr.f32.mxu0 %v4875_v0  ;;  %3312 = vmatprep.mubr.f32.mxu1 %v4875_v0  ;;  %v494_v20 = vld [vmem:[#allocation2 + $0xe30] sm:$0xff] }
 0x32d   :  { %v1486_v24 = vpop.f32.mrf.mxu0  ;;  %v3022_v25 = vpop.f32.mrf.mxu1 }
 0x32e   :  { %4000 = vst [vmem:[#allocation7 + $0x8b8] sm:$0xff] %v1486_v24  ;;  %4512 = vst [vmem:[#allocation7 + $0x18b8] sm:$0xff] %v3022_v25  ;;  %v239_v25 = vld [vmem:[#allocation2 + $0x638] sm:$0xff] }
 0x32f   :  { %v1490_v26 = vpop.f32.mrf.mxu0  ;;  %1777 = vmatmul.mubr.f32.gmra.mxu0 %v228_v22  ;;  %v3026_v27 = vpop.f32.mrf.mxu1  ;;  %3313 = vmatmul.mubr.f32.gmra.mxu1 %v484_v23 }
 0x330   :  { %4001 = vst [vmem:[#allocation7 + $0x8c0] sm:$0xff] %v1490_v26  ;;  %4513 = vst [vmem:[#allocation7 + $0x18c0] sm:$0xff] %v3026_v27  ;;  %1782 = vmatprep.mubr.f32.mxu0 %v4875_v0  ;;  %3318 = vmatprep.mubr.f32.mxu1 %v4875_v0  ;;  %v495_v26 = vld [vmem:[#allocation2 + $0xe38] sm:$0xff] }
 0x331   :  { %v1492_v30 = vpop.f32.mrf.mxu0  ;;  %v3028_v31 = vpop.f32.mrf.mxu1 }
 0x332   :  { %4002 = vst [vmem:[#allocation7 + $0x8c8] sm:$0xff] %v1492_v30  ;;  %4514 = vst [vmem:[#allocation7 + $0x18c8] sm:$0xff] %v3028_v31  ;;  %v240_v31 = vld [vmem:[#allocation2 + $0x640] sm:$0xff] }
 0x333   :  { %v1496_v32 = vpop.f32.mrf.mxu0  ;;  %1783 = vmatmul.mubr.f32.gmra.mxu0 %v229_v28  ;;  %v3032_v33 = vpop.f32.mrf.mxu1  ;;  %3319 = vmatmul.mubr.f32.gmra.mxu1 %v485_v29 }
 0x334   :  { %4003 = vst [vmem:[#allocation7 + $0x8d0] sm:$0xff] %v1496_v32  ;;  %4515 = vst [vmem:[#allocation7 + $0x18d0] sm:$0xff] %v3032_v33  ;;  %1788 = vmatprep.mubr.f32.mxu0 %v4875_v0  ;;  %3324 = vmatprep.mubr.f32.mxu1 %v4875_v0  ;;  %v496_v32 = vld [vmem:[#allocation2 + $0xe40] sm:$0xff] }
 0x335   :  { %v1498_v36 = vpop.f32.mrf.mxu0  ;;  %v3034_v37 = vpop.f32.mrf.mxu1 }
 0x336   :  { %4004 = vst [vmem:[#allocation7 + $0x8d8] sm:$0xff] %v1498_v36  ;;  %4516 = vst [vmem:[#allocation7 + $0x18d8] sm:$0xff] %v3034_v37  ;;  %v241_v37 = vld [vmem:[#allocation2 + $0x648] sm:$0xff] }
 0x337   :  { %v1502_v38 = vpop.f32.mrf.mxu0  ;;  %1789 = vmatmul.mubr.f32.gmra.mxu0 %v230_v34  ;;  %v3038_v39 = vpop.f32.mrf.mxu1  ;;  %3325 = vmatmul.mubr.f32.gmra.mxu1 %v486_v35 }
 0x338   :  { %4005 = vst [vmem:[#allocation7 + $0x8e0] sm:$0xff] %v1502_v38  ;;  %4517 = vst [vmem:[#allocation7 + $0x18e0] sm:$0xff] %v3038_v39  ;;  %1794 = vmatprep.mubr.f32.mxu0 %v4875_v0  ;;  %3330 = vmatprep.mubr.f32.mxu1 %v4875_v0  ;;  %v497_v38 = vld [vmem:[#allocation2 + $0xe48] sm:$0xff] }
 0x339   :  { %v1504_v42 = vpop.f32.mrf.mxu0  ;;  %v3040_v43 = vpop.f32.mrf.mxu1 }
 0x33a   :  { %4006 = vst [vmem:[#allocation7 + $0x8e8] sm:$0xff] %v1504_v42  ;;  %4518 = vst [vmem:[#allocation7 + $0x18e8] sm:$0xff] %v3040_v43  ;;  %v242_v43 = vld [vmem:[#allocation2 + $0x650] sm:$0xff] }
 0x33b   :  { %v1508_v44 = vpop.f32.mrf.mxu0  ;;  %1795 = vmatmul.mubr.f32.gmra.mxu0 %v231_v40  ;;  %v3044_v45 = vpop.f32.mrf.mxu1  ;;  %3331 = vmatmul.mubr.f32.gmra.mxu1 %v487_v41 }
 0x33c   :  { %4007 = vst [vmem:[#allocation7 + $0x8f0] sm:$0xff] %v1508_v44  ;;  %4519 = vst [vmem:[#allocation7 + $0x18f0] sm:$0xff] %v3044_v45  ;;  %1800 = vmatprep.mubr.f32.mxu0 %v4875_v0  ;;  %3336 = vmatprep.mubr.f32.mxu1 %v4875_v0  ;;  %v498_v44 = vld [vmem:[#allocation2 + $0xe50] sm:$0xff] }
 0x33d   :  { %v1510_v48 = vpop.f32.mrf.mxu0  ;;  %v3046_v49 = vpop.f32.mrf.mxu1 }
 0x33e   :  { %4008 = vst [vmem:[#allocation7 + $0x8f8] sm:$0xff] %v1510_v48  ;;  %4520 = vst [vmem:[#allocation7 + $0x18f8] sm:$0xff] %v3046_v49  ;;  %v243_v49 = vld [vmem:[#allocation2 + $0x658] sm:$0xff] }
 0x33f   :  { %v1514_v50 = vpop.f32.mrf.mxu0  ;;  %1801 = vmatmul.mubr.f32.gmra.mxu0 %v232_v46  ;;  %v3050_v51 = vpop.f32.mrf.mxu1  ;;  %3337 = vmatmul.mubr.f32.gmra.mxu1 %v488_v47 }
 0x340   :  { %4009 = vst [vmem:[#allocation7 + $0x900] sm:$0xff] %v1514_v50  ;;  %4521 = vst [vmem:[#allocation7 + $0x1900] sm:$0xff] %v3050_v51  ;;  %1806 = vmatprep.mubr.f32.mxu0 %v4875_v0  ;;  %3342 = vmatprep.mubr.f32.mxu1 %v4875_v0  ;;  %v499_v50 = vld [vmem:[#allocation2 + $0xe58] sm:$0xff] }
 0x341   :  { %v1516_v54 = vpop.f32.mrf.mxu0  ;;  %v3052_v55 = vpop.f32.mrf.mxu1 }
 0x342   :  { %4010 = vst [vmem:[#allocation7 + $0x908] sm:$0xff] %v1516_v54  ;;  %4522 = vst [vmem:[#allocation7 + $0x1908] sm:$0xff] %v3052_v55  ;;  %v244_v55 = vld [vmem:[#allocation2 + $0x660] sm:$0xff] }
 0x343   :  { %v1520_v56 = vpop.f32.mrf.mxu0  ;;  %1807 = vmatmul.mubr.f32.gmra.mxu0 %v233_v52  ;;  %v3056_v57 = vpop.f32.mrf.mxu1  ;;  %3343 = vmatmul.mubr.f32.gmra.mxu1 %v489_v53 }
 0x344   :  { %4011 = vst [vmem:[#allocation7 + $0x910] sm:$0xff] %v1520_v56  ;;  %4523 = vst [vmem:[#allocation7 + $0x1910] sm:$0xff] %v3056_v57  ;;  %1812 = vmatprep.mubr.f32.mxu0 %v4875_v0  ;;  %3348 = vmatprep.mubr.f32.mxu1 %v4875_v0  ;;  %v500_v56 = vld [vmem:[#allocation2 + $0xe60] sm:$0xff] }
 0x345   :  { %v1522_v60 = vpop.f32.mrf.mxu0  ;;  %v3058_v61 = vpop.f32.mrf.mxu1 }
 0x346   :  { %4012 = vst [vmem:[#allocation7 + $0x918] sm:$0xff] %v1522_v60  ;;  %4524 = vst [vmem:[#allocation7 + $0x1918] sm:$0xff] %v3058_v61  ;;  %v245_v61 = vld [vmem:[#allocation2 + $0x668] sm:$0xff] }
 0x347   :  { %v1526_v62 = vpop.f32.mrf.mxu0  ;;  %1813 = vmatmul.mubr.f32.gmra.mxu0 %v234_v58  ;;  %v3062_v63 = vpop.f32.mrf.mxu1  ;;  %3349 = vmatmul.mubr.f32.gmra.mxu1 %v490_v59 }
 0x348   :  { %4013 = vst [vmem:[#allocation7 + $0x920] sm:$0xff] %v1526_v62  ;;  %4525 = vst [vmem:[#allocation7 + $0x1920] sm:$0xff] %v3062_v63  ;;  %1818 = vmatprep.mubr.f32.mxu0 %v4875_v0  ;;  %3354 = vmatprep.mubr.f32.mxu1 %v4875_v0  ;;  %v501_v62 = vld [vmem:[#allocation2 + $0xe68] sm:$0xff] }
 0x349   :  { %v1528_v3 = vpop.f32.mrf.mxu0  ;;  %v3064_v4 = vpop.f32.mrf.mxu1 }
 0x34a   :  { %4014 = vst [vmem:[#allocation7 + $0x928] sm:$0xff] %v1528_v3  ;;  %4526 = vst [vmem:[#allocation7 + $0x1928] sm:$0xff] %v3064_v4  ;;  %v246_v4 = vld [vmem:[#allocation2 + $0x670] sm:$0xff] }
 0x34b   :  { %v1532_v5 = vpop.f32.mrf.mxu0  ;;  %1819 = vmatmul.mubr.f32.gmra.mxu0 %v235_v1  ;;  %v3068_v6 = vpop.f32.mrf.mxu1  ;;  %3355 = vmatmul.mubr.f32.gmra.mxu1 %v491_v2 }
 0x34c   :  { %4015 = vst [vmem:[#allocation7 + $0x930] sm:$0xff] %v1532_v5  ;;  %4527 = vst [vmem:[#allocation7 + $0x1930] sm:$0xff] %v3068_v6  ;;  %1824 = vmatprep.mubr.f32.mxu0 %v4875_v0  ;;  %3360 = vmatprep.mubr.f32.mxu1 %v4875_v0  ;;  %v502_v5 = vld [vmem:[#allocation2 + $0xe70] sm:$0xff] }
 0x34d   :  { %v1534_v9 = vpop.f32.mrf.mxu0  ;;  %v3070_v10 = vpop.f32.mrf.mxu1 }
 0x34e   :  { %4016 = vst [vmem:[#allocation7 + $0x938] sm:$0xff] %v1534_v9  ;;  %4528 = vst [vmem:[#allocation7 + $0x1938] sm:$0xff] %v3070_v10  ;;  %v247_v10 = vld [vmem:[#allocation2 + $0x678] sm:$0xff] }
 0x34f   :  { %v1538_v11 = vpop.f32.mrf.mxu0  ;;  %1825 = vmatmul.mubr.f32.gmra.mxu0 %v236_v7  ;;  %v3074_v12 = vpop.f32.mrf.mxu1  ;;  %3361 = vmatmul.mubr.f32.gmra.mxu1 %v492_v8 }
 0x350   :  { %4017 = vst [vmem:[#allocation7 + $0x940] sm:$0xff] %v1538_v11  ;;  %4529 = vst [vmem:[#allocation7 + $0x1940] sm:$0xff] %v3074_v12  ;;  %1830 = vmatprep.mubr.f32.mxu0 %v4875_v0  ;;  %3366 = vmatprep.mubr.f32.mxu1 %v4875_v0  ;;  %v503_v11 = vld [vmem:[#allocation2 + $0xe78] sm:$0xff] }
 0x351   :  { %v1540_v15 = vpop.f32.mrf.mxu0  ;;  %v3076_v16 = vpop.f32.mrf.mxu1 }
 0x352   :  { %4018 = vst [vmem:[#allocation7 + $0x948] sm:$0xff] %v1540_v15  ;;  %4530 = vst [vmem:[#allocation7 + $0x1948] sm:$0xff] %v3076_v16  ;;  %v248_v16 = vld [vmem:[#allocation2 + $0x680] sm:$0xff] }
 0x353   :  { %v1544_v17 = vpop.f32.mrf.mxu0  ;;  %1831 = vmatmul.mubr.f32.gmra.mxu0 %v237_v13  ;;  %v3080_v18 = vpop.f32.mrf.mxu1  ;;  %3367 = vmatmul.mubr.f32.gmra.mxu1 %v493_v14 }
 0x354   :  { %4019 = vst [vmem:[#allocation7 + $0x950] sm:$0xff] %v1544_v17  ;;  %4531 = vst [vmem:[#allocation7 + $0x1950] sm:$0xff] %v3080_v18  ;;  %1836 = vmatprep.mubr.f32.mxu0 %v4875_v0  ;;  %3372 = vmatprep.mubr.f32.mxu1 %v4875_v0  ;;  %v504_v17 = vld [vmem:[#allocation2 + $0xe80] sm:$0xff] }
 0x355   :  { %v1546_v21 = vpop.f32.mrf.mxu0  ;;  %v3082_v22 = vpop.f32.mrf.mxu1 }
 0x356   :  { %4020 = vst [vmem:[#allocation7 + $0x958] sm:$0xff] %v1546_v21  ;;  %4532 = vst [vmem:[#allocation7 + $0x1958] sm:$0xff] %v3082_v22  ;;  %v249_v22 = vld [vmem:[#allocation2 + $0x688] sm:$0xff] }
 0x357   :  { %v1550_v23 = vpop.f32.mrf.mxu0  ;;  %1837 = vmatmul.mubr.f32.gmra.mxu0 %v238_v19  ;;  %v3086_v24 = vpop.f32.mrf.mxu1  ;;  %3373 = vmatmul.mubr.f32.gmra.mxu1 %v494_v20 }
 0x358   :  { %4021 = vst [vmem:[#allocation7 + $0x960] sm:$0xff] %v1550_v23  ;;  %4533 = vst [vmem:[#allocation7 + $0x1960] sm:$0xff] %v3086_v24  ;;  %1842 = vmatprep.mubr.f32.mxu0 %v4875_v0  ;;  %3378 = vmatprep.mubr.f32.mxu1 %v4875_v0  ;;  %v505_v23 = vld [vmem:[#allocation2 + $0xe88] sm:$0xff] }
 0x359   :  { %v1552_v27 = vpop.f32.mrf.mxu0  ;;  %v3088_v28 = vpop.f32.mrf.mxu1 }
 0x35a   :  { %4022 = vst [vmem:[#allocation7 + $0x968] sm:$0xff] %v1552_v27  ;;  %4534 = vst [vmem:[#allocation7 + $0x1968] sm:$0xff] %v3088_v28  ;;  %v250_v28 = vld [vmem:[#allocation2 + $0x690] sm:$0xff] }
 0x35b   :  { %v1556_v29 = vpop.f32.mrf.mxu0  ;;  %1843 = vmatmul.mubr.f32.gmra.mxu0 %v239_v25  ;;  %v3092_v30 = vpop.f32.mrf.mxu1  ;;  %3379 = vmatmul.mubr.f32.gmra.mxu1 %v495_v26 }
 0x35c   :  { %4023 = vst [vmem:[#allocation7 + $0x970] sm:$0xff] %v1556_v29  ;;  %4535 = vst [vmem:[#allocation7 + $0x1970] sm:$0xff] %v3092_v30  ;;  %1848 = vmatprep.mubr.f32.mxu0 %v4875_v0  ;;  %3384 = vmatprep.mubr.f32.mxu1 %v4875_v0  ;;  %v506_v29 = vld [vmem:[#allocation2 + $0xe90] sm:$0xff] }
 0x35d   :  { %v1558_v33 = vpop.f32.mrf.mxu0  ;;  %v3094_v34 = vpop.f32.mrf.mxu1 }
 0x35e   :  { %4024 = vst [vmem:[#allocation7 + $0x978] sm:$0xff] %v1558_v33  ;;  %4536 = vst [vmem:[#allocation7 + $0x1978] sm:$0xff] %v3094_v34  ;;  %v251_v34 = vld [vmem:[#allocation2 + $0x698] sm:$0xff] }
 0x35f   :  { %v1562_v35 = vpop.f32.mrf.mxu0  ;;  %1849 = vmatmul.mubr.f32.gmra.mxu0 %v240_v31  ;;  %v3098_v36 = vpop.f32.mrf.mxu1  ;;  %3385 = vmatmul.mubr.f32.gmra.mxu1 %v496_v32 }
 0x360   :  { %4025 = vst [vmem:[#allocation7 + $0x980] sm:$0xff] %v1562_v35  ;;  %4537 = vst [vmem:[#allocation7 + $0x1980] sm:$0xff] %v3098_v36  ;;  %1854 = vmatprep.mubr.f32.mxu0 %v4875_v0  ;;  %3390 = vmatprep.mubr.f32.mxu1 %v4875_v0  ;;  %v507_v35 = vld [vmem:[#allocation2 + $0xe98] sm:$0xff] }
 0x361   :  { %v1564_v39 = vpop.f32.mrf.mxu0  ;;  %v3100_v40 = vpop.f32.mrf.mxu1 }
 0x362   :  { %4026 = vst [vmem:[#allocation7 + $0x988] sm:$0xff] %v1564_v39  ;;  %4538 = vst [vmem:[#allocation7 + $0x1988] sm:$0xff] %v3100_v40  ;;  %v252_v40 = vld [vmem:[#allocation2 + $0x6a0] sm:$0xff] }
 0x363   :  { %v1568_v41 = vpop.f32.mrf.mxu0  ;;  %1855 = vmatmul.mubr.f32.gmra.mxu0 %v241_v37  ;;  %v3104_v42 = vpop.f32.mrf.mxu1  ;;  %3391 = vmatmul.mubr.f32.gmra.mxu1 %v497_v38 }
 0x364   :  { %4027 = vst [vmem:[#allocation7 + $0x990] sm:$0xff] %v1568_v41  ;;  %4539 = vst [vmem:[#allocation7 + $0x1990] sm:$0xff] %v3104_v42  ;;  %1860 = vmatprep.mubr.f32.mxu0 %v4875_v0  ;;  %3396 = vmatprep.mubr.f32.mxu1 %v4875_v0  ;;  %v508_v41 = vld [vmem:[#allocation2 + $0xea0] sm:$0xff] }
 0x365   :  { %v1570_v45 = vpop.f32.mrf.mxu0  ;;  %v3106_v46 = vpop.f32.mrf.mxu1 }
 0x366   :  { %4028 = vst [vmem:[#allocation7 + $0x998] sm:$0xff] %v1570_v45  ;;  %4540 = vst [vmem:[#allocation7 + $0x1998] sm:$0xff] %v3106_v46  ;;  %v253_v46 = vld [vmem:[#allocation2 + $0x6a8] sm:$0xff] }
 0x367   :  { %v1574_v47 = vpop.f32.mrf.mxu0  ;;  %1861 = vmatmul.mubr.f32.gmra.mxu0 %v242_v43  ;;  %v3110_v48 = vpop.f32.mrf.mxu1  ;;  %3397 = vmatmul.mubr.f32.gmra.mxu1 %v498_v44 }
 0x368   :  { %4029 = vst [vmem:[#allocation7 + $0x9a0] sm:$0xff] %v1574_v47  ;;  %4541 = vst [vmem:[#allocation7 + $0x19a0] sm:$0xff] %v3110_v48  ;;  %1866 = vmatprep.mubr.f32.mxu0 %v4875_v0  ;;  %3402 = vmatprep.mubr.f32.mxu1 %v4875_v0  ;;  %v509_v47 = vld [vmem:[#allocation2 + $0xea8] sm:$0xff] }
 0x369   :  { %v1576_v51 = vpop.f32.mrf.mxu0  ;;  %v3112_v52 = vpop.f32.mrf.mxu1 }
 0x36a   :  { %4030 = vst [vmem:[#allocation7 + $0x9a8] sm:$0xff] %v1576_v51  ;;  %4542 = vst [vmem:[#allocation7 + $0x19a8] sm:$0xff] %v3112_v52  ;;  %v254_v52 = vld [vmem:[#allocation2 + $0x6b0] sm:$0xff] }
 0x36b   :  { %v1580_v53 = vpop.f32.mrf.mxu0  ;;  %1867 = vmatmul.mubr.f32.gmra.mxu0 %v243_v49  ;;  %v3116_v54 = vpop.f32.mrf.mxu1  ;;  %3403 = vmatmul.mubr.f32.gmra.mxu1 %v499_v50 }
 0x36c   :  { %4031 = vst [vmem:[#allocation7 + $0x9b0] sm:$0xff] %v1580_v53  ;;  %4543 = vst [vmem:[#allocation7 + $0x19b0] sm:$0xff] %v3116_v54  ;;  %1872 = vmatprep.mubr.f32.mxu0 %v4875_v0  ;;  %3408 = vmatprep.mubr.f32.mxu1 %v4875_v0  ;;  %v510_v53 = vld [vmem:[#allocation2 + $0xeb0] sm:$0xff] }
 0x36d   :  { %v1582_v57 = vpop.f32.mrf.mxu0  ;;  %v3118_v58 = vpop.f32.mrf.mxu1 }
 0x36e   :  { %4032 = vst [vmem:[#allocation7 + $0x9b8] sm:$0xff] %v1582_v57  ;;  %4544 = vst [vmem:[#allocation7 + $0x19b8] sm:$0xff] %v3118_v58  ;;  %v255_v58 = vld [vmem:[#allocation2 + $0x6b8] sm:$0xff] }
 0x36f   :  { %v1586_v59 = vpop.f32.mrf.mxu0  ;;  %1873 = vmatmul.mubr.f32.gmra.mxu0 %v244_v55  ;;  %v3122_v60 = vpop.f32.mrf.mxu1  ;;  %3409 = vmatmul.mubr.f32.gmra.mxu1 %v500_v56 }
 0x370   :  { %4033 = vst [vmem:[#allocation7 + $0x9c0] sm:$0xff] %v1586_v59  ;;  %4545 = vst [vmem:[#allocation7 + $0x19c0] sm:$0xff] %v3122_v60  ;;  %1878 = vmatprep.mubr.f32.mxu0 %v4875_v0  ;;  %3414 = vmatprep.mubr.f32.mxu1 %v4875_v0  ;;  %v511_v59 = vld [vmem:[#allocation2 + $0xeb8] sm:$0xff] }
 0x371   :  { %v1588_v63 = vpop.f32.mrf.mxu0  ;;  %v3124_v1 = vpop.f32.mrf.mxu1 }
 0x372   :  { %4034 = vst [vmem:[#allocation7 + $0x9c8] sm:$0xff] %v1588_v63  ;;  %4546 = vst [vmem:[#allocation7 + $0x19c8] sm:$0xff] %v3124_v1  ;;  %v256_v1 = vld [vmem:[#allocation2 + $0x6c0] sm:$0xff] }
 0x373   :  { %v1592_v2 = vpop.f32.mrf.mxu0  ;;  %1879 = vmatmul.mubr.f32.gmra.mxu0 %v245_v61  ;;  %v3128_v3 = vpop.f32.mrf.mxu1  ;;  %3415 = vmatmul.mubr.f32.gmra.mxu1 %v501_v62 }
 0x374   :  { %4035 = vst [vmem:[#allocation7 + $0x9d0] sm:$0xff] %v1592_v2  ;;  %4547 = vst [vmem:[#allocation7 + $0x19d0] sm:$0xff] %v3128_v3  ;;  %1884 = vmatprep.mubr.f32.mxu0 %v4875_v0  ;;  %3420 = vmatprep.mubr.f32.mxu1 %v4875_v0  ;;  %v512_v2 = vld [vmem:[#allocation2 + $0xec0] sm:$0xff] }
 0x375   :  { %v1594_v6 = vpop.f32.mrf.mxu0  ;;  %v3130_v7 = vpop.f32.mrf.mxu1 }
 0x376   :  { %4036 = vst [vmem:[#allocation7 + $0x9d8] sm:$0xff] %v1594_v6  ;;  %4548 = vst [vmem:[#allocation7 + $0x19d8] sm:$0xff] %v3130_v7  ;;  %v257_v7 = vld [vmem:[#allocation2 + $0x6c8] sm:$0xff] }
 0x377   :  { %v1598_v8 = vpop.f32.mrf.mxu0  ;;  %1885 = vmatmul.mubr.f32.gmra.mxu0 %v246_v4  ;;  %v3134_v9 = vpop.f32.mrf.mxu1  ;;  %3421 = vmatmul.mubr.f32.gmra.mxu1 %v502_v5 }
 0x378   :  { %4037 = vst [vmem:[#allocation7 + $0x9e0] sm:$0xff] %v1598_v8  ;;  %4549 = vst [vmem:[#allocation7 + $0x19e0] sm:$0xff] %v3134_v9  ;;  %1890 = vmatprep.mubr.f32.mxu0 %v4875_v0  ;;  %3426 = vmatprep.mubr.f32.mxu1 %v4875_v0  ;;  %v513_v8 = vld [vmem:[#allocation2 + $0xec8] sm:$0xff] }
 0x379   :  { %v1600_v12 = vpop.f32.mrf.mxu0  ;;  %v3136_v13 = vpop.f32.mrf.mxu1 }
 0x37a   :  { %4038 = vst [vmem:[#allocation7 + $0x9e8] sm:$0xff] %v1600_v12  ;;  %4550 = vst [vmem:[#allocation7 + $0x19e8] sm:$0xff] %v3136_v13  ;;  %v258_v13 = vld [vmem:[#allocation2 + $0x6d0] sm:$0xff] }
 0x37b   :  { %v1604_v14 = vpop.f32.mrf.mxu0  ;;  %1891 = vmatmul.mubr.f32.gmra.mxu0 %v247_v10  ;;  %v3140_v15 = vpop.f32.mrf.mxu1  ;;  %3427 = vmatmul.mubr.f32.gmra.mxu1 %v503_v11 }
 0x37c   :  { %4039 = vst [vmem:[#allocation7 + $0x9f0] sm:$0xff] %v1604_v14  ;;  %4551 = vst [vmem:[#allocation7 + $0x19f0] sm:$0xff] %v3140_v15  ;;  %1896 = vmatprep.mubr.f32.mxu0 %v4875_v0  ;;  %3432 = vmatprep.mubr.f32.mxu1 %v4875_v0  ;;  %v514_v14 = vld [vmem:[#allocation2 + $0xed0] sm:$0xff] }
 0x37d   :  { %v1606_v18 = vpop.f32.mrf.mxu0  ;;  %v3142_v19 = vpop.f32.mrf.mxu1 }
 0x37e   :  { %4040 = vst [vmem:[#allocation7 + $0x9f8] sm:$0xff] %v1606_v18  ;;  %4552 = vst [vmem:[#allocation7 + $0x19f8] sm:$0xff] %v3142_v19  ;;  %v259_v19 = vld [vmem:[#allocation2 + $0x6d8] sm:$0xff] }
 0x37f   :  { %v1610_v20 = vpop.f32.mrf.mxu0  ;;  %1897 = vmatmul.mubr.f32.gmra.mxu0 %v248_v16  ;;  %v3146_v21 = vpop.f32.mrf.mxu1  ;;  %3433 = vmatmul.mubr.f32.gmra.mxu1 %v504_v17 }
 0x380   :  { %4041 = vst [vmem:[#allocation7 + $0xa00] sm:$0xff] %v1610_v20  ;;  %4553 = vst [vmem:[#allocation7 + $0x1a00] sm:$0xff] %v3146_v21  ;;  %1902 = vmatprep.mubr.f32.mxu0 %v4875_v0  ;;  %3438 = vmatprep.mubr.f32.mxu1 %v4875_v0  ;;  %v515_v20 = vld [vmem:[#allocation2 + $0xed8] sm:$0xff] }
 0x381   :  { %v1612_v24 = vpop.f32.mrf.mxu0  ;;  %v3148_v25 = vpop.f32.mrf.mxu1 }
 0x382   :  { %4042 = vst [vmem:[#allocation7 + $0xa08] sm:$0xff] %v1612_v24  ;;  %4554 = vst [vmem:[#allocation7 + $0x1a08] sm:$0xff] %v3148_v25  ;;  %v260_v25 = vld [vmem:[#allocation2 + $0x6e0] sm:$0xff] }
 0x383   :  { %v1616_v26 = vpop.f32.mrf.mxu0  ;;  %1903 = vmatmul.mubr.f32.gmra.mxu0 %v249_v22  ;;  %v3152_v27 = vpop.f32.mrf.mxu1  ;;  %3439 = vmatmul.mubr.f32.gmra.mxu1 %v505_v23 }
 0x384   :  { %4043 = vst [vmem:[#allocation7 + $0xa10] sm:$0xff] %v1616_v26  ;;  %4555 = vst [vmem:[#allocation7 + $0x1a10] sm:$0xff] %v3152_v27  ;;  %1908 = vmatprep.mubr.f32.mxu0 %v4875_v0  ;;  %3444 = vmatprep.mubr.f32.mxu1 %v4875_v0  ;;  %v516_v26 = vld [vmem:[#allocation2 + $0xee0] sm:$0xff] }
 0x385   :  { %v1618_v30 = vpop.f32.mrf.mxu0  ;;  %v3154_v31 = vpop.f32.mrf.mxu1 }
 0x386   :  { %4044 = vst [vmem:[#allocation7 + $0xa18] sm:$0xff] %v1618_v30  ;;  %4556 = vst [vmem:[#allocation7 + $0x1a18] sm:$0xff] %v3154_v31  ;;  %v261_v31 = vld [vmem:[#allocation2 + $0x6e8] sm:$0xff] }
 0x387   :  { %v1622_v32 = vpop.f32.mrf.mxu0  ;;  %1909 = vmatmul.mubr.f32.gmra.mxu0 %v250_v28  ;;  %v3158_v33 = vpop.f32.mrf.mxu1  ;;  %3445 = vmatmul.mubr.f32.gmra.mxu1 %v506_v29 }
 0x388   :  { %4045 = vst [vmem:[#allocation7 + $0xa20] sm:$0xff] %v1622_v32  ;;  %4557 = vst [vmem:[#allocation7 + $0x1a20] sm:$0xff] %v3158_v33  ;;  %1914 = vmatprep.mubr.f32.mxu0 %v4875_v0  ;;  %3450 = vmatprep.mubr.f32.mxu1 %v4875_v0  ;;  %v517_v32 = vld [vmem:[#allocation2 + $0xee8] sm:$0xff] }
 0x389   :  { %v1624_v36 = vpop.f32.mrf.mxu0  ;;  %v3160_v37 = vpop.f32.mrf.mxu1 }
 0x38a   :  { %4046 = vst [vmem:[#allocation7 + $0xa28] sm:$0xff] %v1624_v36  ;;  %4558 = vst [vmem:[#allocation7 + $0x1a28] sm:$0xff] %v3160_v37  ;;  %v262_v37 = vld [vmem:[#allocation2 + $0x6f0] sm:$0xff] }
 0x38b   :  { %v1628_v38 = vpop.f32.mrf.mxu0  ;;  %1915 = vmatmul.mubr.f32.gmra.mxu0 %v251_v34  ;;  %v3164_v39 = vpop.f32.mrf.mxu1  ;;  %3451 = vmatmul.mubr.f32.gmra.mxu1 %v507_v35 }
 0x38c   :  { %4047 = vst [vmem:[#allocation7 + $0xa30] sm:$0xff] %v1628_v38  ;;  %4559 = vst [vmem:[#allocation7 + $0x1a30] sm:$0xff] %v3164_v39  ;;  %1920 = vmatprep.mubr.f32.mxu0 %v4875_v0  ;;  %3456 = vmatprep.mubr.f32.mxu1 %v4875_v0  ;;  %v518_v38 = vld [vmem:[#allocation2 + $0xef0] sm:$0xff] }
 0x38d   :  { %v1630_v42 = vpop.f32.mrf.mxu0  ;;  %v3166_v43 = vpop.f32.mrf.mxu1 }
 0x38e   :  { %4048 = vst [vmem:[#allocation7 + $0xa38] sm:$0xff] %v1630_v42  ;;  %4560 = vst [vmem:[#allocation7 + $0x1a38] sm:$0xff] %v3166_v43  ;;  %v263_v43 = vld [vmem:[#allocation2 + $0x6f8] sm:$0xff] }
 0x38f   :  { %v1634_v44 = vpop.f32.mrf.mxu0  ;;  %1921 = vmatmul.mubr.f32.gmra.mxu0 %v252_v40  ;;  %v3170_v45 = vpop.f32.mrf.mxu1  ;;  %3457 = vmatmul.mubr.f32.gmra.mxu1 %v508_v41 }
 0x390   :  { %4049 = vst [vmem:[#allocation7 + $0xa40] sm:$0xff] %v1634_v44  ;;  %4561 = vst [vmem:[#allocation7 + $0x1a40] sm:$0xff] %v3170_v45  ;;  %1926 = vmatprep.mubr.f32.mxu0 %v4875_v0  ;;  %3462 = vmatprep.mubr.f32.mxu1 %v4875_v0  ;;  %v519_v44 = vld [vmem:[#allocation2 + $0xef8] sm:$0xff] }
 0x391   :  { %v1636_v48 = vpop.f32.mrf.mxu0  ;;  %v3172_v49 = vpop.f32.mrf.mxu1 }
 0x392   :  { %4050 = vst [vmem:[#allocation7 + $0xa48] sm:$0xff] %v1636_v48  ;;  %4562 = vst [vmem:[#allocation7 + $0x1a48] sm:$0xff] %v3172_v49  ;;  %v264_v49 = vld [vmem:[#allocation2 + $0x700] sm:$0xff] }
 0x393   :  { %v1640_v50 = vpop.f32.mrf.mxu0  ;;  %1927 = vmatmul.mubr.f32.gmra.mxu0 %v253_v46  ;;  %v3176_v51 = vpop.f32.mrf.mxu1  ;;  %3463 = vmatmul.mubr.f32.gmra.mxu1 %v509_v47 }
 0x394   :  { %4051 = vst [vmem:[#allocation7 + $0xa50] sm:$0xff] %v1640_v50  ;;  %4563 = vst [vmem:[#allocation7 + $0x1a50] sm:$0xff] %v3176_v51  ;;  %1932 = vmatprep.mubr.f32.mxu0 %v4875_v0  ;;  %3468 = vmatprep.mubr.f32.mxu1 %v4875_v0  ;;  %v520_v50 = vld [vmem:[#allocation2 + $0xf00] sm:$0xff] }
 0x395   :  { %v1642_v54 = vpop.f32.mrf.mxu0  ;;  %v3178_v55 = vpop.f32.mrf.mxu1 }
 0x396   :  { %4052 = vst [vmem:[#allocation7 + $0xa58] sm:$0xff] %v1642_v54  ;;  %4564 = vst [vmem:[#allocation7 + $0x1a58] sm:$0xff] %v3178_v55  ;;  %v265_v55 = vld [vmem:[#allocation2 + $0x708] sm:$0xff] }
 0x397   :  { %v1646_v56 = vpop.f32.mrf.mxu0  ;;  %1933 = vmatmul.mubr.f32.gmra.mxu0 %v254_v52  ;;  %v3182_v57 = vpop.f32.mrf.mxu1  ;;  %3469 = vmatmul.mubr.f32.gmra.mxu1 %v510_v53 }
 0x398   :  { %4053 = vst [vmem:[#allocation7 + $0xa60] sm:$0xff] %v1646_v56  ;;  %4565 = vst [vmem:[#allocation7 + $0x1a60] sm:$0xff] %v3182_v57  ;;  %1938 = vmatprep.mubr.f32.mxu0 %v4875_v0  ;;  %3474 = vmatprep.mubr.f32.mxu1 %v4875_v0  ;;  %v521_v56 = vld [vmem:[#allocation2 + $0xf08] sm:$0xff] }
 0x399   :  { %v1648_v60 = vpop.f32.mrf.mxu0  ;;  %v3184_v61 = vpop.f32.mrf.mxu1 }
 0x39a   :  { %4054 = vst [vmem:[#allocation7 + $0xa68] sm:$0xff] %v1648_v60  ;;  %4566 = vst [vmem:[#allocation7 + $0x1a68] sm:$0xff] %v3184_v61  ;;  %v266_v61 = vld [vmem:[#allocation2 + $0x710] sm:$0xff] }
 0x39b   :  { %v1652_v62 = vpop.f32.mrf.mxu0  ;;  %1939 = vmatmul.mubr.f32.gmra.mxu0 %v255_v58  ;;  %v3188_v63 = vpop.f32.mrf.mxu1  ;;  %3475 = vmatmul.mubr.f32.gmra.mxu1 %v511_v59 }
 0x39c   :  { %4055 = vst [vmem:[#allocation7 + $0xa70] sm:$0xff] %v1652_v62  ;;  %4567 = vst [vmem:[#allocation7 + $0x1a70] sm:$0xff] %v3188_v63  ;;  %1944 = vmatprep.mubr.f32.mxu0 %v4875_v0  ;;  %3480 = vmatprep.mubr.f32.mxu1 %v4875_v0  ;;  %v522_v62 = vld [vmem:[#allocation2 + $0xf10] sm:$0xff] }
 0x39d   :  { %v1654_v3 = vpop.f32.mrf.mxu0  ;;  %v3190_v4 = vpop.f32.mrf.mxu1 }
 0x39e   :  { %4056 = vst [vmem:[#allocation7 + $0xa78] sm:$0xff] %v1654_v3  ;;  %4568 = vst [vmem:[#allocation7 + $0x1a78] sm:$0xff] %v3190_v4  ;;  %v267_v4 = vld [vmem:[#allocation2 + $0x718] sm:$0xff] }
 0x39f   :  { %v1658_v5 = vpop.f32.mrf.mxu0  ;;  %1945 = vmatmul.mubr.f32.gmra.mxu0 %v256_v1  ;;  %v3194_v6 = vpop.f32.mrf.mxu1  ;;  %3481 = vmatmul.mubr.f32.gmra.mxu1 %v512_v2 }
 0x3a0   :  { %4057 = vst [vmem:[#allocation7 + $0xa80] sm:$0xff] %v1658_v5  ;;  %4569 = vst [vmem:[#allocation7 + $0x1a80] sm:$0xff] %v3194_v6  ;;  %1950 = vmatprep.mubr.f32.mxu0 %v4875_v0  ;;  %3486 = vmatprep.mubr.f32.mxu1 %v4875_v0  ;;  %v523_v5 = vld [vmem:[#allocation2 + $0xf18] sm:$0xff] }
 0x3a1   :  { %v1660_v9 = vpop.f32.mrf.mxu0  ;;  %v3196_v10 = vpop.f32.mrf.mxu1 }
 0x3a2   :  { %4058 = vst [vmem:[#allocation7 + $0xa88] sm:$0xff] %v1660_v9  ;;  %4570 = vst [vmem:[#allocation7 + $0x1a88] sm:$0xff] %v3196_v10  ;;  %v268_v10 = vld [vmem:[#allocation2 + $0x720] sm:$0xff] }
 0x3a3   :  { %v1664_v11 = vpop.f32.mrf.mxu0  ;;  %1951 = vmatmul.mubr.f32.gmra.mxu0 %v257_v7  ;;  %v3200_v12 = vpop.f32.mrf.mxu1  ;;  %3487 = vmatmul.mubr.f32.gmra.mxu1 %v513_v8 }
 0x3a4   :  { %4059 = vst [vmem:[#allocation7 + $0xa90] sm:$0xff] %v1664_v11  ;;  %4571 = vst [vmem:[#allocation7 + $0x1a90] sm:$0xff] %v3200_v12  ;;  %1956 = vmatprep.mubr.f32.mxu0 %v4875_v0  ;;  %3492 = vmatprep.mubr.f32.mxu1 %v4875_v0  ;;  %v524_v11 = vld [vmem:[#allocation2 + $0xf20] sm:$0xff] }
 0x3a5   :  { %v1666_v15 = vpop.f32.mrf.mxu0  ;;  %v3202_v16 = vpop.f32.mrf.mxu1 }
 0x3a6   :  { %4060 = vst [vmem:[#allocation7 + $0xa98] sm:$0xff] %v1666_v15  ;;  %4572 = vst [vmem:[#allocation7 + $0x1a98] sm:$0xff] %v3202_v16  ;;  %v269_v16 = vld [vmem:[#allocation2 + $0x728] sm:$0xff] }
 0x3a7   :  { %v1670_v17 = vpop.f32.mrf.mxu0  ;;  %1957 = vmatmul.mubr.f32.gmra.mxu0 %v258_v13  ;;  %v3206_v18 = vpop.f32.mrf.mxu1  ;;  %3493 = vmatmul.mubr.f32.gmra.mxu1 %v514_v14 }
 0x3a8   :  { %4061 = vst [vmem:[#allocation7 + $0xaa0] sm:$0xff] %v1670_v17  ;;  %4573 = vst [vmem:[#allocation7 + $0x1aa0] sm:$0xff] %v3206_v18  ;;  %1962 = vmatprep.mubr.f32.mxu0 %v4875_v0  ;;  %3498 = vmatprep.mubr.f32.mxu1 %v4875_v0  ;;  %v525_v17 = vld [vmem:[#allocation2 + $0xf28] sm:$0xff] }
 0x3a9   :  { %v1672_v21 = vpop.f32.mrf.mxu0  ;;  %v3208_v22 = vpop.f32.mrf.mxu1 }
 0x3aa   :  { %4062 = vst [vmem:[#allocation7 + $0xaa8] sm:$0xff] %v1672_v21  ;;  %4574 = vst [vmem:[#allocation7 + $0x1aa8] sm:$0xff] %v3208_v22  ;;  %v270_v22 = vld [vmem:[#allocation2 + $0x730] sm:$0xff] }
 0x3ab   :  { %v1676_v23 = vpop.f32.mrf.mxu0  ;;  %1963 = vmatmul.mubr.f32.gmra.mxu0 %v259_v19  ;;  %v3212_v24 = vpop.f32.mrf.mxu1  ;;  %3499 = vmatmul.mubr.f32.gmra.mxu1 %v515_v20 }
 0x3ac   :  { %4063 = vst [vmem:[#allocation7 + $0xab0] sm:$0xff] %v1676_v23  ;;  %4575 = vst [vmem:[#allocation7 + $0x1ab0] sm:$0xff] %v3212_v24  ;;  %1968 = vmatprep.mubr.f32.mxu0 %v4875_v0  ;;  %3504 = vmatprep.mubr.f32.mxu1 %v4875_v0  ;;  %v526_v23 = vld [vmem:[#allocation2 + $0xf30] sm:$0xff] }
 0x3ad   :  { %v1678_v27 = vpop.f32.mrf.mxu0  ;;  %v3214_v28 = vpop.f32.mrf.mxu1 }
 0x3ae   :  { %4064 = vst [vmem:[#allocation7 + $0xab8] sm:$0xff] %v1678_v27  ;;  %4576 = vst [vmem:[#allocation7 + $0x1ab8] sm:$0xff] %v3214_v28  ;;  %v271_v28 = vld [vmem:[#allocation2 + $0x738] sm:$0xff] }
 0x3af   :  { %v1682_v29 = vpop.f32.mrf.mxu0  ;;  %1969 = vmatmul.mubr.f32.gmra.mxu0 %v260_v25  ;;  %v3218_v30 = vpop.f32.mrf.mxu1  ;;  %3505 = vmatmul.mubr.f32.gmra.mxu1 %v516_v26 }
 0x3b0   :  { %4065 = vst [vmem:[#allocation7 + $0xac0] sm:$0xff] %v1682_v29  ;;  %4577 = vst [vmem:[#allocation7 + $0x1ac0] sm:$0xff] %v3218_v30  ;;  %1974 = vmatprep.mubr.f32.mxu0 %v4875_v0  ;;  %3510 = vmatprep.mubr.f32.mxu1 %v4875_v0  ;;  %v527_v29 = vld [vmem:[#allocation2 + $0xf38] sm:$0xff] }
 0x3b1   :  { %v1684_v33 = vpop.f32.mrf.mxu0  ;;  %v3220_v34 = vpop.f32.mrf.mxu1 }
 0x3b2   :  { %4066 = vst [vmem:[#allocation7 + $0xac8] sm:$0xff] %v1684_v33  ;;  %4578 = vst [vmem:[#allocation7 + $0x1ac8] sm:$0xff] %v3220_v34  ;;  %v272_v34 = vld [vmem:[#allocation2 + $0x740] sm:$0xff] }
 0x3b3   :  { %v1688_v35 = vpop.f32.mrf.mxu0  ;;  %1975 = vmatmul.mubr.f32.gmra.mxu0 %v261_v31  ;;  %v3224_v36 = vpop.f32.mrf.mxu1  ;;  %3511 = vmatmul.mubr.f32.gmra.mxu1 %v517_v32 }
 0x3b4   :  { %4067 = vst [vmem:[#allocation7 + $0xad0] sm:$0xff] %v1688_v35  ;;  %4579 = vst [vmem:[#allocation7 + $0x1ad0] sm:$0xff] %v3224_v36  ;;  %1980 = vmatprep.mubr.f32.mxu0 %v4875_v0  ;;  %3516 = vmatprep.mubr.f32.mxu1 %v4875_v0  ;;  %v528_v35 = vld [vmem:[#allocation2 + $0xf40] sm:$0xff] }
 0x3b5   :  { %v1690_v39 = vpop.f32.mrf.mxu0  ;;  %v3226_v40 = vpop.f32.mrf.mxu1 }
 0x3b6   :  { %4068 = vst [vmem:[#allocation7 + $0xad8] sm:$0xff] %v1690_v39  ;;  %4580 = vst [vmem:[#allocation7 + $0x1ad8] sm:$0xff] %v3226_v40  ;;  %v273_v40 = vld [vmem:[#allocation2 + $0x748] sm:$0xff] }
 0x3b7   :  { %v1694_v41 = vpop.f32.mrf.mxu0  ;;  %1981 = vmatmul.mubr.f32.gmra.mxu0 %v262_v37  ;;  %v3230_v42 = vpop.f32.mrf.mxu1  ;;  %3517 = vmatmul.mubr.f32.gmra.mxu1 %v518_v38 }
 0x3b8   :  { %4069 = vst [vmem:[#allocation7 + $0xae0] sm:$0xff] %v1694_v41  ;;  %4581 = vst [vmem:[#allocation7 + $0x1ae0] sm:$0xff] %v3230_v42  ;;  %1986 = vmatprep.mubr.f32.mxu0 %v4875_v0  ;;  %3522 = vmatprep.mubr.f32.mxu1 %v4875_v0  ;;  %v529_v41 = vld [vmem:[#allocation2 + $0xf48] sm:$0xff] }
 0x3b9   :  { %v1696_v45 = vpop.f32.mrf.mxu0  ;;  %v3232_v46 = vpop.f32.mrf.mxu1 }
 0x3ba   :  { %4070 = vst [vmem:[#allocation7 + $0xae8] sm:$0xff] %v1696_v45  ;;  %4582 = vst [vmem:[#allocation7 + $0x1ae8] sm:$0xff] %v3232_v46  ;;  %v274_v46 = vld [vmem:[#allocation2 + $0x750] sm:$0xff] }
 0x3bb   :  { %v1700_v47 = vpop.f32.mrf.mxu0  ;;  %1987 = vmatmul.mubr.f32.gmra.mxu0 %v263_v43  ;;  %v3236_v48 = vpop.f32.mrf.mxu1  ;;  %3523 = vmatmul.mubr.f32.gmra.mxu1 %v519_v44 }
 0x3bc   :  { %4071 = vst [vmem:[#allocation7 + $0xaf0] sm:$0xff] %v1700_v47  ;;  %4583 = vst [vmem:[#allocation7 + $0x1af0] sm:$0xff] %v3236_v48  ;;  %1992 = vmatprep.mubr.f32.mxu0 %v4875_v0  ;;  %3528 = vmatprep.mubr.f32.mxu1 %v4875_v0  ;;  %v530_v47 = vld [vmem:[#allocation2 + $0xf50] sm:$0xff] }
 0x3bd   :  { %v1702_v51 = vpop.f32.mrf.mxu0  ;;  %v3238_v52 = vpop.f32.mrf.mxu1 }
 0x3be   :  { %4072 = vst [vmem:[#allocation7 + $0xaf8] sm:$0xff] %v1702_v51  ;;  %4584 = vst [vmem:[#allocation7 + $0x1af8] sm:$0xff] %v3238_v52  ;;  %v275_v52 = vld [vmem:[#allocation2 + $0x758] sm:$0xff] }
 0x3bf   :  { %v1706_v53 = vpop.f32.mrf.mxu0  ;;  %1993 = vmatmul.mubr.f32.gmra.mxu0 %v264_v49  ;;  %v3242_v54 = vpop.f32.mrf.mxu1  ;;  %3529 = vmatmul.mubr.f32.gmra.mxu1 %v520_v50 }
 0x3c0   :  { %4073 = vst [vmem:[#allocation7 + $0xb00] sm:$0xff] %v1706_v53  ;;  %4585 = vst [vmem:[#allocation7 + $0x1b00] sm:$0xff] %v3242_v54  ;;  %1998 = vmatprep.mubr.f32.mxu0 %v4875_v0  ;;  %3534 = vmatprep.mubr.f32.mxu1 %v4875_v0  ;;  %v531_v53 = vld [vmem:[#allocation2 + $0xf58] sm:$0xff] }
 0x3c1   :  { %v1708_v57 = vpop.f32.mrf.mxu0  ;;  %v3244_v58 = vpop.f32.mrf.mxu1 }
 0x3c2   :  { %4074 = vst [vmem:[#allocation7 + $0xb08] sm:$0xff] %v1708_v57  ;;  %4586 = vst [vmem:[#allocation7 + $0x1b08] sm:$0xff] %v3244_v58  ;;  %v276_v58 = vld [vmem:[#allocation2 + $0x760] sm:$0xff] }
 0x3c3   :  { %v1712_v59 = vpop.f32.mrf.mxu0  ;;  %1999 = vmatmul.mubr.f32.gmra.mxu0 %v265_v55  ;;  %v3248_v60 = vpop.f32.mrf.mxu1  ;;  %3535 = vmatmul.mubr.f32.gmra.mxu1 %v521_v56 }
 0x3c4   :  { %4075 = vst [vmem:[#allocation7 + $0xb10] sm:$0xff] %v1712_v59  ;;  %4587 = vst [vmem:[#allocation7 + $0x1b10] sm:$0xff] %v3248_v60  ;;  %2004 = vmatprep.mubr.f32.mxu0 %v4875_v0  ;;  %3540 = vmatprep.mubr.f32.mxu1 %v4875_v0  ;;  %v532_v59 = vld [vmem:[#allocation2 + $0xf60] sm:$0xff] }
 0x3c5   :  { %v1714_v63 = vpop.f32.mrf.mxu0  ;;  %v3250_v1 = vpop.f32.mrf.mxu1 }
 0x3c6   :  { %4076 = vst [vmem:[#allocation7 + $0xb18] sm:$0xff] %v1714_v63  ;;  %4588 = vst [vmem:[#allocation7 + $0x1b18] sm:$0xff] %v3250_v1  ;;  %v277_v1 = vld [vmem:[#allocation2 + $0x768] sm:$0xff] }
 0x3c7   :  { %v1718_v2 = vpop.f32.mrf.mxu0  ;;  %2005 = vmatmul.mubr.f32.gmra.mxu0 %v266_v61  ;;  %v3254_v3 = vpop.f32.mrf.mxu1  ;;  %3541 = vmatmul.mubr.f32.gmra.mxu1 %v522_v62 }
 0x3c8   :  { %4077 = vst [vmem:[#allocation7 + $0xb20] sm:$0xff] %v1718_v2  ;;  %4589 = vst [vmem:[#allocation7 + $0x1b20] sm:$0xff] %v3254_v3  ;;  %2010 = vmatprep.mubr.f32.mxu0 %v4875_v0  ;;  %3546 = vmatprep.mubr.f32.mxu1 %v4875_v0  ;;  %v533_v2 = vld [vmem:[#allocation2 + $0xf68] sm:$0xff] }
 0x3c9   :  { %v1720_v6 = vpop.f32.mrf.mxu0  ;;  %v3256_v7 = vpop.f32.mrf.mxu1 }
 0x3ca   :  { %4078 = vst [vmem:[#allocation7 + $0xb28] sm:$0xff] %v1720_v6  ;;  %4590 = vst [vmem:[#allocation7 + $0x1b28] sm:$0xff] %v3256_v7  ;;  %v278_v7 = vld [vmem:[#allocation2 + $0x770] sm:$0xff] }
 0x3cb   :  { %v1724_v8 = vpop.f32.mrf.mxu0  ;;  %2011 = vmatmul.mubr.f32.gmra.mxu0 %v267_v4  ;;  %v3260_v9 = vpop.f32.mrf.mxu1  ;;  %3547 = vmatmul.mubr.f32.gmra.mxu1 %v523_v5 }
 0x3cc   :  { %4079 = vst [vmem:[#allocation7 + $0xb30] sm:$0xff] %v1724_v8  ;;  %4591 = vst [vmem:[#allocation7 + $0x1b30] sm:$0xff] %v3260_v9  ;;  %2016 = vmatprep.mubr.f32.mxu0 %v4875_v0  ;;  %3552 = vmatprep.mubr.f32.mxu1 %v4875_v0  ;;  %v534_v8 = vld [vmem:[#allocation2 + $0xf70] sm:$0xff] }
 0x3cd   :  { %v1726_v12 = vpop.f32.mrf.mxu0  ;;  %v3262_v13 = vpop.f32.mrf.mxu1 }
 0x3ce   :  { %4080 = vst [vmem:[#allocation7 + $0xb38] sm:$0xff] %v1726_v12  ;;  %4592 = vst [vmem:[#allocation7 + $0x1b38] sm:$0xff] %v3262_v13  ;;  %v279_v13 = vld [vmem:[#allocation2 + $0x778] sm:$0xff] }
 0x3cf   :  { %v1730_v14 = vpop.f32.mrf.mxu0  ;;  %2017 = vmatmul.mubr.f32.gmra.mxu0 %v268_v10  ;;  %v3266_v15 = vpop.f32.mrf.mxu1  ;;  %3553 = vmatmul.mubr.f32.gmra.mxu1 %v524_v11 }
 0x3d0   :  { %4081 = vst [vmem:[#allocation7 + $0xb40] sm:$0xff] %v1730_v14  ;;  %4593 = vst [vmem:[#allocation7 + $0x1b40] sm:$0xff] %v3266_v15  ;;  %2022 = vmatprep.mubr.f32.mxu0 %v4875_v0  ;;  %3558 = vmatprep.mubr.f32.mxu1 %v4875_v0  ;;  %v535_v14 = vld [vmem:[#allocation2 + $0xf78] sm:$0xff] }
 0x3d1   :  { %v1732_v18 = vpop.f32.mrf.mxu0  ;;  %v3268_v19 = vpop.f32.mrf.mxu1 }
 0x3d2   :  { %4082 = vst [vmem:[#allocation7 + $0xb48] sm:$0xff] %v1732_v18  ;;  %4594 = vst [vmem:[#allocation7 + $0x1b48] sm:$0xff] %v3268_v19  ;;  %v280_v19 = vld [vmem:[#allocation2 + $0x780] sm:$0xff] }
 0x3d3   :  { %v1736_v20 = vpop.f32.mrf.mxu0  ;;  %2023 = vmatmul.mubr.f32.gmra.mxu0 %v269_v16  ;;  %v3272_v21 = vpop.f32.mrf.mxu1  ;;  %3559 = vmatmul.mubr.f32.gmra.mxu1 %v525_v17 }
 0x3d4   :  { %4083 = vst [vmem:[#allocation7 + $0xb50] sm:$0xff] %v1736_v20  ;;  %4595 = vst [vmem:[#allocation7 + $0x1b50] sm:$0xff] %v3272_v21  ;;  %2028 = vmatprep.mubr.f32.mxu0 %v4875_v0  ;;  %3564 = vmatprep.mubr.f32.mxu1 %v4875_v0  ;;  %v536_v20 = vld [vmem:[#allocation2 + $0xf80] sm:$0xff] }
 0x3d5   :  { %v1738_v24 = vpop.f32.mrf.mxu0  ;;  %v3274_v25 = vpop.f32.mrf.mxu1 }
 0x3d6   :  { %4084 = vst [vmem:[#allocation7 + $0xb58] sm:$0xff] %v1738_v24  ;;  %4596 = vst [vmem:[#allocation7 + $0x1b58] sm:$0xff] %v3274_v25  ;;  %v281_v25 = vld [vmem:[#allocation2 + $0x788] sm:$0xff] }
 0x3d7   :  { %v1742_v26 = vpop.f32.mrf.mxu0  ;;  %2029 = vmatmul.mubr.f32.gmra.mxu0 %v270_v22  ;;  %v3278_v27 = vpop.f32.mrf.mxu1  ;;  %3565 = vmatmul.mubr.f32.gmra.mxu1 %v526_v23 }
 0x3d8   :  { %4085 = vst [vmem:[#allocation7 + $0xb60] sm:$0xff] %v1742_v26  ;;  %4597 = vst [vmem:[#allocation7 + $0x1b60] sm:$0xff] %v3278_v27  ;;  %2034 = vmatprep.mubr.f32.mxu0 %v4875_v0  ;;  %3570 = vmatprep.mubr.f32.mxu1 %v4875_v0  ;;  %v537_v26 = vld [vmem:[#allocation2 + $0xf88] sm:$0xff] }
 0x3d9   :  { %v1744_v30 = vpop.f32.mrf.mxu0  ;;  %v3280_v31 = vpop.f32.mrf.mxu1 }
 0x3da   :  { %4086 = vst [vmem:[#allocation7 + $0xb68] sm:$0xff] %v1744_v30  ;;  %4598 = vst [vmem:[#allocation7 + $0x1b68] sm:$0xff] %v3280_v31  ;;  %v282_v31 = vld [vmem:[#allocation2 + $0x790] sm:$0xff] }
 0x3db   :  { %v1748_v32 = vpop.f32.mrf.mxu0  ;;  %2035 = vmatmul.mubr.f32.gmra.mxu0 %v271_v28  ;;  %v3284_v33 = vpop.f32.mrf.mxu1  ;;  %3571 = vmatmul.mubr.f32.gmra.mxu1 %v527_v29 }
 0x3dc   :  { %4087 = vst [vmem:[#allocation7 + $0xb70] sm:$0xff] %v1748_v32  ;;  %4599 = vst [vmem:[#allocation7 + $0x1b70] sm:$0xff] %v3284_v33  ;;  %2040 = vmatprep.mubr.f32.mxu0 %v4875_v0  ;;  %3576 = vmatprep.mubr.f32.mxu1 %v4875_v0  ;;  %v538_v32 = vld [vmem:[#allocation2 + $0xf90] sm:$0xff] }
 0x3dd   :  { %v1750_v36 = vpop.f32.mrf.mxu0  ;;  %v3286_v37 = vpop.f32.mrf.mxu1 }
 0x3de   :  { %4088 = vst [vmem:[#allocation7 + $0xb78] sm:$0xff] %v1750_v36  ;;  %4600 = vst [vmem:[#allocation7 + $0x1b78] sm:$0xff] %v3286_v37  ;;  %v283_v37 = vld [vmem:[#allocation2 + $0x798] sm:$0xff] }
 0x3df   :  { %v1754_v38 = vpop.f32.mrf.mxu0  ;;  %2041 = vmatmul.mubr.f32.gmra.mxu0 %v272_v34  ;;  %v3290_v39 = vpop.f32.mrf.mxu1  ;;  %3577 = vmatmul.mubr.f32.gmra.mxu1 %v528_v35 }
 0x3e0   :  { %4089 = vst [vmem:[#allocation7 + $0xb80] sm:$0xff] %v1754_v38  ;;  %4601 = vst [vmem:[#allocation7 + $0x1b80] sm:$0xff] %v3290_v39  ;;  %2046 = vmatprep.mubr.f32.mxu0 %v4875_v0  ;;  %3582 = vmatprep.mubr.f32.mxu1 %v4875_v0  ;;  %v539_v38 = vld [vmem:[#allocation2 + $0xf98] sm:$0xff] }
 0x3e1   :  { %v1756_v42 = vpop.f32.mrf.mxu0  ;;  %v3292_v43 = vpop.f32.mrf.mxu1 }
 0x3e2   :  { %4090 = vst [vmem:[#allocation7 + $0xb88] sm:$0xff] %v1756_v42  ;;  %4602 = vst [vmem:[#allocation7 + $0x1b88] sm:$0xff] %v3292_v43  ;;  %v284_v43 = vld [vmem:[#allocation2 + $0x7a0] sm:$0xff] }
 0x3e3   :  { %v1760_v44 = vpop.f32.mrf.mxu0  ;;  %2047 = vmatmul.mubr.f32.gmra.mxu0 %v273_v40  ;;  %v3296_v45 = vpop.f32.mrf.mxu1  ;;  %3583 = vmatmul.mubr.f32.gmra.mxu1 %v529_v41 }
 0x3e4   :  { %4091 = vst [vmem:[#allocation7 + $0xb90] sm:$0xff] %v1760_v44  ;;  %4603 = vst [vmem:[#allocation7 + $0x1b90] sm:$0xff] %v3296_v45  ;;  %2052 = vmatprep.mubr.f32.mxu0 %v4875_v0  ;;  %3588 = vmatprep.mubr.f32.mxu1 %v4875_v0  ;;  %v540_v44 = vld [vmem:[#allocation2 + $0xfa0] sm:$0xff] }
 0x3e5   :  { %v1762_v48 = vpop.f32.mrf.mxu0  ;;  %v3298_v49 = vpop.f32.mrf.mxu1 }
 0x3e6   :  { %4092 = vst [vmem:[#allocation7 + $0xb98] sm:$0xff] %v1762_v48  ;;  %4604 = vst [vmem:[#allocation7 + $0x1b98] sm:$0xff] %v3298_v49  ;;  %v285_v49 = vld [vmem:[#allocation2 + $0x7a8] sm:$0xff] }
 0x3e7   :  { %v1766_v50 = vpop.f32.mrf.mxu0  ;;  %2053 = vmatmul.mubr.f32.gmra.mxu0 %v274_v46  ;;  %v3302_v51 = vpop.f32.mrf.mxu1  ;;  %3589 = vmatmul.mubr.f32.gmra.mxu1 %v530_v47 }
 0x3e8   :  { %4093 = vst [vmem:[#allocation7 + $0xba0] sm:$0xff] %v1766_v50  ;;  %4605 = vst [vmem:[#allocation7 + $0x1ba0] sm:$0xff] %v3302_v51  ;;  %2058 = vmatprep.mubr.f32.mxu0 %v4875_v0  ;;  %3594 = vmatprep.mubr.f32.mxu1 %v4875_v0  ;;  %v541_v50 = vld [vmem:[#allocation2 + $0xfa8] sm:$0xff] }
 0x3e9   :  { %v1768_v54 = vpop.f32.mrf.mxu0  ;;  %v3304_v55 = vpop.f32.mrf.mxu1 }
 0x3ea   :  { %4094 = vst [vmem:[#allocation7 + $0xba8] sm:$0xff] %v1768_v54  ;;  %4606 = vst [vmem:[#allocation7 + $0x1ba8] sm:$0xff] %v3304_v55  ;;  %v286_v55 = vld [vmem:[#allocation2 + $0x7b0] sm:$0xff] }
 0x3eb   :  { %v1772_v56 = vpop.f32.mrf.mxu0  ;;  %2059 = vmatmul.mubr.f32.gmra.mxu0 %v275_v52  ;;  %v3308_v57 = vpop.f32.mrf.mxu1  ;;  %3595 = vmatmul.mubr.f32.gmra.mxu1 %v531_v53 }
 0x3ec   :  { %4095 = vst [vmem:[#allocation7 + $0xbb0] sm:$0xff] %v1772_v56  ;;  %4607 = vst [vmem:[#allocation7 + $0x1bb0] sm:$0xff] %v3308_v57  ;;  %2064 = vmatprep.mubr.f32.mxu0 %v4875_v0  ;;  %3600 = vmatprep.mubr.f32.mxu1 %v4875_v0  ;;  %v542_v56 = vld [vmem:[#allocation2 + $0xfb0] sm:$0xff] }
 0x3ed   :  { %v1774_v60 = vpop.f32.mrf.mxu0  ;;  %v3310_v61 = vpop.f32.mrf.mxu1 }
 0x3ee   :  { %4096 = vst [vmem:[#allocation7 + $0xbb8] sm:$0xff] %v1774_v60  ;;  %4608 = vst [vmem:[#allocation7 + $0x1bb8] sm:$0xff] %v3310_v61  ;;  %v287_v61 = vld [vmem:[#allocation2 + $0x7b8] sm:$0xff] }
 0x3ef   :  { %v1778_v62 = vpop.f32.mrf.mxu0  ;;  %2065 = vmatmul.mubr.f32.gmra.mxu0 %v276_v58  ;;  %v3314_v63 = vpop.f32.mrf.mxu1  ;;  %3601 = vmatmul.mubr.f32.gmra.mxu1 %v532_v59 }
 0x3f0   :  { %4097 = vst [vmem:[#allocation7 + $0xbc0] sm:$0xff] %v1778_v62  ;;  %4609 = vst [vmem:[#allocation7 + $0x1bc0] sm:$0xff] %v3314_v63  ;;  %2070 = vmatprep.mubr.f32.mxu0 %v4875_v0  ;;  %3606 = vmatprep.mubr.f32.mxu1 %v4875_v0  ;;  %v543_v62 = vld [vmem:[#allocation2 + $0xfb8] sm:$0xff] }
 0x3f1   :  { %v1780_v3 = vpop.f32.mrf.mxu0  ;;  %v3316_v4 = vpop.f32.mrf.mxu1 }
 0x3f2   :  { %4098 = vst [vmem:[#allocation7 + $0xbc8] sm:$0xff] %v1780_v3  ;;  %4610 = vst [vmem:[#allocation7 + $0x1bc8] sm:$0xff] %v3316_v4  ;;  %v288_v4 = vld [vmem:[#allocation2 + $0x7c0] sm:$0xff] }
 0x3f3   :  { %v1784_v5 = vpop.f32.mrf.mxu0  ;;  %2071 = vmatmul.mubr.f32.gmra.mxu0 %v277_v1  ;;  %v3320_v6 = vpop.f32.mrf.mxu1  ;;  %3607 = vmatmul.mubr.f32.gmra.mxu1 %v533_v2 }
 0x3f4   :  { %4099 = vst [vmem:[#allocation7 + $0xbd0] sm:$0xff] %v1784_v5  ;;  %4611 = vst [vmem:[#allocation7 + $0x1bd0] sm:$0xff] %v3320_v6  ;;  %2076 = vmatprep.mubr.f32.mxu0 %v4875_v0  ;;  %3612 = vmatprep.mubr.f32.mxu1 %v4875_v0  ;;  %v544_v5 = vld [vmem:[#allocation2 + $0xfc0] sm:$0xff] }
 0x3f5   :  { %v1786_v9 = vpop.f32.mrf.mxu0  ;;  %v3322_v10 = vpop.f32.mrf.mxu1 }
 0x3f6   :  { %4100 = vst [vmem:[#allocation7 + $0xbd8] sm:$0xff] %v1786_v9  ;;  %4612 = vst [vmem:[#allocation7 + $0x1bd8] sm:$0xff] %v3322_v10  ;;  %v289_v10 = vld [vmem:[#allocation2 + $0x7c8] sm:$0xff] }
 0x3f7   :  { %v1790_v11 = vpop.f32.mrf.mxu0  ;;  %2077 = vmatmul.mubr.f32.gmra.mxu0 %v278_v7  ;;  %v3326_v12 = vpop.f32.mrf.mxu1  ;;  %3613 = vmatmul.mubr.f32.gmra.mxu1 %v534_v8 }
 0x3f8   :  { %4101 = vst [vmem:[#allocation7 + $0xbe0] sm:$0xff] %v1790_v11  ;;  %4613 = vst [vmem:[#allocation7 + $0x1be0] sm:$0xff] %v3326_v12  ;;  %2082 = vmatprep.mubr.f32.mxu0 %v4875_v0  ;;  %3618 = vmatprep.mubr.f32.mxu1 %v4875_v0  ;;  %v545_v11 = vld [vmem:[#allocation2 + $0xfc8] sm:$0xff] }
 0x3f9   :  { %v1792_v15 = vpop.f32.mrf.mxu0  ;;  %v3328_v16 = vpop.f32.mrf.mxu1 }
 0x3fa   :  { %4102 = vst [vmem:[#allocation7 + $0xbe8] sm:$0xff] %v1792_v15  ;;  %4614 = vst [vmem:[#allocation7 + $0x1be8] sm:$0xff] %v3328_v16  ;;  %v290_v16 = vld [vmem:[#allocation2 + $0x7d0] sm:$0xff] }
 0x3fb   :  { %v1796_v17 = vpop.f32.mrf.mxu0  ;;  %2083 = vmatmul.mubr.f32.gmra.mxu0 %v279_v13  ;;  %v3332_v18 = vpop.f32.mrf.mxu1  ;;  %3619 = vmatmul.mubr.f32.gmra.mxu1 %v535_v14 }
 0x3fc   :  { %4103 = vst [vmem:[#allocation7 + $0xbf0] sm:$0xff] %v1796_v17  ;;  %4615 = vst [vmem:[#allocation7 + $0x1bf0] sm:$0xff] %v3332_v18  ;;  %2088 = vmatprep.mubr.f32.mxu0 %v4875_v0  ;;  %3624 = vmatprep.mubr.f32.mxu1 %v4875_v0  ;;  %v546_v17 = vld [vmem:[#allocation2 + $0xfd0] sm:$0xff] }
 0x3fd   :  { %v1798_v21 = vpop.f32.mrf.mxu0  ;;  %v3334_v22 = vpop.f32.mrf.mxu1 }
 0x3fe   :  { %4104 = vst [vmem:[#allocation7 + $0xbf8] sm:$0xff] %v1798_v21  ;;  %4616 = vst [vmem:[#allocation7 + $0x1bf8] sm:$0xff] %v3334_v22  ;;  %v291_v22 = vld [vmem:[#allocation2 + $0x7d8] sm:$0xff] }
 0x3ff   :  { %v1802_v23 = vpop.f32.mrf.mxu0  ;;  %2089 = vmatmul.mubr.f32.gmra.mxu0 %v280_v19  ;;  %v3338_v24 = vpop.f32.mrf.mxu1  ;;  %3625 = vmatmul.mubr.f32.gmra.mxu1 %v536_v20 }
 0x400   :  { %4105 = vst [vmem:[#allocation7 + $0xc00] sm:$0xff] %v1802_v23  ;;  %4617 = vst [vmem:[#allocation7 + $0x1c00] sm:$0xff] %v3338_v24  ;;  %2094 = vmatprep.mubr.f32.mxu0 %v4875_v0  ;;  %3630 = vmatprep.mubr.f32.mxu1 %v4875_v0  ;;  %v547_v23 = vld [vmem:[#allocation2 + $0xfd8] sm:$0xff] }
 0x401   :  { %v1804_v27 = vpop.f32.mrf.mxu0  ;;  %v3340_v28 = vpop.f32.mrf.mxu1 }
 0x402   :  { %4106 = vst [vmem:[#allocation7 + $0xc08] sm:$0xff] %v1804_v27  ;;  %4618 = vst [vmem:[#allocation7 + $0x1c08] sm:$0xff] %v3340_v28  ;;  %v292_v28 = vld [vmem:[#allocation2 + $0x7e0] sm:$0xff] }
 0x403   :  { %v1808_v29 = vpop.f32.mrf.mxu0  ;;  %2095 = vmatmul.mubr.f32.gmra.mxu0 %v281_v25  ;;  %v3344_v30 = vpop.f32.mrf.mxu1  ;;  %3631 = vmatmul.mubr.f32.gmra.mxu1 %v537_v26 }
 0x404   :  { %4107 = vst [vmem:[#allocation7 + $0xc10] sm:$0xff] %v1808_v29  ;;  %4619 = vst [vmem:[#allocation7 + $0x1c10] sm:$0xff] %v3344_v30  ;;  %2100 = vmatprep.mubr.f32.mxu0 %v4875_v0  ;;  %3636 = vmatprep.mubr.f32.mxu1 %v4875_v0  ;;  %v548_v29 = vld [vmem:[#allocation2 + $0xfe0] sm:$0xff] }
 0x405   :  { %v1810_v33 = vpop.f32.mrf.mxu0  ;;  %v3346_v34 = vpop.f32.mrf.mxu1 }
 0x406   :  { %4108 = vst [vmem:[#allocation7 + $0xc18] sm:$0xff] %v1810_v33  ;;  %4620 = vst [vmem:[#allocation7 + $0x1c18] sm:$0xff] %v3346_v34  ;;  %v293_v34 = vld [vmem:[#allocation2 + $0x7e8] sm:$0xff] }
 0x407   :  { %v1814_v35 = vpop.f32.mrf.mxu0  ;;  %2101 = vmatmul.mubr.f32.gmra.mxu0 %v282_v31  ;;  %v3350_v36 = vpop.f32.mrf.mxu1  ;;  %3637 = vmatmul.mubr.f32.gmra.mxu1 %v538_v32 }
 0x408   :  { %4109 = vst [vmem:[#allocation7 + $0xc20] sm:$0xff] %v1814_v35  ;;  %4621 = vst [vmem:[#allocation7 + $0x1c20] sm:$0xff] %v3350_v36  ;;  %2106 = vmatprep.mubr.f32.mxu0 %v4875_v0  ;;  %3642 = vmatprep.mubr.f32.mxu1 %v4875_v0  ;;  %v549_v35 = vld [vmem:[#allocation2 + $0xfe8] sm:$0xff] }
 0x409   :  { %v1816_v39 = vpop.f32.mrf.mxu0  ;;  %v3352_v40 = vpop.f32.mrf.mxu1 }
 0x40a   :  { %4110 = vst [vmem:[#allocation7 + $0xc28] sm:$0xff] %v1816_v39  ;;  %4622 = vst [vmem:[#allocation7 + $0x1c28] sm:$0xff] %v3352_v40  ;;  %v294_v40 = vld [vmem:[#allocation2 + $0x7f0] sm:$0xff] }
 0x40b   :  { %v1820_v41 = vpop.f32.mrf.mxu0  ;;  %2107 = vmatmul.mubr.f32.gmra.mxu0 %v283_v37  ;;  %v3356_v42 = vpop.f32.mrf.mxu1  ;;  %3643 = vmatmul.mubr.f32.gmra.mxu1 %v539_v38 }
 0x40c   :  { %4111 = vst [vmem:[#allocation7 + $0xc30] sm:$0xff] %v1820_v41  ;;  %4623 = vst [vmem:[#allocation7 + $0x1c30] sm:$0xff] %v3356_v42  ;;  %2112 = vmatprep.mubr.f32.mxu0 %v4875_v0  ;;  %3648 = vmatprep.mubr.f32.mxu1 %v4875_v0  ;;  %v550_v41 = vld [vmem:[#allocation2 + $0xff0] sm:$0xff] }
 0x40d   :  { %v1822_v45 = vpop.f32.mrf.mxu0  ;;  %v3358_v46 = vpop.f32.mrf.mxu1 }
 0x40e   :  { %4112 = vst [vmem:[#allocation7 + $0xc38] sm:$0xff] %v1822_v45  ;;  %4624 = vst [vmem:[#allocation7 + $0x1c38] sm:$0xff] %v3358_v46  ;;  %v295_v46 = vld [vmem:[#allocation2 + $0x7f8] sm:$0xff] }
 0x40f   :  { %v1826_v47 = vpop.f32.mrf.mxu0  ;;  %2113 = vmatmul.mubr.f32.gmra.mxu0 %v284_v43  ;;  %v3362_v48 = vpop.f32.mrf.mxu1  ;;  %3649 = vmatmul.mubr.f32.gmra.mxu1 %v540_v44 }
 0x410   :  { %4113 = vst [vmem:[#allocation7 + $0xc40] sm:$0xff] %v1826_v47  ;;  %4625 = vst [vmem:[#allocation7 + $0x1c40] sm:$0xff] %v3362_v48  ;;  %2118 = vmatprep.mubr.f32.mxu0 %v4875_v0  ;;  %3654 = vmatprep.mubr.f32.mxu1 %v4875_v0  ;;  %v551_v47 = vld [vmem:[#allocation2 + $0xff8] sm:$0xff] }
 0x411   :  { %v1828_v51 = vpop.f32.mrf.mxu0  ;;  %v3364_v52 = vpop.f32.mrf.mxu1 }
 0x412   :  { %4114 = vst [vmem:[#allocation7 + $0xc48] sm:$0xff] %v1828_v51  ;;  %4626 = vst [vmem:[#allocation7 + $0x1c48] sm:$0xff] %v3364_v52 }
 0x413   :  { %v1832_v53 = vpop.f32.mrf.mxu0  ;;  %2119 = vmatmul.mubr.f32.gmra.mxu0 %v285_v49  ;;  %v3368_v54 = vpop.f32.mrf.mxu1  ;;  %3655 = vmatmul.mubr.f32.gmra.mxu1 %v541_v50 }
 0x414   :  { %4115 = vst [vmem:[#allocation7 + $0xc50] sm:$0xff] %v1832_v53  ;;  %4627 = vst [vmem:[#allocation7 + $0x1c50] sm:$0xff] %v3368_v54  ;;  %2124 = vmatprep.mubr.f32.mxu0 %v4875_v0  ;;  %3660 = vmatprep.mubr.f32.mxu1 %v4875_v0 }
 0x415   :  { %v1834_v57 = vpop.f32.mrf.mxu0  ;;  %v3370_v58 = vpop.f32.mrf.mxu1 }
 0x416   :  { %4116 = vst [vmem:[#allocation7 + $0xc58] sm:$0xff] %v1834_v57  ;;  %4628 = vst [vmem:[#allocation7 + $0x1c58] sm:$0xff] %v3370_v58 }
 0x417   :  { %v1838_v59 = vpop.f32.mrf.mxu0  ;;  %2125 = vmatmul.mubr.f32.gmra.mxu0 %v286_v55  ;;  %v3374_v60 = vpop.f32.mrf.mxu1  ;;  %3661 = vmatmul.mubr.f32.gmra.mxu1 %v542_v56 }
 0x418   :  { %4117 = vst [vmem:[#allocation7 + $0xc60] sm:$0xff] %v1838_v59  ;;  %4629 = vst [vmem:[#allocation7 + $0x1c60] sm:$0xff] %v3374_v60  ;;  %2130 = vmatprep.mubr.f32.mxu0 %v4875_v0  ;;  %3666 = vmatprep.mubr.f32.mxu1 %v4875_v0 }
 0x419   :  { %v1840_v63 = vpop.f32.mrf.mxu0  ;;  %v3376_v1 = vpop.f32.mrf.mxu1 }
 0x41a   :  { %4118 = vst [vmem:[#allocation7 + $0xc68] sm:$0xff] %v1840_v63  ;;  %4630 = vst [vmem:[#allocation7 + $0x1c68] sm:$0xff] %v3376_v1 }
 0x41b   :  { %v1844_v2 = vpop.f32.mrf.mxu0  ;;  %2131 = vmatmul.mubr.f32.gmra.mxu0 %v287_v61  ;;  %v3380_v3 = vpop.f32.mrf.mxu1  ;;  %3667 = vmatmul.mubr.f32.gmra.mxu1 %v543_v62 }
 0x41c   :  { %4119 = vst [vmem:[#allocation7 + $0xc70] sm:$0xff] %v1844_v2  ;;  %4631 = vst [vmem:[#allocation7 + $0x1c70] sm:$0xff] %v3380_v3  ;;  %2136 = vmatprep.mubr.f32.mxu0 %v4875_v0  ;;  %3672 = vmatprep.mubr.f32.mxu1 %v4875_v0 }
 0x41d   :  { %v1846_v6 = vpop.f32.mrf.mxu0  ;;  %v3382_v7 = vpop.f32.mrf.mxu1 }
 0x41e   :  { %4120 = vst [vmem:[#allocation7 + $0xc78] sm:$0xff] %v1846_v6  ;;  %4632 = vst [vmem:[#allocation7 + $0x1c78] sm:$0xff] %v3382_v7 }
 0x41f   :  { %v1850_v8 = vpop.f32.mrf.mxu0  ;;  %2137 = vmatmul.mubr.f32.gmra.mxu0 %v288_v4  ;;  %v3386_v9 = vpop.f32.mrf.mxu1  ;;  %3673 = vmatmul.mubr.f32.gmra.mxu1 %v544_v5 }
 0x420   :  { %4121 = vst [vmem:[#allocation7 + $0xc80] sm:$0xff] %v1850_v8  ;;  %4633 = vst [vmem:[#allocation7 + $0x1c80] sm:$0xff] %v3386_v9  ;;  %2142 = vmatprep.mubr.f32.mxu0 %v4875_v0  ;;  %3678 = vmatprep.mubr.f32.mxu1 %v4875_v0 }
 0x421   :  { %v1852_v12 = vpop.f32.mrf.mxu0  ;;  %v3388_v13 = vpop.f32.mrf.mxu1 }
 0x422   :  { %4122 = vst [vmem:[#allocation7 + $0xc88] sm:$0xff] %v1852_v12  ;;  %4634 = vst [vmem:[#allocation7 + $0x1c88] sm:$0xff] %v3388_v13 }
 0x423   :  { %v1856_v14 = vpop.f32.mrf.mxu0  ;;  %2143 = vmatmul.mubr.f32.gmra.mxu0 %v289_v10  ;;  %v3392_v15 = vpop.f32.mrf.mxu1  ;;  %3679 = vmatmul.mubr.f32.gmra.mxu1 %v545_v11 }
 0x424   :  { %4123 = vst [vmem:[#allocation7 + $0xc90] sm:$0xff] %v1856_v14  ;;  %4635 = vst [vmem:[#allocation7 + $0x1c90] sm:$0xff] %v3392_v15  ;;  %2148 = vmatprep.mubr.f32.mxu0 %v4875_v0  ;;  %3684 = vmatprep.mubr.f32.mxu1 %v4875_v0 }
 0x425   :  { %v1858_v18 = vpop.f32.mrf.mxu0  ;;  %v3394_v19 = vpop.f32.mrf.mxu1 }
 0x426   :  { %4124 = vst [vmem:[#allocation7 + $0xc98] sm:$0xff] %v1858_v18  ;;  %4636 = vst [vmem:[#allocation7 + $0x1c98] sm:$0xff] %v3394_v19 }
 0x427   :  { %v1862_v20 = vpop.f32.mrf.mxu0  ;;  %2149 = vmatmul.mubr.f32.gmra.mxu0 %v290_v16  ;;  %v3398_v21 = vpop.f32.mrf.mxu1  ;;  %3685 = vmatmul.mubr.f32.gmra.mxu1 %v546_v17 }
 0x428   :  { %4125 = vst [vmem:[#allocation7 + $0xca0] sm:$0xff] %v1862_v20  ;;  %4637 = vst [vmem:[#allocation7 + $0x1ca0] sm:$0xff] %v3398_v21  ;;  %2154 = vmatprep.mubr.f32.mxu0 %v4875_v0  ;;  %3690 = vmatprep.mubr.f32.mxu1 %v4875_v0 }
 0x429   :  { %v1864_v24 = vpop.f32.mrf.mxu0  ;;  %v3400_v25 = vpop.f32.mrf.mxu1 }
 0x42a   :  { %4126 = vst [vmem:[#allocation7 + $0xca8] sm:$0xff] %v1864_v24  ;;  %4638 = vst [vmem:[#allocation7 + $0x1ca8] sm:$0xff] %v3400_v25 }
 0x42b   :  { %v1868_v26 = vpop.f32.mrf.mxu0  ;;  %2155 = vmatmul.mubr.f32.gmra.mxu0 %v291_v22  ;;  %v3404_v27 = vpop.f32.mrf.mxu1  ;;  %3691 = vmatmul.mubr.f32.gmra.mxu1 %v547_v23 }
 0x42c   :  { %4127 = vst [vmem:[#allocation7 + $0xcb0] sm:$0xff] %v1868_v26  ;;  %4639 = vst [vmem:[#allocation7 + $0x1cb0] sm:$0xff] %v3404_v27  ;;  %2160 = vmatprep.mubr.f32.mxu0 %v4875_v0  ;;  %3696 = vmatprep.mubr.f32.mxu1 %v4875_v0 }
 0x42d   :  { %v1870_v30 = vpop.f32.mrf.mxu0  ;;  %v3406_v31 = vpop.f32.mrf.mxu1 }
 0x42e   :  { %4128 = vst [vmem:[#allocation7 + $0xcb8] sm:$0xff] %v1870_v30  ;;  %4640 = vst [vmem:[#allocation7 + $0x1cb8] sm:$0xff] %v3406_v31 }
 0x42f   :  { %v1874_v32 = vpop.f32.mrf.mxu0  ;;  %2161 = vmatmul.mubr.f32.gmra.mxu0 %v292_v28  ;;  %v3410_v33 = vpop.f32.mrf.mxu1  ;;  %3697 = vmatmul.mubr.f32.gmra.mxu1 %v548_v29 }
 0x430   :  { %4129 = vst [vmem:[#allocation7 + $0xcc0] sm:$0xff] %v1874_v32  ;;  %4641 = vst [vmem:[#allocation7 + $0x1cc0] sm:$0xff] %v3410_v33  ;;  %2166 = vmatprep.mubr.f32.mxu0 %v4875_v0  ;;  %3702 = vmatprep.mubr.f32.mxu1 %v4875_v0 }
 0x431   :  { %v1876_v36 = vpop.f32.mrf.mxu0  ;;  %v3412_v37 = vpop.f32.mrf.mxu1 }
 0x432   :  { %4130 = vst [vmem:[#allocation7 + $0xcc8] sm:$0xff] %v1876_v36  ;;  %4642 = vst [vmem:[#allocation7 + $0x1cc8] sm:$0xff] %v3412_v37 }
 0x433   :  { %v1880_v38 = vpop.f32.mrf.mxu0  ;;  %2167 = vmatmul.mubr.f32.gmra.mxu0 %v293_v34  ;;  %v3416_v39 = vpop.f32.mrf.mxu1  ;;  %3703 = vmatmul.mubr.f32.gmra.mxu1 %v549_v35 }
 0x434   :  { %4131 = vst [vmem:[#allocation7 + $0xcd0] sm:$0xff] %v1880_v38  ;;  %4643 = vst [vmem:[#allocation7 + $0x1cd0] sm:$0xff] %v3416_v39  ;;  %2172 = vmatprep.mubr.f32.mxu0 %v4875_v0  ;;  %3708 = vmatprep.mubr.f32.mxu1 %v4875_v0 }
 0x435   :  { %v1882_v42 = vpop.f32.mrf.mxu0  ;;  %v3418_v43 = vpop.f32.mrf.mxu1 }
 0x436   :  { %4132 = vst [vmem:[#allocation7 + $0xcd8] sm:$0xff] %v1882_v42  ;;  %4644 = vst [vmem:[#allocation7 + $0x1cd8] sm:$0xff] %v3418_v43 }
 0x437   :  { %v1886_v44 = vpop.f32.mrf.mxu0  ;;  %2173 = vmatmul.mubr.f32.gmra.mxu0 %v294_v40  ;;  %v3422_v45 = vpop.f32.mrf.mxu1  ;;  %3709 = vmatmul.mubr.f32.gmra.mxu1 %v550_v41 }
 0x438   :  { %4133 = vst [vmem:[#allocation7 + $0xce0] sm:$0xff] %v1886_v44  ;;  %4645 = vst [vmem:[#allocation7 + $0x1ce0] sm:$0xff] %v3422_v45  ;;  %2178 = vmatprep.mubr.f32.mxu0 %v4875_v0  ;;  %3714 = vmatprep.mubr.f32.mxu1 %v4875_v0 }
 0x439   :  { %v1888_v48 = vpop.f32.mrf.mxu0  ;;  %v3424_v49 = vpop.f32.mrf.mxu1 }
 0x43a   :  { %4134 = vst [vmem:[#allocation7 + $0xce8] sm:$0xff] %v1888_v48  ;;  %4646 = vst [vmem:[#allocation7 + $0x1ce8] sm:$0xff] %v3424_v49 }
 0x43b   :  { %v1892_v50 = vpop.f32.mrf.mxu0  ;;  %2179 = vmatmul.mubr.f32.gmra.mxu0 %v295_v46  ;;  %v3428_v51 = vpop.f32.mrf.mxu1  ;;  %3715 = vmatmul.mubr.f32.gmra.mxu1 %v551_v47 }
 0x43c   :  { %4135 = vst [vmem:[#allocation7 + $0xcf0] sm:$0xff] %v1892_v50  ;;  %4647 = vst [vmem:[#allocation7 + $0x1cf0] sm:$0xff] %v3428_v51 }
 0x43d   :  { %v1894_v52 = vpop.f32.mrf.mxu0  ;;  %v3430_v53 = vpop.f32.mrf.mxu1 }
 0x43e   :  { %4136 = vst [vmem:[#allocation7 + $0xcf8] sm:$0xff] %v1894_v52  ;;  %4648 = vst [vmem:[#allocation7 + $0x1cf8] sm:$0xff] %v3430_v53 }
 0x43f   :  { %v1898_v54 = vpop.f32.mrf.mxu0  ;;  %v3434_v55 = vpop.f32.mrf.mxu1 }
 0x440   :  { %4137 = vst [vmem:[#allocation7 + $0xd00] sm:$0xff] %v1898_v54  ;;  %4649 = vst [vmem:[#allocation7 + $0x1d00] sm:$0xff] %v3434_v55 }
 0x441   :  { %v1900_v0 = vpop.f32.mrf.mxu0  ;;  %v3436_v56 = vpop.f32.mrf.mxu1 }
 0x442   :  { %4138 = vst [vmem:[#allocation7 + $0xd08] sm:$0xff] %v1900_v0  ;;  %4650 = vst [vmem:[#allocation7 + $0x1d08] sm:$0xff] %v3436_v56 }
 0x443   :  { %v1904_v57 = vpop.f32.mrf.mxu0  ;;  %v3440_v58 = vpop.f32.mrf.mxu1 }
 0x444   :  { %4139 = vst [vmem:[#allocation7 + $0xd10] sm:$0xff] %v1904_v57  ;;  %4651 = vst [vmem:[#allocation7 + $0x1d10] sm:$0xff] %v3440_v58 }
 0x445   :  { %v1906_v59 = vpop.f32.mrf.mxu0  ;;  %v3442_v60 = vpop.f32.mrf.mxu1 }
 0x446   :  { %4140 = vst [vmem:[#allocation7 + $0xd18] sm:$0xff] %v1906_v59  ;;  %4652 = vst [vmem:[#allocation7 + $0x1d18] sm:$0xff] %v3442_v60 }
 0x447   :  { %v1910_v61 = vpop.f32.mrf.mxu0  ;;  %v3446_v62 = vpop.f32.mrf.mxu1 }
 0x448   :  { %4141 = vst [vmem:[#allocation7 + $0xd20] sm:$0xff] %v1910_v61  ;;  %4653 = vst [vmem:[#allocation7 + $0x1d20] sm:$0xff] %v3446_v62 }
 0x449   :  { %v1912_v63 = vpop.f32.mrf.mxu0  ;;  %v3448_v1 = vpop.f32.mrf.mxu1 }
 0x44a   :  { %4142 = vst [vmem:[#allocation7 + $0xd28] sm:$0xff] %v1912_v63  ;;  %4654 = vst [vmem:[#allocation7 + $0x1d28] sm:$0xff] %v3448_v1 }
 0x44b   :  { %v1916_v2 = vpop.f32.mrf.mxu0  ;;  %v3452_v3 = vpop.f32.mrf.mxu1 }
 0x44c   :  { %4143 = vst [vmem:[#allocation7 + $0xd30] sm:$0xff] %v1916_v2  ;;  %4655 = vst [vmem:[#allocation7 + $0x1d30] sm:$0xff] %v3452_v3 }
 0x44d   :  { %v1918_v4 = vpop.f32.mrf.mxu0  ;;  %v3454_v5 = vpop.f32.mrf.mxu1 }
 0x44e   :  { %4144 = vst [vmem:[#allocation7 + $0xd38] sm:$0xff] %v1918_v4  ;;  %4656 = vst [vmem:[#allocation7 + $0x1d38] sm:$0xff] %v3454_v5 }
 0x44f   :  { %v1922_v6 = vpop.f32.mrf.mxu0  ;;  %v3458_v7 = vpop.f32.mrf.mxu1 }
 0x450   :  { %4145 = vst [vmem:[#allocation7 + $0xd40] sm:$0xff] %v1922_v6  ;;  %4657 = vst [vmem:[#allocation7 + $0x1d40] sm:$0xff] %v3458_v7 }
 0x451   :  { %v1924_v8 = vpop.f32.mrf.mxu0  ;;  %v3460_v9 = vpop.f32.mrf.mxu1 }
 0x452   :  { %4146 = vst [vmem:[#allocation7 + $0xd48] sm:$0xff] %v1924_v8  ;;  %4658 = vst [vmem:[#allocation7 + $0x1d48] sm:$0xff] %v3460_v9 }
 0x453   :  { %v1928_v10 = vpop.f32.mrf.mxu0  ;;  %v3464_v11 = vpop.f32.mrf.mxu1 }
 0x454   :  { %4147 = vst [vmem:[#allocation7 + $0xd50] sm:$0xff] %v1928_v10  ;;  %4659 = vst [vmem:[#allocation7 + $0x1d50] sm:$0xff] %v3464_v11 }
 0x455   :  { %v1930_v12 = vpop.f32.mrf.mxu0  ;;  %v3466_v13 = vpop.f32.mrf.mxu1 }
 0x456   :  { %4148 = vst [vmem:[#allocation7 + $0xd58] sm:$0xff] %v1930_v12  ;;  %4660 = vst [vmem:[#allocation7 + $0x1d58] sm:$0xff] %v3466_v13 }
 0x457   :  { %v1934_v14 = vpop.f32.mrf.mxu0  ;;  %v3470_v15 = vpop.f32.mrf.mxu1 }
 0x458   :  { %4149 = vst [vmem:[#allocation7 + $0xd60] sm:$0xff] %v1934_v14  ;;  %4661 = vst [vmem:[#allocation7 + $0x1d60] sm:$0xff] %v3470_v15 }
 0x459   :  { %v1936_v16 = vpop.f32.mrf.mxu0  ;;  %v3472_v17 = vpop.f32.mrf.mxu1 }
 0x45a   :  { %4150 = vst [vmem:[#allocation7 + $0xd68] sm:$0xff] %v1936_v16  ;;  %4662 = vst [vmem:[#allocation7 + $0x1d68] sm:$0xff] %v3472_v17 }
 0x45b   :  { %v1940_v18 = vpop.f32.mrf.mxu0  ;;  %v3476_v19 = vpop.f32.mrf.mxu1 }
 0x45c   :  { %4151 = vst [vmem:[#allocation7 + $0xd70] sm:$0xff] %v1940_v18  ;;  %4663 = vst [vmem:[#allocation7 + $0x1d70] sm:$0xff] %v3476_v19 }
 0x45d   :  { %v1942_v20 = vpop.f32.mrf.mxu0  ;;  %v3478_v21 = vpop.f32.mrf.mxu1 }
 0x45e   :  { %4152 = vst [vmem:[#allocation7 + $0xd78] sm:$0xff] %v1942_v20  ;;  %4664 = vst [vmem:[#allocation7 + $0x1d78] sm:$0xff] %v3478_v21 }
 0x45f   :  { %v1946_v22 = vpop.f32.mrf.mxu0  ;;  %v3482_v23 = vpop.f32.mrf.mxu1 }
 0x460   :  { %4153 = vst [vmem:[#allocation7 + $0xd80] sm:$0xff] %v1946_v22  ;;  %4665 = vst [vmem:[#allocation7 + $0x1d80] sm:$0xff] %v3482_v23 }
 0x461   :  { %v1948_v24 = vpop.f32.mrf.mxu0  ;;  %v3484_v25 = vpop.f32.mrf.mxu1 }
 0x462   :  { %4154 = vst [vmem:[#allocation7 + $0xd88] sm:$0xff] %v1948_v24  ;;  %4666 = vst [vmem:[#allocation7 + $0x1d88] sm:$0xff] %v3484_v25 }
 0x463   :  { %v1952_v26 = vpop.f32.mrf.mxu0  ;;  %v3488_v27 = vpop.f32.mrf.mxu1 }
 0x464   :  { %4155 = vst [vmem:[#allocation7 + $0xd90] sm:$0xff] %v1952_v26  ;;  %4667 = vst [vmem:[#allocation7 + $0x1d90] sm:$0xff] %v3488_v27 }
 0x465   :  { %v1954_v28 = vpop.f32.mrf.mxu0  ;;  %v3490_v29 = vpop.f32.mrf.mxu1 }
 0x466   :  { %4156 = vst [vmem:[#allocation7 + $0xd98] sm:$0xff] %v1954_v28  ;;  %4668 = vst [vmem:[#allocation7 + $0x1d98] sm:$0xff] %v3490_v29 }
 0x467   :  { %v1958_v30 = vpop.f32.mrf.mxu0  ;;  %v3494_v31 = vpop.f32.mrf.mxu1 }
 0x468   :  { %4157 = vst [vmem:[#allocation7 + $0xda0] sm:$0xff] %v1958_v30  ;;  %4669 = vst [vmem:[#allocation7 + $0x1da0] sm:$0xff] %v3494_v31 }
 0x469   :  { %v1960_v32 = vpop.f32.mrf.mxu0  ;;  %v3496_v33 = vpop.f32.mrf.mxu1 }
 0x46a   :  { %4158 = vst [vmem:[#allocation7 + $0xda8] sm:$0xff] %v1960_v32  ;;  %4670 = vst [vmem:[#allocation7 + $0x1da8] sm:$0xff] %v3496_v33 }
 0x46b   :  { %v1964_v34 = vpop.f32.mrf.mxu0  ;;  %v3500_v35 = vpop.f32.mrf.mxu1 }
 0x46c   :  { %4159 = vst [vmem:[#allocation7 + $0xdb0] sm:$0xff] %v1964_v34  ;;  %4671 = vst [vmem:[#allocation7 + $0x1db0] sm:$0xff] %v3500_v35 }
 0x46d   :  { %v1966_v36 = vpop.f32.mrf.mxu0  ;;  %v3502_v37 = vpop.f32.mrf.mxu1 }
 0x46e   :  { %4160 = vst [vmem:[#allocation7 + $0xdb8] sm:$0xff] %v1966_v36  ;;  %4672 = vst [vmem:[#allocation7 + $0x1db8] sm:$0xff] %v3502_v37 }
 0x46f   :  { %v1970_v38 = vpop.f32.mrf.mxu0  ;;  %v3506_v39 = vpop.f32.mrf.mxu1 }
 0x470   :  { %4161 = vst [vmem:[#allocation7 + $0xdc0] sm:$0xff] %v1970_v38  ;;  %4673 = vst [vmem:[#allocation7 + $0x1dc0] sm:$0xff] %v3506_v39 }
 0x471   :  { %v1972_v40 = vpop.f32.mrf.mxu0  ;;  %v3508_v41 = vpop.f32.mrf.mxu1 }
 0x472   :  { %4162 = vst [vmem:[#allocation7 + $0xdc8] sm:$0xff] %v1972_v40  ;;  %4674 = vst [vmem:[#allocation7 + $0x1dc8] sm:$0xff] %v3508_v41 }
 0x473   :  { %v1976_v42 = vpop.f32.mrf.mxu0  ;;  %v3512_v43 = vpop.f32.mrf.mxu1 }
 0x474   :  { %4163 = vst [vmem:[#allocation7 + $0xdd0] sm:$0xff] %v1976_v42  ;;  %4675 = vst [vmem:[#allocation7 + $0x1dd0] sm:$0xff] %v3512_v43 }
 0x475   :  { %v1978_v44 = vpop.f32.mrf.mxu0  ;;  %v3514_v45 = vpop.f32.mrf.mxu1 }
 0x476   :  { %4164 = vst [vmem:[#allocation7 + $0xdd8] sm:$0xff] %v1978_v44  ;;  %4676 = vst [vmem:[#allocation7 + $0x1dd8] sm:$0xff] %v3514_v45 }
 0x477   :  { %v1982_v46 = vpop.f32.mrf.mxu0  ;;  %v3518_v47 = vpop.f32.mrf.mxu1 }
 0x478   :  { %4165 = vst [vmem:[#allocation7 + $0xde0] sm:$0xff] %v1982_v46  ;;  %4677 = vst [vmem:[#allocation7 + $0x1de0] sm:$0xff] %v3518_v47 }
 0x479   :  { %v1984_v48 = vpop.f32.mrf.mxu0  ;;  %v3520_v49 = vpop.f32.mrf.mxu1 }
 0x47a   :  { %4166 = vst [vmem:[#allocation7 + $0xde8] sm:$0xff] %v1984_v48  ;;  %4678 = vst [vmem:[#allocation7 + $0x1de8] sm:$0xff] %v3520_v49 }
 0x47b   :  { %v1988_v50 = vpop.f32.mrf.mxu0  ;;  %v3524_v51 = vpop.f32.mrf.mxu1 }
 0x47c   :  { %4167 = vst [vmem:[#allocation7 + $0xdf0] sm:$0xff] %v1988_v50  ;;  %4679 = vst [vmem:[#allocation7 + $0x1df0] sm:$0xff] %v3524_v51 }
 0x47d   :  { %v1990_v52 = vpop.f32.mrf.mxu0  ;;  %v3526_v53 = vpop.f32.mrf.mxu1 }
 0x47e   :  { %4168 = vst [vmem:[#allocation7 + $0xdf8] sm:$0xff] %v1990_v52  ;;  %4680 = vst [vmem:[#allocation7 + $0x1df8] sm:$0xff] %v3526_v53 }
 0x47f   :  { %v1994_v54 = vpop.f32.mrf.mxu0  ;;  %v3530_v55 = vpop.f32.mrf.mxu1 }
 0x480   :  { %4169 = vst [vmem:[#allocation7 + $0xe00] sm:$0xff] %v1994_v54  ;;  %4681 = vst [vmem:[#allocation7 + $0x1e00] sm:$0xff] %v3530_v55 }
 0x481   :  { %v1996_v0 = vpop.f32.mrf.mxu0  ;;  %v3532_v56 = vpop.f32.mrf.mxu1 }
 0x482   :  { %4170 = vst [vmem:[#allocation7 + $0xe08] sm:$0xff] %v1996_v0  ;;  %4682 = vst [vmem:[#allocation7 + $0x1e08] sm:$0xff] %v3532_v56 }
 0x483   :  { %v2000_v57 = vpop.f32.mrf.mxu0  ;;  %v3536_v58 = vpop.f32.mrf.mxu1 }
 0x484   :  { %4171 = vst [vmem:[#allocation7 + $0xe10] sm:$0xff] %v2000_v57  ;;  %4683 = vst [vmem:[#allocation7 + $0x1e10] sm:$0xff] %v3536_v58 }
 0x485   :  { %v2002_v59 = vpop.f32.mrf.mxu0  ;;  %v3538_v60 = vpop.f32.mrf.mxu1 }
 0x486   :  { %4172 = vst [vmem:[#allocation7 + $0xe18] sm:$0xff] %v2002_v59  ;;  %4684 = vst [vmem:[#allocation7 + $0x1e18] sm:$0xff] %v3538_v60 }
 0x487   :  { %v2006_v61 = vpop.f32.mrf.mxu0  ;;  %v3542_v62 = vpop.f32.mrf.mxu1 }
 0x488   :  { %4173 = vst [vmem:[#allocation7 + $0xe20] sm:$0xff] %v2006_v61  ;;  %4685 = vst [vmem:[#allocation7 + $0x1e20] sm:$0xff] %v3542_v62 }
 0x489   :  { %v2008_v63 = vpop.f32.mrf.mxu0  ;;  %v3544_v1 = vpop.f32.mrf.mxu1 }
 0x48a   :  { %4174 = vst [vmem:[#allocation7 + $0xe28] sm:$0xff] %v2008_v63  ;;  %4686 = vst [vmem:[#allocation7 + $0x1e28] sm:$0xff] %v3544_v1 }
 0x48b   :  { %v2012_v2 = vpop.f32.mrf.mxu0  ;;  %v3548_v3 = vpop.f32.mrf.mxu1 }
 0x48c   :  { %4175 = vst [vmem:[#allocation7 + $0xe30] sm:$0xff] %v2012_v2  ;;  %4687 = vst [vmem:[#allocation7 + $0x1e30] sm:$0xff] %v3548_v3 }
 0x48d   :  { %v2014_v4 = vpop.f32.mrf.mxu0  ;;  %v3550_v5 = vpop.f32.mrf.mxu1 }
 0x48e   :  { %4176 = vst [vmem:[#allocation7 + $0xe38] sm:$0xff] %v2014_v4  ;;  %4688 = vst [vmem:[#allocation7 + $0x1e38] sm:$0xff] %v3550_v5 }
 0x48f   :  { %v2018_v6 = vpop.f32.mrf.mxu0  ;;  %v3554_v7 = vpop.f32.mrf.mxu1 }
 0x490   :  { %4177 = vst [vmem:[#allocation7 + $0xe40] sm:$0xff] %v2018_v6  ;;  %4689 = vst [vmem:[#allocation7 + $0x1e40] sm:$0xff] %v3554_v7 }
 0x491   :  { %v2020_v8 = vpop.f32.mrf.mxu0  ;;  %v3556_v9 = vpop.f32.mrf.mxu1 }
 0x492   :  { %4178 = vst [vmem:[#allocation7 + $0xe48] sm:$0xff] %v2020_v8  ;;  %4690 = vst [vmem:[#allocation7 + $0x1e48] sm:$0xff] %v3556_v9 }
 0x493   :  { %v2024_v10 = vpop.f32.mrf.mxu0  ;;  %v3560_v11 = vpop.f32.mrf.mxu1 }
 0x494   :  { %4179 = vst [vmem:[#allocation7 + $0xe50] sm:$0xff] %v2024_v10  ;;  %4691 = vst [vmem:[#allocation7 + $0x1e50] sm:$0xff] %v3560_v11 }
 0x495   :  { %v2026_v12 = vpop.f32.mrf.mxu0  ;;  %v3562_v13 = vpop.f32.mrf.mxu1 }
 0x496   :  { %4180 = vst [vmem:[#allocation7 + $0xe58] sm:$0xff] %v2026_v12  ;;  %4692 = vst [vmem:[#allocation7 + $0x1e58] sm:$0xff] %v3562_v13 }
 0x497   :  { %v2030_v14 = vpop.f32.mrf.mxu0  ;;  %v3566_v15 = vpop.f32.mrf.mxu1 }
 0x498   :  { %4181 = vst [vmem:[#allocation7 + $0xe60] sm:$0xff] %v2030_v14  ;;  %4693 = vst [vmem:[#allocation7 + $0x1e60] sm:$0xff] %v3566_v15 }
 0x499   :  { %v2032_v16 = vpop.f32.mrf.mxu0  ;;  %v3568_v17 = vpop.f32.mrf.mxu1 }
 0x49a   :  { %4182 = vst [vmem:[#allocation7 + $0xe68] sm:$0xff] %v2032_v16  ;;  %4694 = vst [vmem:[#allocation7 + $0x1e68] sm:$0xff] %v3568_v17 }
 0x49b   :  { %v2036_v18 = vpop.f32.mrf.mxu0  ;;  %v3572_v19 = vpop.f32.mrf.mxu1 }
 0x49c   :  { %4183 = vst [vmem:[#allocation7 + $0xe70] sm:$0xff] %v2036_v18  ;;  %4695 = vst [vmem:[#allocation7 + $0x1e70] sm:$0xff] %v3572_v19 }
 0x49d   :  { %v2038_v20 = vpop.f32.mrf.mxu0  ;;  %v3574_v21 = vpop.f32.mrf.mxu1 }
 0x49e   :  { %4184 = vst [vmem:[#allocation7 + $0xe78] sm:$0xff] %v2038_v20  ;;  %4696 = vst [vmem:[#allocation7 + $0x1e78] sm:$0xff] %v3574_v21 }
 0x49f   :  { %v2042_v22 = vpop.f32.mrf.mxu0  ;;  %v3578_v23 = vpop.f32.mrf.mxu1 }
 0x4a0   :  { %4185 = vst [vmem:[#allocation7 + $0xe80] sm:$0xff] %v2042_v22  ;;  %4697 = vst [vmem:[#allocation7 + $0x1e80] sm:$0xff] %v3578_v23 }
 0x4a1   :  { %v2044_v24 = vpop.f32.mrf.mxu0  ;;  %v3580_v25 = vpop.f32.mrf.mxu1 }
 0x4a2   :  { %4186 = vst [vmem:[#allocation7 + $0xe88] sm:$0xff] %v2044_v24  ;;  %4698 = vst [vmem:[#allocation7 + $0x1e88] sm:$0xff] %v3580_v25 }
 0x4a3   :  { %v2048_v26 = vpop.f32.mrf.mxu0  ;;  %v3584_v27 = vpop.f32.mrf.mxu1 }
 0x4a4   :  { %4187 = vst [vmem:[#allocation7 + $0xe90] sm:$0xff] %v2048_v26  ;;  %4699 = vst [vmem:[#allocation7 + $0x1e90] sm:$0xff] %v3584_v27 }
 0x4a5   :  { %v2050_v28 = vpop.f32.mrf.mxu0  ;;  %v3586_v29 = vpop.f32.mrf.mxu1 }
 0x4a6   :  { %4188 = vst [vmem:[#allocation7 + $0xe98] sm:$0xff] %v2050_v28  ;;  %4700 = vst [vmem:[#allocation7 + $0x1e98] sm:$0xff] %v3586_v29 }
 0x4a7   :  { %v2054_v30 = vpop.f32.mrf.mxu0  ;;  %v3590_v31 = vpop.f32.mrf.mxu1 }
 0x4a8   :  { %4189 = vst [vmem:[#allocation7 + $0xea0] sm:$0xff] %v2054_v30  ;;  %4701 = vst [vmem:[#allocation7 + $0x1ea0] sm:$0xff] %v3590_v31 }
 0x4a9   :  { %v2056_v32 = vpop.f32.mrf.mxu0  ;;  %v3592_v33 = vpop.f32.mrf.mxu1 }
 0x4aa   :  { %4190 = vst [vmem:[#allocation7 + $0xea8] sm:$0xff] %v2056_v32  ;;  %4702 = vst [vmem:[#allocation7 + $0x1ea8] sm:$0xff] %v3592_v33 }
 0x4ab   :  { %v2060_v34 = vpop.f32.mrf.mxu0  ;;  %v3596_v35 = vpop.f32.mrf.mxu1 }
 0x4ac   :  { %4191 = vst [vmem:[#allocation7 + $0xeb0] sm:$0xff] %v2060_v34  ;;  %4703 = vst [vmem:[#allocation7 + $0x1eb0] sm:$0xff] %v3596_v35 }
 0x4ad   :  { %v2062_v36 = vpop.f32.mrf.mxu0  ;;  %v3598_v37 = vpop.f32.mrf.mxu1 }
 0x4ae   :  { %4192 = vst [vmem:[#allocation7 + $0xeb8] sm:$0xff] %v2062_v36  ;;  %4704 = vst [vmem:[#allocation7 + $0x1eb8] sm:$0xff] %v3598_v37 }
 0x4af   :  { %v2066_v38 = vpop.f32.mrf.mxu0  ;;  %v3602_v39 = vpop.f32.mrf.mxu1 }
 0x4b0   :  { %4193 = vst [vmem:[#allocation7 + $0xec0] sm:$0xff] %v2066_v38  ;;  %4705 = vst [vmem:[#allocation7 + $0x1ec0] sm:$0xff] %v3602_v39 }
 0x4b1   :  { %v2068_v40 = vpop.f32.mrf.mxu0  ;;  %v3604_v41 = vpop.f32.mrf.mxu1 }
 0x4b2   :  { %4194 = vst [vmem:[#allocation7 + $0xec8] sm:$0xff] %v2068_v40  ;;  %4706 = vst [vmem:[#allocation7 + $0x1ec8] sm:$0xff] %v3604_v41 }
 0x4b3   :  { %v2072_v42 = vpop.f32.mrf.mxu0  ;;  %v3608_v43 = vpop.f32.mrf.mxu1 }
 0x4b4   :  { %4195 = vst [vmem:[#allocation7 + $0xed0] sm:$0xff] %v2072_v42  ;;  %4707 = vst [vmem:[#allocation7 + $0x1ed0] sm:$0xff] %v3608_v43 }
 0x4b5   :  { %v2074_v44 = vpop.f32.mrf.mxu0  ;;  %v3610_v45 = vpop.f32.mrf.mxu1 }
 0x4b6   :  { %4196 = vst [vmem:[#allocation7 + $0xed8] sm:$0xff] %v2074_v44  ;;  %4708 = vst [vmem:[#allocation7 + $0x1ed8] sm:$0xff] %v3610_v45 }
 0x4b7   :  { %v2078_v46 = vpop.f32.mrf.mxu0  ;;  %v3614_v47 = vpop.f32.mrf.mxu1 }
 0x4b8   :  { %4197 = vst [vmem:[#allocation7 + $0xee0] sm:$0xff] %v2078_v46  ;;  %4709 = vst [vmem:[#allocation7 + $0x1ee0] sm:$0xff] %v3614_v47 }
 0x4b9   :  { %v2080_v48 = vpop.f32.mrf.mxu0  ;;  %v3616_v49 = vpop.f32.mrf.mxu1 }
 0x4ba   :  { %4198 = vst [vmem:[#allocation7 + $0xee8] sm:$0xff] %v2080_v48  ;;  %4710 = vst [vmem:[#allocation7 + $0x1ee8] sm:$0xff] %v3616_v49 }
 0x4bb   :  { %v2084_v50 = vpop.f32.mrf.mxu0  ;;  %v3620_v51 = vpop.f32.mrf.mxu1 }
 0x4bc   :  { %4199 = vst [vmem:[#allocation7 + $0xef0] sm:$0xff] %v2084_v50  ;;  %4711 = vst [vmem:[#allocation7 + $0x1ef0] sm:$0xff] %v3620_v51 }
 0x4bd   :  { %v2086_v52 = vpop.f32.mrf.mxu0  ;;  %v3622_v53 = vpop.f32.mrf.mxu1 }
 0x4be   :  { %4200 = vst [vmem:[#allocation7 + $0xef8] sm:$0xff] %v2086_v52  ;;  %4712 = vst [vmem:[#allocation7 + $0x1ef8] sm:$0xff] %v3622_v53 }
 0x4bf   :  { %v2090_v54 = vpop.f32.mrf.mxu0  ;;  %v3626_v55 = vpop.f32.mrf.mxu1 }
 0x4c0   :  { %4201 = vst [vmem:[#allocation7 + $0xf00] sm:$0xff] %v2090_v54  ;;  %4713 = vst [vmem:[#allocation7 + $0x1f00] sm:$0xff] %v3626_v55 }
 0x4c1   :  { %v2092_v0 = vpop.f32.mrf.mxu0  ;;  %v3628_v56 = vpop.f32.mrf.mxu1 }
 0x4c2   :  { %4202 = vst [vmem:[#allocation7 + $0xf08] sm:$0xff] %v2092_v0  ;;  %4714 = vst [vmem:[#allocation7 + $0x1f08] sm:$0xff] %v3628_v56 }
 0x4c3   :  { %v2096_v57 = vpop.f32.mrf.mxu0  ;;  %v3632_v58 = vpop.f32.mrf.mxu1 }
 0x4c4   :  { %4203 = vst [vmem:[#allocation7 + $0xf10] sm:$0xff] %v2096_v57  ;;  %4715 = vst [vmem:[#allocation7 + $0x1f10] sm:$0xff] %v3632_v58 }
 0x4c5   :  { %v2098_v59 = vpop.f32.mrf.mxu0  ;;  %v3634_v60 = vpop.f32.mrf.mxu1 }
 0x4c6   :  { %4204 = vst [vmem:[#allocation7 + $0xf18] sm:$0xff] %v2098_v59  ;;  %4716 = vst [vmem:[#allocation7 + $0x1f18] sm:$0xff] %v3634_v60 }
 0x4c7   :  { %v2102_v61 = vpop.f32.mrf.mxu0  ;;  %v3638_v62 = vpop.f32.mrf.mxu1 }
 0x4c8   :  { %4205 = vst [vmem:[#allocation7 + $0xf20] sm:$0xff] %v2102_v61  ;;  %4717 = vst [vmem:[#allocation7 + $0x1f20] sm:$0xff] %v3638_v62 }
 0x4c9   :  { %v2104_v63 = vpop.f32.mrf.mxu0  ;;  %v3640_v1 = vpop.f32.mrf.mxu1 }
 0x4ca   :  { %4206 = vst [vmem:[#allocation7 + $0xf28] sm:$0xff] %v2104_v63  ;;  %4718 = vst [vmem:[#allocation7 + $0x1f28] sm:$0xff] %v3640_v1 }
 0x4cb   :  { %v2108_v2 = vpop.f32.mrf.mxu0  ;;  %v3644_v3 = vpop.f32.mrf.mxu1 }
 0x4cc   :  { %4207 = vst [vmem:[#allocation7 + $0xf30] sm:$0xff] %v2108_v2  ;;  %4719 = vst [vmem:[#allocation7 + $0x1f30] sm:$0xff] %v3644_v3 }
 0x4cd   :  { %v2110_v4 = vpop.f32.mrf.mxu0  ;;  %v3646_v5 = vpop.f32.mrf.mxu1 }
 0x4ce   :  { %4208 = vst [vmem:[#allocation7 + $0xf38] sm:$0xff] %v2110_v4  ;;  %4720 = vst [vmem:[#allocation7 + $0x1f38] sm:$0xff] %v3646_v5 }
 0x4cf   :  { %v2114_v6 = vpop.f32.mrf.mxu0  ;;  %v3650_v7 = vpop.f32.mrf.mxu1 }
 0x4d0   :  { %4209 = vst [vmem:[#allocation7 + $0xf40] sm:$0xff] %v2114_v6  ;;  %4721 = vst [vmem:[#allocation7 + $0x1f40] sm:$0xff] %v3650_v7 }
 0x4d1   :  { %v2116_v8 = vpop.f32.mrf.mxu0  ;;  %v3652_v9 = vpop.f32.mrf.mxu1 }
 0x4d2   :  { %4210 = vst [vmem:[#allocation7 + $0xf48] sm:$0xff] %v2116_v8  ;;  %4722 = vst [vmem:[#allocation7 + $0x1f48] sm:$0xff] %v3652_v9 }
 0x4d3   :  { %v2120_v10 = vpop.f32.mrf.mxu0  ;;  %v3656_v11 = vpop.f32.mrf.mxu1 }
 0x4d4   :  { %4211 = vst [vmem:[#allocation7 + $0xf50] sm:$0xff] %v2120_v10  ;;  %4723 = vst [vmem:[#allocation7 + $0x1f50] sm:$0xff] %v3656_v11 }
 0x4d5   :  { %v2122_v12 = vpop.f32.mrf.mxu0  ;;  %v3658_v13 = vpop.f32.mrf.mxu1 }
 0x4d6   :  { %4212 = vst [vmem:[#allocation7 + $0xf58] sm:$0xff] %v2122_v12  ;;  %4724 = vst [vmem:[#allocation7 + $0x1f58] sm:$0xff] %v3658_v13 }
 0x4d7   :  { %v2126_v14 = vpop.f32.mrf.mxu0  ;;  %v3662_v15 = vpop.f32.mrf.mxu1 }
 0x4d8   :  { %4213 = vst [vmem:[#allocation7 + $0xf60] sm:$0xff] %v2126_v14  ;;  %4725 = vst [vmem:[#allocation7 + $0x1f60] sm:$0xff] %v3662_v15 }
 0x4d9   :  { %v2128_v16 = vpop.f32.mrf.mxu0  ;;  %v3664_v17 = vpop.f32.mrf.mxu1 }
 0x4da   :  { %4214 = vst [vmem:[#allocation7 + $0xf68] sm:$0xff] %v2128_v16  ;;  %4726 = vst [vmem:[#allocation7 + $0x1f68] sm:$0xff] %v3664_v17 }
 0x4db   :  { %v2132_v18 = vpop.f32.mrf.mxu0  ;;  %v3668_v19 = vpop.f32.mrf.mxu1 }
 0x4dc   :  { %4215 = vst [vmem:[#allocation7 + $0xf70] sm:$0xff] %v2132_v18  ;;  %4727 = vst [vmem:[#allocation7 + $0x1f70] sm:$0xff] %v3668_v19 }
 0x4dd   :  { %v2134_v20 = vpop.f32.mrf.mxu0  ;;  %v3670_v21 = vpop.f32.mrf.mxu1 }
 0x4de   :  { %4216 = vst [vmem:[#allocation7 + $0xf78] sm:$0xff] %v2134_v20  ;;  %4728 = vst [vmem:[#allocation7 + $0x1f78] sm:$0xff] %v3670_v21 }
 0x4df   :  { %v2138_v22 = vpop.f32.mrf.mxu0  ;;  %v3674_v23 = vpop.f32.mrf.mxu1 }
 0x4e0   :  { %4217 = vst [vmem:[#allocation7 + $0xf80] sm:$0xff] %v2138_v22  ;;  %4729 = vst [vmem:[#allocation7 + $0x1f80] sm:$0xff] %v3674_v23 }
 0x4e1   :  { %v2140_v24 = vpop.f32.mrf.mxu0  ;;  %v3676_v25 = vpop.f32.mrf.mxu1 }
 0x4e2   :  { %4218 = vst [vmem:[#allocation7 + $0xf88] sm:$0xff] %v2140_v24  ;;  %4730 = vst [vmem:[#allocation7 + $0x1f88] sm:$0xff] %v3676_v25 }
 0x4e3   :  { %v2144_v26 = vpop.f32.mrf.mxu0  ;;  %v3680_v27 = vpop.f32.mrf.mxu1 }
 0x4e4   :  { %4219 = vst [vmem:[#allocation7 + $0xf90] sm:$0xff] %v2144_v26  ;;  %4731 = vst [vmem:[#allocation7 + $0x1f90] sm:$0xff] %v3680_v27 }
 0x4e5   :  { %v2146_v28 = vpop.f32.mrf.mxu0  ;;  %v3682_v29 = vpop.f32.mrf.mxu1 }
 0x4e6   :  { %4220 = vst [vmem:[#allocation7 + $0xf98] sm:$0xff] %v2146_v28  ;;  %4732 = vst [vmem:[#allocation7 + $0x1f98] sm:$0xff] %v3682_v29 }
 0x4e7   :  { %v2150_v30 = vpop.f32.mrf.mxu0  ;;  %v3686_v31 = vpop.f32.mrf.mxu1 }
 0x4e8   :  { %4221 = vst [vmem:[#allocation7 + $0xfa0] sm:$0xff] %v2150_v30  ;;  %4733 = vst [vmem:[#allocation7 + $0x1fa0] sm:$0xff] %v3686_v31 }
 0x4e9   :  { %v2152_v32 = vpop.f32.mrf.mxu0  ;;  %v3688_v33 = vpop.f32.mrf.mxu1 }
 0x4ea   :  { %4222 = vst [vmem:[#allocation7 + $0xfa8] sm:$0xff] %v2152_v32  ;;  %4734 = vst [vmem:[#allocation7 + $0x1fa8] sm:$0xff] %v3688_v33 }
 0x4eb   :  { %v2156_v34 = vpop.f32.mrf.mxu0  ;;  %v3692_v35 = vpop.f32.mrf.mxu1 }
 0x4ec   :  { %4223 = vst [vmem:[#allocation7 + $0xfb0] sm:$0xff] %v2156_v34  ;;  %4735 = vst [vmem:[#allocation7 + $0x1fb0] sm:$0xff] %v3692_v35 }
 0x4ed   :  { %v2158_v36 = vpop.f32.mrf.mxu0  ;;  %v3694_v37 = vpop.f32.mrf.mxu1 }
 0x4ee   :  { %4224 = vst [vmem:[#allocation7 + $0xfb8] sm:$0xff] %v2158_v36  ;;  %4736 = vst [vmem:[#allocation7 + $0x1fb8] sm:$0xff] %v3694_v37 }
 0x4ef   :  { %v2162_v38 = vpop.f32.mrf.mxu0  ;;  %v3698_v39 = vpop.f32.mrf.mxu1 }
 0x4f0   :  { %4225 = vst [vmem:[#allocation7 + $0xfc0] sm:$0xff] %v2162_v38  ;;  %4737 = vst [vmem:[#allocation7 + $0x1fc0] sm:$0xff] %v3698_v39 }
 0x4f1   :  { %v2164_v40 = vpop.f32.mrf.mxu0  ;;  %v3700_v41 = vpop.f32.mrf.mxu1 }
 0x4f2   :  { %4226 = vst [vmem:[#allocation7 + $0xfc8] sm:$0xff] %v2164_v40  ;;  %4738 = vst [vmem:[#allocation7 + $0x1fc8] sm:$0xff] %v3700_v41 }
 0x4f3   :  { %v2168_v42 = vpop.f32.mrf.mxu0  ;;  %v3704_v43 = vpop.f32.mrf.mxu1 }
 0x4f4   :  { %4227 = vst [vmem:[#allocation7 + $0xfd0] sm:$0xff] %v2168_v42  ;;  %4739 = vst [vmem:[#allocation7 + $0x1fd0] sm:$0xff] %v3704_v43 }
 0x4f5   :  { %v2170_v44 = vpop.f32.mrf.mxu0  ;;  %v3706_v45 = vpop.f32.mrf.mxu1 }
 0x4f6   :  { %4228 = vst [vmem:[#allocation7 + $0xfd8] sm:$0xff] %v2170_v44  ;;  %4740 = vst [vmem:[#allocation7 + $0x1fd8] sm:$0xff] %v3706_v45 }
 0x4f7   :  { %v2174_v46 = vpop.f32.mrf.mxu0  ;;  %v3710_v47 = vpop.f32.mrf.mxu1 }
 0x4f8   :  { %4229 = vst [vmem:[#allocation7 + $0xfe0] sm:$0xff] %v2174_v46  ;;  %4741 = vst [vmem:[#allocation7 + $0x1fe0] sm:$0xff] %v3710_v47 }
 0x4f9   :  { %v2176_v48 = vpop.f32.mrf.mxu0  ;;  %v3712_v49 = vpop.f32.mrf.mxu1 }
 0x4fa   :  { %4230 = vst [vmem:[#allocation7 + $0xfe8] sm:$0xff] %v2176_v48  ;;  %4742 = vst [vmem:[#allocation7 + $0x1fe8] sm:$0xff] %v3712_v49 }
 0x4fb   :  { %v2180_v50 = vpop.f32.mrf.mxu0  ;;  %v3716_v51 = vpop.f32.mrf.mxu1 }
 0x4fc   :  { %4231 = vst [vmem:[#allocation7 + $0xff0] sm:$0xff] %v2180_v50  ;;  %4743 = vst [vmem:[#allocation7 + $0x1ff0] sm:$0xff] %v3716_v51 }
 0x4fd   :  { %v2182_v52 = vpop.f32.mrf.mxu0  ;;  %v3718_v53 = vpop.f32.mrf.mxu1 }
 0x4fe   :  { %4232 = vst [vmem:[#allocation7 + $0xff8] sm:$0xff] %v2182_v52  ;;  %4744 = vst [vmem:[#allocation7 + $0x1ff8] sm:$0xff] %v3718_v53 }
 0x4ff   :  { %4854 = shalt.err (!%p4851_p0)
}
 0x500   :  { %4756 = dma.vmem_to_hbm [thread:$0]  %s4751_s1, 131072, %s5421_s2, [#allocation4], %s4873_s19, %s4873_s19, %s4874_s20  }
 0x501   :  { %4867 = dma.done.wait [#allocation4], 131072  }
 0x502   :  { %4868 = vsyncadd [#allocation4], 4294836224 }
 0x503   :  { %4760 = vsyncpa [#allocation3], 1 }
 0x504   :  { %4761 = vsyncpa [#allocation6], 1 }
 0x505   :  { %4762 = vsyncpa [#allocation4], 1 }

</bundles_post_ra>
